<compile_context>
chip_gen: v7x
topology: tpu7x:2x2x1
jax: 0.10.0
libtpu: 0.0.40
codegen_flags: <defaults>
</compile_context>

<pallas_src>
import math
from functools import partial

import jax
import jax.numpy as jnp
from jax.experimental import pallas as pl
from jax.experimental.pallas import tpu as pltpu

LN_EPS = 1e-5                      # PyTorch nn.LayerNorm default
MATMUL_DTYPE = jnp.bfloat16        # bf16 MXU matmuls, f32 accumulation


# ---------------------------------------------------------------------------
# in-kernel helpers (operate on already-loaded arrays; stats in f32)
# ---------------------------------------------------------------------------
def _layernorm(x, gamma, beta):
    mu = jnp.mean(x, axis=-1, keepdims=True)
    xc = x - mu
    var = jnp.mean(xc * xc, axis=-1, keepdims=True)
    return xc * jax.lax.rsqrt(var + LN_EPS) * gamma + beta


def _mha(q_t, k_t, v_t, qb_scores, wo_t, bo_eff, *, heads, dh,
         seq_q, seq_kv, n_blocks, cdt):
    """Multi-head attention on feature-major projections.

    q_t: (D, n_blocks*seq_q) f32, k_t/v_t: (D, n_blocks*seq_kv) f32 (feature-major),
    qb_scores: (H, n_blocks*seq_kv) f32 (pre-folded Q-bias score term),
    wo_t: (D_in, D_out) output weights, bo_eff: (1, D) output bias with the V bias folded in.

    Exact bias handling (no (Dout, 1) lane-padded bias tensors):
      - K bias: dropped (adds a per-query constant to every score row -> softmax invariant)
      - V bias: folded offline into bo_eff (softmax rows sum to 1)
      - Q bias: enters the scores via qb_scores[h, j] = (bq_h/sqrt(dh)) . (Wk_h x_j)
      - 1/sqrt(dh): folded offline into the Q weight rows.

    Returns (n_blocks*seq_q, D) row-major f32, already output-projected.
    """
    D = heads * dh
    q_all = q_t.reshape(heads, dh, n_blocks * seq_q).astype(cdt)
    k_all = k_t.reshape(heads, dh, n_blocks * seq_kv).astype(cdt)
    v_all = v_t.reshape(heads, dh, n_blocks * seq_kv).astype(cdt)
    wo_c = wo_t.astype(cdt)

    outs = []
    for b in range(n_blocks):                     # static unroll: attention is per sequence
        q = q_all[:, :, b * seq_q:(b + 1) * seq_q]          # (H, dh, Sq)
        k = k_all[:, :, b * seq_kv:(b + 1) * seq_kv]        # (H, dh, Skv)
        v = v_all[:, :, b * seq_kv:(b + 1) * seq_kv]        # (H, dh, Skv)

        # scores: heads batched, the "transpose" of q absorbed into dimension_numbers
        s = jax.lax.dot_general(q, k, (((1,), (1,)), ((0,), (0,))),
                                preferred_element_type=jnp.float32)      # (H, Sq, Skv)
        s = s + qb_scores[:, None, b * seq_kv:(b + 1) * seq_kv]
        # TODO(synk): mask=None path only; an additive attention mask would be applied here.

        m = jnp.max(s, axis=-1, keepdims=True)
        p = jnp.exp(s - m)
        denom = jnp.sum(p, axis=-1, keepdims=True)
        p = (p * pl.reciprocal(denom, approx=True)).astype(cdt)          # bf16 into PV matmul

        # feature-major PV output so the head merge is a free (outer+sublane) reshape
        o_t = jax.lax.dot_general(v, p, (((2,), (2,)), ((0,), (0,))),
                                  preferred_element_type=jnp.float32)    # (H, dh, Sq)
        o_flat = o_t.reshape(D, seq_q).astype(cdt)                       # (D, Sq)

        # single full-depth (K = H*dh = D) output projection -> (Sq, D) row-major
        att = jax.lax.dot_general(o_flat, wo_c, (((0,), (0,)), ((), ())),
                                  preferred_element_type=jnp.float32)    # (Sq, D)
        outs.append(att)

    att_all = outs[0] if n_blocks == 1 else jnp.concatenate(outs, axis=0)
    return att_all + bo_eff


# ---------------------------------------------------------------------------
# fused encoder stack kernel: grid = (batch_blocks, layer)
# ---------------------------------------------------------------------------
def encoder_stack_kernel(x_ref,
                         ln1_g, ln1_b, wqkv, qb_w, wo_t, bo,
                         ln2_g, ln2_b, w1, b1, w2, b2,
                         fin_g, fin_b,
                         o_ref, acc_ref, *, heads, cdt, final_norm):
    layer = pl.program_id(1)
    bt, S, D = x_ref.shape
    M = bt * S
    dh = D // heads

    @pl.when(layer == 0)
    def _load():
        acc_ref[...] = x_ref[...].reshape(M, D).astype(jnp.float32)

    x = acc_ref[...]

    # --- self-attention sub-layer (pre-norm, residual) ---
    xn = _layernorm(x, ln1_g[0], ln1_b[0]).astype(cdt)
    qkv_t = jax.lax.dot_general(wqkv[0].astype(cdt), xn, (((1,), (1,)), ((), ())),
                                preferred_element_type=jnp.float32)      # (3D, M)
    qb_s = jax.lax.dot_general(qb_w[0].astype(cdt), xn, (((1,), (1,)), ((), ())),
                               preferred_element_type=jnp.float32)       # (H, M)
    x = x + _mha(qkv_t[0:D], qkv_t[D:2 * D], qkv_t[2 * D:3 * D], qb_s,
                 wo_t[0], bo[0], heads=heads, dh=dh,
                 seq_q=S, seq_kv=S, n_blocks=bt, cdt=cdt)

    # --- feed-forward sub-layer (pre-norm, residual) ---
    xf = _layernorm(x, ln2_g[0], ln2_b[0]).astype(cdt)
    hid = jnp.dot(xf, w1[0].astype(cdt), preferred_element_type=jnp.float32) + b1[0]
    hid = jnp.maximum(hid, 0.0)
    x = x + (jnp.dot(hid.astype(cdt), w2[0].astype(cdt),
                     preferred_element_type=jnp.float32) + b2[0])

    acc_ref[...] = x

    @pl.when(layer == pl.num_programs(1) - 1)
    def _store():
        y = _layernorm(x, fin_g[...], fin_b[...]) if final_norm else x
        o_ref[...] = y.reshape(bt, S, D).astype(o_ref.dtype)


# ---------------------------------------------------------------------------
# fused decoder stack kernel: grid = (batch_blocks, layer)
# ---------------------------------------------------------------------------
def decoder_stack_kernel(x_ref, mem_ref,
                         sa_ln_g, sa_ln_b, sa_wqkv, sa_qb_w, sa_wo_t, sa_bo,
                         ca_ln_g, ca_ln_b, ca_wq, ca_qb_w, ca_wkv, ca_wo_t, ca_bo,
                         ff_ln_g, ff_ln_b, w1, b1, w2, b2,
                         fin_g, fin_b,
                         o_ref, acc_ref, *, heads, cdt, final_norm):
    layer = pl.program_id(1)
    bt, S, D = x_ref.shape
    _, S_src, _ = mem_ref.shape
    M = bt * S
    dh = D // heads

    @pl.when(layer == 0)
    def _load():
        acc_ref[...] = x_ref[...].reshape(M, D).astype(jnp.float32)

    x = acc_ref[...]
    mem = mem_ref[...].reshape(bt * S_src, D)        # bf16 (cast once in the wrapper);
                                                     # only ever feeds bf16 MXU matmuls

    # --- masked self-attention sub-layer ---
    # TODO(synk): DecoderLayer source not provided; standard pre-norm layer with
    #             trg_mask=None (module's default) is assumed (no causal mask).
    xn = _layernorm(x, sa_ln_g[0], sa_ln_b[0]).astype(cdt)
    qkv_t = jax.lax.dot_general(sa_wqkv[0].astype(cdt), xn, (((1,), (1,)), ((), ())),
                                preferred_element_type=jnp.float32)      # (3D, M)
    qb_s = jax.lax.dot_general(sa_qb_w[0].astype(cdt), xn, (((1,), (1,)), ((), ())),
                               preferred_element_type=jnp.float32)       # (H, M)
    x = x + _mha(qkv_t[0:D], qkv_t[D:2 * D], qkv_t[2 * D:3 * D], qb_s,
                 sa_wo_t[0], sa_bo[0], heads=heads, dh=dh,
                 seq_q=S, seq_kv=S, n_blocks=bt, cdt=cdt)

    # --- cross-attention over encoder output (src_mask=None) ---
    xc = _layernorm(x, ca_ln_g[0], ca_ln_b[0]).astype(cdt)
    q_t = jax.lax.dot_general(ca_wq[0].astype(cdt), xc, (((1,), (1,)), ((), ())),
                              preferred_element_type=jnp.float32)        # (D, M)
    kv_t = jax.lax.dot_general(ca_wkv[0].astype(cdt), mem, (((1,), (1,)), ((), ())),
                               preferred_element_type=jnp.float32)       # (2D, bt*S_src)
    qb_c = jax.lax.dot_general(ca_qb_w[0].astype(cdt), mem, (((1,), (1,)), ((), ())),
                               preferred_element_type=jnp.float32)       # (H, bt*S_src)
    x = x + _mha(q_t, kv_t[0:D], kv_t[D:2 * D], qb_c,
                 ca_wo_t[0], ca_bo[0], heads=heads, dh=dh,
                 seq_q=S, seq_kv=S_src, n_blocks=bt, cdt=cdt)

    # --- feed-forward sub-layer ---
    xf = _layernorm(x, ff_ln_g[0], ff_ln_b[0]).astype(cdt)
    hid = jnp.dot(xf, w1[0].astype(cdt), preferred_element_type=jnp.float32) + b1[0]
    hid = jnp.maximum(hid, 0.0)
    x = x + (jnp.dot(hid.astype(cdt), w2[0].astype(cdt),
                     preferred_element_type=jnp.float32) + b2[0])

    acc_ref[...] = x

    @pl.when(layer == pl.num_programs(1) - 1)
    def _store():
        y = _layernorm(x, fin_g[...], fin_b[...]) if final_norm else x
        o_ref[...] = y.reshape(bt, S, D).astype(o_ref.dtype)


# ---------------------------------------------------------------------------
# pallas_call wrappers
# ---------------------------------------------------------------------------
def _layer_spec(a, single_buffer=False):
    nd = a.ndim
    idx = lambda b, l, _n=nd: (l,) + (0,) * (_n - 1)
    if single_buffer:
        # v7x (64 MiB VMEM) fallback: keep the big FFN weights single-buffered instead of
        # letting the whole double-buffered layer block blow past physical VMEM.
        return pl.BlockSpec((1,) + a.shape[1:], idx, pipeline_mode=pl.Buffered(1))
    return pl.BlockSpec((1,) + a.shape[1:], idx)


def _const_spec(a):
    nd = a.ndim
    return pl.BlockSpec(a.shape, lambda b, l, _n=nd: (0,) * _n)


def _io_spec(bt, S, D):
    return pl.BlockSpec((bt, S, D), lambda b, l: (b, 0, 0))


def _vmem_capacity_bytes():
    try:
        cap = getattr(pltpu.get_tpu_info(), "vmem_capacity_bytes", None)
        if cap:
            return int(cap)
    except Exception:
        pass
    return 128 << 20        # v5e / v6e physical VMEM


def _pick_batch_block(B, S, max_rows=1024):
    # Largest divisor of B keeping bt*S bounded (activation scratch + transients in VMEM).
    # NOTE: on v7x (2 TCs) it can be preferable to keep B//bt >= 2 so the "parallel"
    # batch axis feeds both cores; on 1-TC chips one full-batch block minimizes weight DMA.
    for cand in range(B, 0, -1):
        if B % cand == 0 and cand * S <= max(max_rows, S):
            return cand
    return 1


def _vmem_limit_bytes(weight_block_bytes, fixed_bytes):
    need = 2 * weight_block_bytes + fixed_bytes + (4 << 20)
    cap = int(_vmem_capacity_bytes() * 0.85)        # ~15% headroom, no artificial 64 MiB clamp
    return int(min(max(need, 32 << 20), cap))


def run_encoder_stack(x, p, *, heads, cdt=MATMUL_DTYPE, final_norm=True, batch_block=None):
    B, S, D = x.shape
    N = p["wqkv"].shape[0]
    F = p["w1"].shape[-1]
    H = heads
    bt = batch_block or _pick_batch_block(B, S)
    assert B % bt == 0
    M = bt * S

    layer_names = ("ln1_g", "ln1_b", "wqkv", "qb_w", "wo_t", "bo",
                   "ln2_g", "ln2_b", "w1", "b1", "w2", "b2")
    layer_args = tuple(p[k] for k in layer_names)
    const_args = (p["fin_g"], p["fin_b"])

    layer_bytes = sum(int(a.nbytes) for a in layer_args) // N
    io_bytes = 2 * 2 * M * D * x.dtype.itemsize                     # in + out, double-buffered
    trans_bytes = 4 * (5 * M * D + M * F + bt * H * S * S + H * M)  # f32 transients (estimate)
    fixed_bytes = io_bytes + M * D * 4 + trans_bytes

    cap = _vmem_capacity_bytes()
    sb_names = {"w1", "w2"} if (2 * layer_bytes + fixed_bytes) > int(0.8 * cap) else set()
    # TODO(synk): if even single-buffered FFN weights do not fit (very large D*F on v7x),
    # tile W1/W2 along F with an extra inner "arbitrary" grid axis.

    in_specs = ([_io_spec(bt, S, D)]
                + [_layer_spec(a, single_buffer=(n in sb_names))
                   for n, a in zip(layer_names, layer_args)]
                + [_const_spec(a) for a in const_args])

    flops_layer = (2 * M * 3 * D * D + bt * (4 * S * S * D + 2 * S * D * D) + 4 * M * D * F)
    cost = pl.CostEstimate(
        flops=int((B // bt) * N * flops_layer),
        transcendentals=int(B * N * H * S * S),
        bytes_accessed=int((B // bt) * N * layer_bytes + 2 * B * S * D * x.dtype.itemsize),
    )

    kernel = partial(encoder_stack_kernel, heads=heads, cdt=cdt, final_norm=final_norm)
    return pl.pallas_call(
        kernel,
        out_shape=jax.ShapeDtypeStruct((B, S, D), x.dtype),
        grid=(B // bt, N),
        in_specs=in_specs,
        out_specs=_io_spec(bt, S, D),
        scratch_shapes=[pltpu.VMEM((M, D), jnp.float32)],
        compiler_params=pltpu.CompilerParams(
            dimension_semantics=("parallel", "arbitrary"),
            vmem_limit_bytes=_vmem_limit_bytes(layer_bytes, fixed_bytes)),
        cost_estimate=cost,
    )(x, *layer_args, *const_args)


def run_decoder_stack(x, mem, p, *, heads, cdt=MATMUL_DTYPE, final_norm=True, batch_block=None):
    B, S, D = x.shape
    _, S_src, _ = mem.shape
    N = p["sa_wqkv"].shape[0]
    F = p["w1"].shape[-1]
    H = heads
    bt = batch_block or _pick_batch_block(B, S)
    assert B % bt == 0
    M, M_src = bt * S, bt * S_src

    mem = mem.astype(cdt)     # encoder output only feeds bf16 MXU matmuls: halve its DMA/VMEM

    layer_names = ("sa_ln_g", "sa_ln_b", "sa_wqkv", "sa_qb_w", "sa_wo_t", "sa_bo",
                   "ca_ln_g", "ca_ln_b", "ca_wq", "ca_qb_w", "ca_wkv", "ca_wo_t", "ca_bo",
                   "ff_ln_g", "ff_ln_b", "w1", "b1", "w2", "b2")
    layer_args = tuple(p[k] for k in layer_names)
    const_args = (p["fin_g"], p["fin_b"])

    layer_bytes = sum(int(a.nbytes) for a in layer_args) // N
    io_bytes = 2 * (2 * M * D * x.dtype.itemsize + M_src * D * mem.dtype.itemsize)
    trans_bytes = 4 * (7 * M * D + 2 * M_src * D + M * F
                       + bt * H * S * (S + S_src) + H * (M + M_src))
    fixed_bytes = io_bytes + M * D * 4 + trans_bytes

    cap = _vmem_capacity_bytes()
    sb_names = {"w1", "w2"} if (2 * layer_bytes + fixed_bytes) > int(0.8 * cap) else set()

    in_specs = ([_io_spec(bt, S, D),
                 pl.BlockSpec((bt, S_src, D), lambda b, l: (b, 0, 0))]
                + [_layer_spec(a, single_buffer=(n in sb_names))
                   for n, a in zip(layer_names, layer_args)]
                + [_const_spec(a) for a in const_args])

    flops_layer = (2 * M * 3 * D * D + bt * (4 * S * S * D + 2 * S * D * D)
                   + 2 * M * D * D + 2 * M_src * 2 * D * D
                   + bt * (4 * S * S_src * D + 2 * S * D * D)
                   + 4 * M * D * F)
    cost = pl.CostEstimate(
        flops=int((B // bt) * N * flops_layer),
        transcendentals=int(B * N * H * S * (S + S_src)),
        bytes_accessed=int((B // bt) * N * layer_bytes
                           + B * (2 * S * D * x.dtype.itemsize + S_src * D * mem.dtype.itemsize)),
    )

    kernel = partial(decoder_stack_kernel, heads=heads, cdt=cdt, final_norm=final_norm)
    return pl.pallas_call(
        kernel,
        out_shape=jax.ShapeDtypeStruct((B, S, D), x.dtype),
        grid=(B // bt, N),
        in_specs=in_specs,
        out_specs=_io_spec(bt, S, D),
        scratch_shapes=[pltpu.VMEM((M, D), jnp.float32)],
        compiler_params=pltpu.CompilerParams(
            dimension_semantics=("parallel", "arbitrary"),
            vmem_limit_bytes=_vmem_limit_bytes(layer_bytes, fixed_bytes)),
        cost_estimate=cost,
    )(x, mem, *layer_args, *const_args)


# ---------------------------------------------------------------------------
# parameter construction: nn.Linear-style weights, packed offline for the kernels
#   * Q weight rows pre-scaled by 1/sqrt(dh)
#   * Q bias folded into qb_w[h, :] = (bq_h / sqrt(dh)) @ Wk_h   (exact)
#   * K bias dropped (softmax row-shift invariance, exact)
#   * V bias folded into the output bias: bo_eff = bo + Wo @ bv  (softmax rows sum to 1)
#   * all remaining biases stored lane-dense as (N, 1, Dout)
# ---------------------------------------------------------------------------
def _pack_self_attention(wq, bq, wk, bk, wv, bv, wo, bo, heads, w_dtype):
    del bk                                   # exactly a no-op for the attention output
    N, D, _ = wq.shape
    dh = D // heads
    scale = 1.0 / math.sqrt(dh)
    wqkv = jnp.concatenate([wq * scale, wk, wv], axis=1)                         # (N, 3D, D)
    qb_w = jnp.einsum('nhd,nhde->nhe', (bq * scale).reshape(N, heads, dh),
                      wk.reshape(N, heads, dh, D))                               # (N, H, D)
    bo_eff = bo + jnp.einsum('ned,nd->ne', wo, bv)                               # (N, D)
    return (wqkv.astype(w_dtype), qb_w.astype(w_dtype),
            jnp.swapaxes(wo, 1, 2).astype(w_dtype),                              # (N, Din, Dout)
            bo_eff.reshape(N, 1, D).astype(jnp.float32))


def init_encoder_params(key, n_layers, d_model, d_ff, heads, w_dtype=MATMUL_DTYPE):
    N, D, F = n_layers, d_model, d_ff
    ks = jax.random.split(key, 12)
    sd, sf = 1.0 / math.sqrt(D), 1.0 / math.sqrt(F)
    wq = jax.random.normal(ks[0], (N, D, D), jnp.float32) * sd      # PyTorch (out, in)
    wk = jax.random.normal(ks[1], (N, D, D), jnp.float32) * sd
    wv = jax.random.normal(ks[2], (N, D, D), jnp.float32) * sd
    wo = jax.random.normal(ks[3], (N, D, D), jnp.float32) * sd
    bq = jax.random.normal(ks[4], (N, D), jnp.float32) * 0.02
    bk = jax.random.normal(ks[5], (N, D), jnp.float32) * 0.02
    bv = jax.random.normal(ks[6], (N, D), jnp.float32) * 0.02
    bo = jax.random.normal(ks[7], (N, D), jnp.float32) * 0.02
    w1 = jax.random.normal(ks[8], (N, F, D), jnp.float32) * sd      # PyTorch (out, in)
    b1 = jax.random.normal(ks[9], (N, F), jnp.float32) * 0.02
    w2 = jax.random.normal(ks[10], (N, D, F), jnp.float32) * sf
    b2 = jax.random.normal(ks[11], (N, D), jnp.float32) * 0.02

    wqkv, qb_w, wo_t, bo_eff = _pack_self_attention(wq, bq, wk, bk, wv, bv, wo, bo,
                                                    heads, w_dtype)
    return {
        "ln1_g": jnp.ones((N, 1, D), jnp.float32),
        "ln1_b": jnp.zeros((N, 1, D), jnp.float32),
        "wqkv": wqkv, "qb_w": qb_w, "wo_t": wo_t, "bo": bo_eff,
        "ln2_g": jnp.ones((N, 1, D), jnp.float32),
        "ln2_b": jnp.zeros((N, 1, D), jnp.float32),
        "w1": jnp.swapaxes(w1, 1, 2).astype(w_dtype),               # (N, D, F)
        "b1": b1.reshape(N, 1, F),
        "w2": jnp.swapaxes(w2, 1, 2).astype(w_dtype),               # (N, F, D)
        "b2": b2.reshape(N, 1, D),
        "fin_g": jnp.ones((1, D), jnp.float32),
        "fin_b": jnp.zeros((1, D), jnp.float32),
    }


def init_decoder_params(key, n_layers, d_model, d_ff, heads, w_dtype=MATMUL_DTYPE):
    N, D, F = n_layers, d_model, d_ff
    dh = D // heads
    ks = jax.random.split(key, 20)
    sd, sf = 1.0 / math.sqrt(D), 1.0 / math.sqrt(F)

    def lin(i, shape, scale):
        return jax.random.normal(ks[i], shape, jnp.float32) * scale

    # self-attention
    sa_wqkv, sa_qb_w, sa_wo_t, sa_bo = _pack_self_attention(
        lin(0, (N, D, D), sd), lin(4, (N, D), 0.02),
        lin(1, (N, D, D), sd), lin(5, (N, D), 0.02),
        lin(2, (N, D, D), sd), lin(6, (N, D), 0.02),
        lin(3, (N, D, D), sd), lin(7, (N, D), 0.02), heads, w_dtype)

    # cross-attention (q from the decoder stream, k/v from the encoder output)
    ca_wq, ca_bq = lin(8, (N, D, D), sd), lin(12, (N, D), 0.02)
    ca_wk, _ca_bk = lin(9, (N, D, D), sd), lin(13, (N, D), 0.02)   # K bias dropped (exact)
    ca_wv, ca_bv = lin(10, (N, D, D), sd), lin(14, (N, D), 0.02)
    ca_wo, ca_bo = lin(11, (N, D, D), sd), lin(15, (N, D), 0.02)
    scale = 1.0 / math.sqrt(dh)
    ca_qb_w = jnp.einsum('nhd,nhde->nhe', (ca_bq * scale).reshape(N, heads, dh),
                         ca_wk.reshape(N, heads, dh, D))
    ca_bo_eff = ca_bo + jnp.einsum('ned,nd->ne', ca_wo, ca_bv)

    w1 = lin(16, (N, F, D), sd)
    b1 = lin(17, (N, F), 0.02)
    w2 = lin(18, (N, D, F), sf)
    b2 = lin(19, (N, D), 0.02)

    return {
        "sa_ln_g": jnp.ones((N, 1, D), jnp.float32),
        "sa_ln_b": jnp.zeros((N, 1, D), jnp.float32),
        "sa_wqkv": sa_wqkv, "sa_qb_w": sa_qb_w, "sa_wo_t": sa_wo_t, "sa_bo": sa_bo,
        "ca_ln_g": jnp.ones((N, 1, D), jnp.float32),
        "ca_ln_b": jnp.zeros((N, 1, D), jnp.float32),
        "ca_wq": (ca_wq * scale).astype(w_dtype),
        "ca_qb_w": ca_qb_w.astype(w_dtype),
        "ca_wkv": jnp.concatenate([ca_wk, ca_wv], axis=1).astype(w_dtype),     # (N, 2D, D)
        "ca_wo_t": jnp.swapaxes(ca_wo, 1, 2).astype(w_dtype),
        "ca_bo": ca_bo_eff.reshape(N, 1, D),
        "ff_ln_g": jnp.ones((N, 1, D), jnp.float32),
        "ff_ln_b": jnp.zeros((N, 1, D), jnp.float32),
        "w1": jnp.swapaxes(w1, 1, 2).astype(w_dtype),
        "b1": b1.reshape(N, 1, F),
        "w2": jnp.swapaxes(w2, 1, 2).astype(w_dtype),
        "b2": b2.reshape(N, 1, D),
        "fin_g": jnp.ones((1, D), jnp.float32),
        "fin_b": jnp.zeros((1, D), jnp.float32),
    }


def init_model_params(key, *, vocab, seq_len, d_model, n_layers, heads, d_ff):
    k_emb, k_trg_emb, k_pos, k_trg_pos, k_enc, k_dec = jax.random.split(key, 6)
    return {
        "emb": jax.random.normal(k_emb, (vocab, d_model), jnp.float32),
        "trg_emb": jax.random.normal(k_trg_emb, (vocab, d_model), jnp.float32),
        "emb_pos": jax.random.normal(k_pos, (seq_len, d_model), jnp.float32) * 0.1,
        "trg_emb_pos": jax.random.normal(k_trg_pos, (seq_len, d_model), jnp.float32) * 0.1,
        "encoder": init_encoder_params(k_enc, n_layers, d_model, d_ff, heads),
        "decoder": init_decoder_params(k_dec, n_layers, d_model, d_ff, heads),
    }


# ---------------------------------------------------------------------------
# full forward (mirrors OTembeddingTransformer.forward)
# ---------------------------------------------------------------------------
def ot_embedding_transformer_forward(inp, params, feature_len_map, *, heads,
                                     cdt=MATMUL_DTYPE, attention_layer_norm=True):
    f0 = feature_len_map[0]
    src_tok = inp[:, f0[0]:f0[1]].astype(jnp.int32)
    if feature_len_map[1] is not None:
        f1 = feature_len_map[1]
        trg_tok = inp[:, f1[0]:f1[1]].astype(jnp.int32)
    else:
        trg_tok = src_tok

    pos = jnp.arange(src_tok.shape[1], dtype=jnp.int32)
    # TODO(synk): embedding row-gathers are data-dependent; left to XLA (jnp.take) rather
    # than a manual-DMA Pallas gather, which adds no benefit at these sizes.
    emb_src = jnp.take(params["emb"], src_tok, axis=0) \
        + jnp.take(params["emb_pos"], pos, axis=0)[None]
    emb_trg = jnp.take(params["trg_emb"], trg_tok, axis=0) \
        + jnp.take(params["trg_emb_pos"], pos, axis=0)[None]
    # config.dropout / layer dropout: identity at inference.

    e_out = run_encoder_stack(emb_src, params["encoder"], heads=heads, cdt=cdt,
                              final_norm=attention_layer_norm)
    d_out = run_decoder_stack(emb_trg, e_out, params["decoder"], heads=heads, cdt=cdt,
                              final_norm=attention_layer_norm)

    # TODO(synk): attention_setting.add_seq_cnn / add_parallel_cnn CNN branches, the
    # extra_input_for_FF concat (feature_len_map[2]) and the OutputFeedForward head depend
    # on config modules whose source is not provided; the flattened decoder output (the
    # tensor that feeds `self.out`) is returned instead.
    return d_out.reshape(d_out.shape[0], -1)


if __name__ == "__main__":
    # Small shapes consistent with the module: src/trg token slices of length 8,
    # embedding_vec_dim == d_model == 32, N=2 layers, heads=4, d_ff=64, batch=2.
    B = 2
    SEQ = 8
    D_MODEL = 32
    N_LAYERS = 2
    HEADS = 4
    D_FF = 64
    VOCAB = 16
    feature_len_map = [(0, SEQ), (SEQ, 2 * SEQ), None]  # src tokens | trg tokens | no extra FF

    key = jax.random.PRNGKey(0)
    k_inp, k_par = jax.random.split(key)

    # Integer feature row: src tokens then trg tokens (the module slices + .long()).
    inp = jax.random.randint(k_inp, (B, 2 * SEQ), 0, VOCAB, dtype=jnp.int32)

    params = init_model_params(k_par, vocab=VOCAB, seq_len=SEQ, d_model=D_MODEL,
                               n_layers=N_LAYERS, heads=HEADS, d_ff=D_FF)

    fwd = jax.jit(lambda t: ot_embedding_transformer_forward(
        t, params, feature_len_map, heads=HEADS))
    out = fwd(inp)
    jax.block_until_ready(out)

    assert out.shape == (B, SEQ * D_MODEL), out.shape
    assert bool(jnp.all(jnp.isfinite(out)))
    print("KERNEL_OK")
</pallas_src>

<mosaic_0001>
module attributes {stable_mosaic.version = 11 : i64} {
  func.func @encoder_stack_kernel(%arg0: i32, %arg1: i32, %arg2: memref<2x8x32xf32, #tpu.memory_space<vmem>>, %arg3: memref<1x1x32xf32, #tpu.memory_space<vmem>>, %arg4: memref<1x1x32xf32, #tpu.memory_space<vmem>>, %arg5: memref<1x96x32xbf16, #tpu.memory_space<vmem>>, %arg6: memref<1x4x32xbf16, #tpu.memory_space<vmem>>, %arg7: memref<1x32x32xbf16, #tpu.memory_space<vmem>>, %arg8: memref<1x1x32xf32, #tpu.memory_space<vmem>>, %arg9: memref<1x1x32xf32, #tpu.memory_space<vmem>>, %arg10: memref<1x1x32xf32, #tpu.memory_space<vmem>>, %arg11: memref<1x32x64xbf16, #tpu.memory_space<vmem>>, %arg12: memref<1x1x64xf32, #tpu.memory_space<vmem>>, %arg13: memref<1x64x32xbf16, #tpu.memory_space<vmem>>, %arg14: memref<1x1x32xf32, #tpu.memory_space<vmem>>, %arg15: memref<1x32xf32, #tpu.memory_space<vmem>>, %arg16: memref<1x32xf32, #tpu.memory_space<vmem>>, %arg17: memref<2x8x32xf32, #tpu.memory_space<vmem>>, %arg18: memref<16x32xf32, #tpu.memory_space<vmem>>) attributes {dimension_semantics = [#tpu.dimension_semantics<parallel>, #tpu.dimension_semantics<arbitrary>], iteration_bounds = array<i64: 1, 2>, scalar_prefetch = 0 : i64, scratch_operands = 1 : i64, tpu.core_type = #tpu.core_type<tc>, window_params = [{transform_indices = @transform_0, window_bounds = array<i64: 2, 8, 32>}, {transform_indices = @transform_1, window_bounds = array<i64: 1, 1, 32>}, {transform_indices = @transform_2, window_bounds = array<i64: 1, 1, 32>}, {transform_indices = @transform_3, window_bounds = array<i64: 1, 96, 32>}, {transform_indices = @transform_4, window_bounds = array<i64: 1, 4, 32>}, {transform_indices = @transform_5, window_bounds = array<i64: 1, 32, 32>}, {transform_indices = @transform_6, window_bounds = array<i64: 1, 1, 32>}, {transform_indices = @transform_7, window_bounds = array<i64: 1, 1, 32>}, {transform_indices = @transform_8, window_bounds = array<i64: 1, 1, 32>}, {transform_indices = @transform_9, window_bounds = array<i64: 1, 32, 64>}, {transform_indices = @transform_10, window_bounds = array<i64: 1, 1, 64>}, {transform_indices = @transform_11, window_bounds = array<i64: 1, 64, 32>}, {transform_indices = @transform_12, window_bounds = array<i64: 1, 1, 32>}, {pipeline_mode = #tpu.pipeline_mode<synchronous>, transform_indices = @transform_13, window_bounds = array<i64: 1, 32>}, {pipeline_mode = #tpu.pipeline_mode<synchronous>, transform_indices = @transform_14, window_bounds = array<i64: 1, 32>}, {transform_indices = @transform_15, window_bounds = array<i64: 2, 8, 32>}]} {
    %c0_i32 = arith.constant 0 : i32
    %0 = arith.cmpi eq, %arg1, %c0_i32 : i32
    %1 = arith.extui %0 : i1 to i32
    %c0_i32_0 = arith.constant 0 : i32
    %2 = arith.cmpi ne, %1, %c0_i32_0 : i32
    scf.if %2 {
      %c0_65 = arith.constant 0 : index
      %c0_66 = arith.constant 0 : index
      %c0_67 = arith.constant 0 : index
      %145 = vector.load %arg2[%c0_65, %c0_66, %c0_67] : memref<2x8x32xf32, #tpu.memory_space<vmem>>, vector<2x8x32xf32>
      %146 = vector.shape_cast %145 : vector<2x8x32xf32> to vector<16x32xf32>
      %c0_68 = arith.constant 0 : index
      %c0_69 = arith.constant 0 : index
      %147 = vector.load %arg18[%c0_68, %c0_69] : memref<16x32xf32, #tpu.memory_space<vmem>>, vector<16x32xf32>
      tpu.vector_store %arg18[%c0_68, %c0_69], %146 {strides = array<i32>} : memref<16x32xf32, #tpu.memory_space<vmem>>, vector<16x32xf32>,
    } else {
    }
    %c0 = arith.constant 0 : index
    %c0_1 = arith.constant 0 : index
    %3 = vector.load %arg18[%c0, %c0_1] : memref<16x32xf32, #tpu.memory_space<vmem>>, vector<16x32xf32>
    %c0_2 = arith.constant 0 : index
    %c0_3 = arith.constant 0 : index
    %c0_4 = arith.constant 0 : index
    %4 = vector.load %arg3[%c0_2, %c0_3, %c0_4] : memref<1x1x32xf32, #tpu.memory_space<vmem>>, vector<1x1x32xf32>
    %5 = vector.shape_cast %4 : vector<1x1x32xf32> to vector<1x32xf32>
    %c0_5 = arith.constant 0 : index
    %c0_6 = arith.constant 0 : index
    %c0_7 = arith.constant 0 : index
    %6 = vector.load %arg4[%c0_5, %c0_6, %c0_7] : memref<1x1x32xf32, #tpu.memory_space<vmem>>, vector<1x1x32xf32>
    %7 = vector.shape_cast %6 : vector<1x1x32xf32> to vector<1x32xf32>
    %cst = arith.constant dense<0.000000e+00> : vector<16xf32>
    %8 = vector.multi_reduction <add>, %3, %cst [1] : vector<16x32xf32> to vector<16xf32>
    %9 = vector.shape_cast %8 : vector<16xf32> to vector<16x1xf32>
    %cst_8 = arith.constant 3.200000e+01 : f32
    %10 = vector.broadcast %cst_8 : f32 to vector<16x1xf32>
    %11 = arith.divf %9, %10 : vector<16x1xf32>
    %12 = vector.broadcast %11 : vector<16x1xf32> to vector<16x32xf32>
    %13 = arith.subf %3, %12 : vector<16x32xf32>
    %14 = arith.mulf %13, %13 : vector<16x32xf32>
    %cst_9 = arith.constant dense<0.000000e+00> : vector<16xf32>
    %15 = vector.multi_reduction <add>, %14, %cst_9 [1] : vector<16x32xf32> to vector<16xf32>
    %16 = vector.shape_cast %15 : vector<16xf32> to vector<16x1xf32>
    %cst_10 = arith.constant 3.200000e+01 : f32
    %17 = vector.broadcast %cst_10 : f32 to vector<16x1xf32>
    %18 = arith.divf %16, %17 : vector<16x1xf32>
    %cst_11 = arith.constant 9.99999974E-6 : f32
    %19 = vector.broadcast %cst_11 : f32 to vector<16x1xf32>
    %20 = arith.addf %18, %19 : vector<16x1xf32>
    %21 = math.rsqrt %20 : vector<16x1xf32>
    %22 = vector.broadcast %21 : vector<16x1xf32> to vector<16x32xf32>
    %23 = arith.mulf %13, %22 : vector<16x32xf32>
    %24 = vector.broadcast %5 : vector<1x32xf32> to vector<16x32xf32>
    %25 = arith.mulf %23, %24 : vector<16x32xf32>
    %26 = vector.broadcast %7 : vector<1x32xf32> to vector<16x32xf32>
    %27 = arith.addf %25, %26 : vector<16x32xf32>
    %28 = arith.truncf %27 : vector<16x32xf32> to vector<16x32xbf16>
    %c0_12 = arith.constant 0 : index
    %c0_13 = arith.constant 0 : index
    %c0_14 = arith.constant 0 : index
    %29 = vector.load %arg5[%c0_12, %c0_13, %c0_14] : memref<1x96x32xbf16, #tpu.memory_space<vmem>>, vector<1x96x32xbf16>
    %30 = vector.shape_cast %29 : vector<1x96x32xbf16> to vector<96x32xbf16>
    %cst_15 = arith.constant dense<0.000000e+00> : vector<96x16xf32>
    %31 = tpu.matmul %30, %28, %cst_15 {dimension_numbers = #tpu.dot_dimension_numbers<[1], [1], [0], [0], [0, 0, 1, 0], [], []>} : vector<96x32xbf16>, vector<16x32xbf16>, vector<96x16xf32> -> vector<96x16xf32>
    %c0_16 = arith.constant 0 : index
    %c0_17 = arith.constant 0 : index
    %c0_18 = arith.constant 0 : index
    %32 = vector.load %arg6[%c0_16, %c0_17, %c0_18] : memref<1x4x32xbf16, #tpu.memory_space<vmem>>, vector<1x4x32xbf16>
    %33 = vector.shape_cast %32 : vector<1x4x32xbf16> to vector<4x32xbf16>
    %cst_19 = arith.constant dense<0.000000e+00> : vector<4x16xf32>
    %34 = tpu.matmul %33, %28, %cst_19 {dimension_numbers = #tpu.dot_dimension_numbers<[1], [1], [0], [0], [0, 0, 1, 0], [], []>} : vector<4x32xbf16>, vector<16x32xbf16>, vector<4x16xf32> -> vector<4x16xf32>
    %35 = vector.extract_strided_slice %31 {offsets = [0, 0], sizes = [32, 16], strides = [1, 1]} : vector<96x16xf32> to vector<32x16xf32>
    %36 = vector.extract_strided_slice %31 {offsets = [32, 0], sizes = [32, 16], strides = [1, 1]} : vector<96x16xf32> to vector<32x16xf32>
    %37 = vector.extract_strided_slice %31 {offsets = [64, 0], sizes = [32, 16], strides = [1, 1]} : vector<96x16xf32> to vector<32x16xf32>
    %c0_20 = arith.constant 0 : index
    %c0_21 = arith.constant 0 : index
    %c0_22 = arith.constant 0 : index
    %38 = vector.load %arg7[%c0_20, %c0_21, %c0_22] : memref<1x32x32xbf16, #tpu.memory_space<vmem>>, vector<1x32x32xbf16>
    %39 = vector.shape_cast %38 : vector<1x32x32xbf16> to vector<32x32xbf16>
    %c0_23 = arith.constant 0 : index
    %c0_24 = arith.constant 0 : index
    %c0_25 = arith.constant 0 : index
    %40 = vector.load %arg8[%c0_23, %c0_24, %c0_25] : memref<1x1x32xf32, #tpu.memory_space<vmem>>, vector<1x1x32xf32>
    %41 = vector.shape_cast %40 : vector<1x1x32xf32> to vector<1x32xf32>
    %42 = vector.shape_cast %35 : vector<32x16xf32> to vector<4x8x16xf32>
    %43 = arith.truncf %42 : vector<4x8x16xf32> to vector<4x8x16xbf16>
    %44 = vector.shape_cast %36 : vector<32x16xf32> to vector<4x8x16xf32>
    %45 = arith.truncf %44 : vector<4x8x16xf32> to vector<4x8x16xbf16>
    %46 = vector.shape_cast %37 : vector<32x16xf32> to vector<4x8x16xf32>
    %47 = arith.truncf %46 : vector<4x8x16xf32> to vector<4x8x16xbf16>
    %48 = vector.extract_strided_slice %43 {offsets = [0, 0, 0], sizes = [4, 8, 8], strides = [1, 1, 1]} : vector<4x8x16xbf16> to vector<4x8x8xbf16>
    %49 = vector.extract_strided_slice %45 {offsets = [0, 0, 0], sizes = [4, 8, 8], strides = [1, 1, 1]} : vector<4x8x16xbf16> to vector<4x8x8xbf16>
    %50 = vector.extract_strided_slice %47 {offsets = [0, 0, 0], sizes = [4, 8, 8], strides = [1, 1, 1]} : vector<4x8x16xbf16> to vector<4x8x8xbf16>
    %cst_26 = arith.constant dense<0.000000e+00> : vector<4x8x8xf32>
    %51 = tpu.matmul %48, %49, %cst_26 {dimension_numbers = #tpu.dot_dimension_numbers<[1], [1], [2], [2], [0, 0, 0, 2, 1, 2], [0], [0]>} : vector<4x8x8xbf16>, vector<4x8x8xbf16>, vector<4x8x8xf32> -> vector<4x8x8xf32>
    %52 = vector.extract_strided_slice %34 {offsets = [0, 0], sizes = [4, 8], strides = [1, 1]} : vector<4x16xf32> to vector<4x8xf32>
    %53 = vector.shape_cast %52 : vector<4x8xf32> to vector<4x1x8xf32>
    %54 = vector.broadcast %53 : vector<4x1x8xf32> to vector<4x8x8xf32>
    %55 = arith.addf %51, %54 : vector<4x8x8xf32>
    %cst_27 = arith.constant dense<0xFF800000> : vector<4x8xf32>
    %56 = vector.multi_reduction <maximumf>, %55, %cst_27 [2] : vector<4x8x8xf32> to vector<4x8xf32>
    %57 = vector.shape_cast %56 : vector<4x8xf32> to vector<4x8x1xf32>
    %58 = vector.broadcast %57 : vector<4x8x1xf32> to vector<4x8x8xf32>
    %59 = arith.subf %55, %58 : vector<4x8x8xf32>
    %60 = math.exp %59 : vector<4x8x8xf32>
    %cst_28 = arith.constant dense<0.000000e+00> : vector<4x8xf32>
    %61 = vector.multi_reduction <add>, %60, %cst_28 [2] : vector<4x8x8xf32> to vector<4x8xf32>
    %62 = vector.shape_cast %61 : vector<4x8xf32> to vector<4x8x1xf32>
    %63 = tpu.reciprocal %62 {approx = true} : vector<4x8x1xf32> -> vector<4x8x1xf32>
    %64 = vector.broadcast %63 : vector<4x8x1xf32> to vector<4x8x8xf32>
    %65 = arith.mulf %60, %64 : vector<4x8x8xf32>
    %66 = arith.truncf %65 : vector<4x8x8xf32> to vector<4x8x8xbf16>
    %cst_29 = arith.constant dense<0.000000e+00> : vector<4x8x8xf32>
    %67 = tpu.matmul %50, %66, %cst_29 {dimension_numbers = #tpu.dot_dimension_numbers<[2], [2], [1], [1], [0, 0, 0, 1, 1, 1], [0], [0]>} : vector<4x8x8xbf16>, vector<4x8x8xbf16>, vector<4x8x8xf32> -> vector<4x8x8xf32>
    %68 = vector.shape_cast %67 : vector<4x8x8xf32> to vector<32x8xf32>
    %69 = arith.truncf %68 : vector<32x8xf32> to vector<32x8xbf16>
    %cst_30 = arith.constant dense<0.000000e+00> : vector<8x32xf32>
    %70 = tpu.matmul %69, %39, %cst_30 {dimension_numbers = #tpu.dot_dimension_numbers<[0], [0], [1], [1], [0, 1, 1, 1], [], []>} : vector<32x8xbf16>, vector<32x32xbf16>, vector<8x32xf32> -> vector<8x32xf32>
    %71 = vector.extract_strided_slice %43 {offsets = [0, 0, 8], sizes = [4, 8, 8], strides = [1, 1, 1]} : vector<4x8x16xbf16> to vector<4x8x8xbf16>
    %72 = vector.extract_strided_slice %45 {offsets = [0, 0, 8], sizes = [4, 8, 8], strides = [1, 1, 1]} : vector<4x8x16xbf16> to vector<4x8x8xbf16>
    %73 = vector.extract_strided_slice %47 {offsets = [0, 0, 8], sizes = [4, 8, 8], strides = [1, 1, 1]} : vector<4x8x16xbf16> to vector<4x8x8xbf16>
    %cst_31 = arith.constant dense<0.000000e+00> : vector<4x8x8xf32>
    %74 = tpu.matmul %71, %72, %cst_31 {dimension_numbers = #tpu.dot_dimension_numbers<[1], [1], [2], [2], [0, 0, 0, 2, 1, 2], [0], [0]>} : vector<4x8x8xbf16>, vector<4x8x8xbf16>, vector<4x8x8xf32> -> vector<4x8x8xf32>
    %75 = vector.extract_strided_slice %34 {offsets = [0, 8], sizes = [4, 8], strides = [1, 1]} : vector<4x16xf32> to vector<4x8xf32>
    %76 = vector.shape_cast %75 : vector<4x8xf32> to vector<4x1x8xf32>
    %77 = vector.broadcast %76 : vector<4x1x8xf32> to vector<4x8x8xf32>
    %78 = arith.addf %74, %77 : vector<4x8x8xf32>
    %cst_32 = arith.constant dense<0xFF800000> : vector<4x8xf32>
    %79 = vector.multi_reduction <maximumf>, %78, %cst_32 [2] : vector<4x8x8xf32> to vector<4x8xf32>
    %80 = vector.shape_cast %79 : vector<4x8xf32> to vector<4x8x1xf32>
    %81 = vector.broadcast %80 : vector<4x8x1xf32> to vector<4x8x8xf32>
    %82 = arith.subf %78, %81 : vector<4x8x8xf32>
    %83 = math.exp %82 : vector<4x8x8xf32>
    %cst_33 = arith.constant dense<0.000000e+00> : vector<4x8xf32>
    %84 = vector.multi_reduction <add>, %83, %cst_33 [2] : vector<4x8x8xf32> to vector<4x8xf32>
    %85 = vector.shape_cast %84 : vector<4x8xf32> to vector<4x8x1xf32>
    %86 = tpu.reciprocal %85 {approx = true} : vector<4x8x1xf32> -> vector<4x8x1xf32>
    %87 = vector.broadcast %86 : vector<4x8x1xf32> to vector<4x8x8xf32>
    %88 = arith.mulf %83, %87 : vector<4x8x8xf32>
    %89 = arith.truncf %88 : vector<4x8x8xf32> to vector<4x8x8xbf16>
    %cst_34 = arith.constant dense<0.000000e+00> : vector<4x8x8xf32>
    %90 = tpu.matmul %73, %89, %cst_34 {dimension_numbers = #tpu.dot_dimension_numbers<[2], [2], [1], [1], [0, 0, 0, 1, 1, 1], [0], [0]>} : vector<4x8x8xbf16>, vector<4x8x8xbf16>, vector<4x8x8xf32> -> vector<4x8x8xf32>
    %91 = vector.shape_cast %90 : vector<4x8x8xf32> to vector<32x8xf32>
    %92 = arith.truncf %91 : vector<32x8xf32> to vector<32x8xbf16>
    %cst_35 = arith.constant dense<0.000000e+00> : vector<8x32xf32>
    %93 = tpu.matmul %92, %39, %cst_35 {dimension_numbers = #tpu.dot_dimension_numbers<[0], [0], [1], [1], [0, 1, 1, 1], [], []>} : vector<32x8xbf16>, vector<32x32xbf16>, vector<8x32xf32> -> vector<8x32xf32>
    %94 = tpu.concatenate %70, %93 in 0 : vector<8x32xf32>, vector<8x32xf32> -> vector<16x32xf32>
    %95 = vector.broadcast %41 : vector<1x32xf32> to vector<16x32xf32>
    %96 = arith.addf %94, %95 : vector<16x32xf32>
    %97 = arith.addf %3, %96 : vector<16x32xf32>
    %c0_36 = arith.constant 0 : index
    %c0_37 = arith.constant 0 : index
    %c0_38 = arith.constant 0 : index
    %98 = vector.load %arg9[%c0_36, %c0_37, %c0_38] : memref<1x1x32xf32, #tpu.memory_space<vmem>>, vector<1x1x32xf32>
    %99 = vector.shape_cast %98 : vector<1x1x32xf32> to vector<1x32xf32>
    %c0_39 = arith.constant 0 : index
    %c0_40 = arith.constant 0 : index
    %c0_41 = arith.constant 0 : index
    %100 = vector.load %arg10[%c0_39, %c0_40, %c0_41] : memref<1x1x32xf32, #tpu.memory_space<vmem>>, vector<1x1x32xf32>
    %101 = vector.shape_cast %100 : vector<1x1x32xf32> to vector<1x32xf32>
    %cst_42 = arith.constant dense<0.000000e+00> : vector<16xf32>
    %102 = vector.multi_reduction <add>, %97, %cst_42 [1] : vector<16x32xf32> to vector<16xf32>
    %103 = vector.shape_cast %102 : vector<16xf32> to vector<16x1xf32>
    %cst_43 = arith.constant 3.200000e+01 : f32
    %104 = vector.broadcast %cst_43 : f32 to vector<16x1xf32>
    %105 = arith.divf %103, %104 : vector<16x1xf32>
    %106 = vector.broadcast %105 : vector<16x1xf32> to vector<16x32xf32>
    %107 = arith.subf %97, %106 : vector<16x32xf32>
    %108 = arith.mulf %107, %107 : vector<16x32xf32>
    %cst_44 = arith.constant dense<0.000000e+00> : vector<16xf32>
    %109 = vector.multi_reduction <add>, %108, %cst_44 [1] : vector<16x32xf32> to vector<16xf32>
    %110 = vector.shape_cast %109 : vector<16xf32> to vector<16x1xf32>
    %cst_45 = arith.constant 3.200000e+01 : f32
    %111 = vector.broadcast %cst_45 : f32 to vector<16x1xf32>
    %112 = arith.divf %110, %111 : vector<16x1xf32>
    %cst_46 = arith.constant 9.99999974E-6 : f32
    %113 = vector.broadcast %cst_46 : f32 to vector<16x1xf32>
    %114 = arith.addf %112, %113 : vector<16x1xf32>
    %115 = math.rsqrt %114 : vector<16x1xf32>
    %116 = vector.broadcast %115 : vector<16x1xf32> to vector<16x32xf32>
    %117 = arith.mulf %107, %116 : vector<16x32xf32>
    %118 = vector.broadcast %99 : vector<1x32xf32> to vector<16x32xf32>
    %119 = arith.mulf %117, %118 : vector<16x32xf32>
    %120 = vector.broadcast %101 : vector<1x32xf32> to vector<16x32xf32>
    %121 = arith.addf %119, %120 : vector<16x32xf32>
    %122 = arith.truncf %121 : vector<16x32xf32> to vector<16x32xbf16>
    %c0_47 = arith.constant 0 : index
    %c0_48 = arith.constant 0 : index
    %c0_49 = arith.constant 0 : index
    %123 = vector.load %arg11[%c0_47, %c0_48, %c0_49] : memref<1x32x64xbf16, #tpu.memory_space<vmem>>, vector<1x32x64xbf16>
    %124 = vector.shape_cast %123 : vector<1x32x64xbf16> to vector<32x64xbf16>
    %cst_50 = arith.constant dense<0.000000e+00> : vector<16x64xf32>
    %125 = tpu.matmul %122, %124, %cst_50 {dimension_numbers = #tpu.dot_dimension_numbers<[1], [0], [0], [1], [0, 0, 1, 1], [], []>} : vector<16x32xbf16>, vector<32x64xbf16>, vector<16x64xf32> -> vector<16x64xf32>
    %c0_51 = arith.constant 0 : index
    %c0_52 = arith.constant 0 : index
    %c0_53 = arith.constant 0 : index
    %126 = vector.load %arg12[%c0_51, %c0_52, %c0_53] : memref<1x1x64xf32, #tpu.memory_space<vmem>>, vector<1x1x64xf32>
    %127 = vector.shape_cast %126 : vector<1x1x64xf32> to vector<1x64xf32>
    %128 = vector.broadcast %127 : vector<1x64xf32> to vector<16x64xf32>
    %129 = arith.addf %125, %128 : vector<16x64xf32>
    %cst_54 = arith.constant 0.000000e+00 : f32
    %130 = vector.broadcast %cst_54 : f32 to vector<16x64xf32>
    %131 = arith.maximumf %129, %130 : vector<16x64xf32>
    %132 = arith.truncf %131 : vector<16x64xf32> to vector<16x64xbf16>
    %c0_55 = arith.constant 0 : index
    %c0_56 = arith.constant 0 : index
    %c0_57 = arith.constant 0 : index
    %133 = vector.load %arg13[%c0_55, %c0_56, %c0_57] : memref<1x64x32xbf16, #tpu.memory_space<vmem>>, vector<1x64x32xbf16>
    %134 = vector.shape_cast %133 : vector<1x64x32xbf16> to vector<64x32xbf16>
    %cst_58 = arith.constant dense<0.000000e+00> : vector<16x32xf32>
    %135 = tpu.matmul %132, %134, %cst_58 {dimension_numbers = #tpu.dot_dimension_numbers<[1], [0], [0], [1], [0, 0, 1, 1], [], []>} : vector<16x64xbf16>, vector<64x32xbf16>, vector<16x32xf32> -> vector<16x32xf32>
    %c0_59 = arith.constant 0 : index
    %c0_60 = arith.constant 0 : index
    %c0_61 = arith.constant 0 : index
    %136 = vector.load %arg14[%c0_59, %c0_60, %c0_61] : memref<1x1x32xf32, #tpu.memory_space<vmem>>, vector<1x1x32xf32>
    %137 = vector.shape_cast %136 : vector<1x1x32xf32> to vector<1x32xf32>
    %138 = vector.broadcast %137 : vector<1x32xf32> to vector<16x32xf32>
    %139 = arith.addf %135, %138 : vector<16x32xf32>
    %140 = arith.addf %97, %139 : vector<16x32xf32>
    %c0_62 = arith.constant 0 : index
    %c0_63 = arith.constant 0 : index
    %141 = vector.load %arg18[%c0_62, %c0_63] : memref<16x32xf32, #tpu.memory_space<vmem>>, vector<16x32xf32>
    tpu.vector_store %arg18[%c0_62, %c0_63], %140 {strides = array<i32>} : memref<16x32xf32, #tpu.memory_space<vmem>>, vector<16x32xf32>,
    %c1_i32 = arith.constant 1 : i32
    %142 = arith.cmpi eq, %arg1, %c1_i32 : i32
    %143 = arith.extui %142 : i1 to i32
    %c0_i32_64 = arith.constant 0 : i32
    %144 = arith.cmpi ne, %143, %c0_i32_64 : i32
    scf.if %144 {
      %c0_65 = arith.constant 0 : index
      %c0_66 = arith.constant 0 : index
      %145 = vector.load %arg15[%c0_65, %c0_66] : memref<1x32xf32, #tpu.memory_space<vmem>>, vector<1x32xf32>
      %c0_67 = arith.constant 0 : index
      %c0_68 = arith.constant 0 : index
      %146 = vector.load %arg16[%c0_67, %c0_68] : memref<1x32xf32, #tpu.memory_space<vmem>>, vector<1x32xf32>
      %cst_69 = arith.constant dense<0.000000e+00> : vector<16xf32>
      %147 = vector.multi_reduction <add>, %140, %cst_69 [1] : vector<16x32xf32> to vector<16xf32>
      %148 = vector.shape_cast %147 : vector<16xf32> to vector<16x1xf32>
      %cst_70 = arith.constant 3.200000e+01 : f32
      %149 = vector.broadcast %cst_70 : f32 to vector<16x1xf32>
      %150 = arith.divf %148, %149 : vector<16x1xf32>
      %151 = vector.broadcast %150 : vector<16x1xf32> to vector<16x32xf32>
      %152 = arith.subf %140, %151 : vector<16x32xf32>
      %153 = arith.mulf %152, %152 : vector<16x32xf32>
      %cst_71 = arith.constant dense<0.000000e+00> : vector<16xf32>
      %154 = vector.multi_reduction <add>, %153, %cst_71 [1] : vector<16x32xf32> to vector<16xf32>
      %155 = vector.shape_cast %154 : vector<16xf32> to vector<16x1xf32>
      %cst_72 = arith.constant 3.200000e+01 : f32
      %156 = vector.broadcast %cst_72 : f32 to vector<16x1xf32>
      %157 = arith.divf %155, %156 : vector<16x1xf32>
      %cst_73 = arith.constant 9.99999974E-6 : f32
      %158 = vector.broadcast %cst_73 : f32 to vector<16x1xf32>
      %159 = arith.addf %157, %158 : vector<16x1xf32>
      %160 = math.rsqrt %159 : vector<16x1xf32>
      %161 = vector.broadcast %160 : vector<16x1xf32> to vector<16x32xf32>
      %162 = arith.mulf %152, %161 : vector<16x32xf32>
      %163 = vector.broadcast %145 : vector<1x32xf32> to vector<16x32xf32>
      %164 = arith.mulf %162, %163 : vector<16x32xf32>
      %165 = vector.broadcast %146 : vector<1x32xf32> to vector<16x32xf32>
      %166 = arith.addf %164, %165 : vector<16x32xf32>
      %167 = vector.shape_cast %166 : vector<16x32xf32> to vector<2x8x32xf32>
      %c0_74 = arith.constant 0 : index
      %c0_75 = arith.constant 0 : index
      %c0_76 = arith.constant 0 : index
      %168 = vector.load %arg17[%c0_74, %c0_75, %c0_76] : memref<2x8x32xf32, #tpu.memory_space<vmem>>, vector<2x8x32xf32>
      tpu.vector_store %arg17[%c0_74, %c0_75, %c0_76], %167 {strides = array<i32>} : memref<2x8x32xf32, #tpu.memory_space<vmem>>, vector<2x8x32xf32>,
    } else {
    }
    return
  }
  func.func @transform_0(%arg0: i32, %arg1: i32) -> (i32, i32, i32) {
    %c0_i32 = arith.constant 0 : i32
    %c0_i32_0 = arith.constant 0 : i32
    %c0_i32_1 = arith.constant 0 : i32
    return %arg0, %c0_i32, %c0_i32_0 : i32, i32, i32
  }
  func.func @transform_1(%arg0: i32, %arg1: i32) -> (i32, i32, i32) {
    %c0_i32 = arith.constant 0 : i32
    %c0_i32_0 = arith.constant 0 : i32
    %c0_i32_1 = arith.constant 0 : i32
    return %arg1, %c0_i32, %c0_i32_0 : i32, i32, i32
  }
  func.func @transform_2(%arg0: i32, %arg1: i32) -> (i32, i32, i32) {
    %c0_i32 = arith.constant 0 : i32
    %c0_i32_0 = arith.constant 0 : i32
    %c0_i32_1 = arith.constant 0 : i32
    return %arg1, %c0_i32, %c0_i32_0 : i32, i32, i32
  }
  func.func @transform_3(%arg0: i32, %arg1: i32) -> (i32, i32, i32) {
    %c0_i32 = arith.constant 0 : i32
    %c0_i32_0 = arith.constant 0 : i32
    %c0_i32_1 = arith.constant 0 : i32
    return %arg1, %c0_i32, %c0_i32_0 : i32, i32, i32
  }
  func.func @transform_4(%arg0: i32, %arg1: i32) -> (i32, i32, i32) {
    %c0_i32 = arith.constant 0 : i32
    %c0_i32_0 = arith.constant 0 : i32
    %c0_i32_1 = arith.constant 0 : i32
    return %arg1, %c0_i32, %c0_i32_0 : i32, i32, i32
  }
  func.func @transform_5(%arg0: i32, %arg1: i32) -> (i32, i32, i32) {
    %c0_i32 = arith.constant 0 : i32
    %c0_i32_0 = arith.constant 0 : i32
    %c0_i32_1 = arith.constant 0 : i32
    return %arg1, %c0_i32, %c0_i32_0 : i32, i32, i32
  }
  func.func @transform_6(%arg0: i32, %arg1: i32) -> (i32, i32, i32) {
    %c0_i32 = arith.constant 0 : i32
    %c0_i32_0 = arith.constant 0 : i32
    %c0_i32_1 = arith.constant 0 : i32
    return %arg1, %c0_i32, %c0_i32_0 : i32, i32, i32
  }
  func.func @transform_7(%arg0: i32, %arg1: i32) -> (i32, i32, i32) {
    %c0_i32 = arith.constant 0 : i32
    %c0_i32_0 = arith.constant 0 : i32
    %c0_i32_1 = arith.constant 0 : i32
    return %arg1, %c0_i32, %c0_i32_0 : i32, i32, i32
  }
  func.func @transform_8(%arg0: i32, %arg1: i32) -> (i32, i32, i32) {
    %c0_i32 = arith.constant 0 : i32
    %c0_i32_0 = arith.constant 0 : i32
    %c0_i32_1 = arith.constant 0 : i32
    return %arg1, %c0_i32, %c0_i32_0 : i32, i32, i32
  }
  func.func @transform_9(%arg0: i32, %arg1: i32) -> (i32, i32, i32) {
    %c0_i32 = arith.constant 0 : i32
    %c0_i32_0 = arith.constant 0 : i32
    %c0_i32_1 = arith.constant 0 : i32
    return %arg1, %c0_i32, %c0_i32_0 : i32, i32, i32
  }
  func.func @transform_10(%arg0: i32, %arg1: i32) -> (i32, i32, i32) {
    %c0_i32 = arith.constant 0 : i32
    %c0_i32_0 = arith.constant 0 : i32
    %c0_i32_1 = arith.constant 0 : i32
    return %arg1, %c0_i32, %c0_i32_0 : i32, i32, i32
  }
  func.func @transform_11(%arg0: i32, %arg1: i32) -> (i32, i32, i32) {
    %c0_i32 = arith.constant 0 : i32
    %c0_i32_0 = arith.constant 0 : i32
    %c0_i32_1 = arith.constant 0 : i32
    return %arg1, %c0_i32, %c0_i32_0 : i32, i32, i32
  }
  func.func @transform_12(%arg0: i32, %arg1: i32) -> (i32, i32, i32) {
    %c0_i32 = arith.constant 0 : i32
    %c0_i32_0 = arith.constant 0 : i32
    %c0_i32_1 = arith.constant 0 : i32
    return %arg1, %c0_i32, %c0_i32_0 : i32, i32, i32
  }
  func.func @transform_13(%arg0: i32, %arg1: i32) -> (i32, i32) {
    %c0_i32 = arith.constant 0 : i32
    %c0_i32_0 = arith.constant 0 : i32
    %c0_i32_1 = arith.constant 0 : i32
    return %c0_i32, %c0_i32_0 : i32, i32
  }
  func.func @transform_14(%arg0: i32, %arg1: i32) -> (i32, i32) {
    %c0_i32 = arith.constant 0 : i32
    %c0_i32_0 = arith.constant 0 : i32
    %c0_i32_1 = arith.constant 0 : i32
    return %c0_i32, %c0_i32_0 : i32, i32
  }
  func.func @transform_15(%arg0: i32, %arg1: i32) -> (i32, i32, i32) {
    %c0_i32 = arith.constant 0 : i32
    %c0_i32_0 = arith.constant 0 : i32
    %c0_i32_1 = arith.constant 0 : i32
    return %arg0, %c0_i32, %c0_i32_0 : i32, i32, i32
  }
}

module attributes {stable_mosaic.version = 11 : i64} {
  func.func @decoder_stack_kernel(%arg0: i32, %arg1: i32, %arg2: memref<2x8x32xf32, #tpu.memory_space<vmem>>, %arg3: memref<2x8x32xbf16, #tpu.memory_space<vmem>>, %arg4: memref<1x1x32xf32, #tpu.memory_space<vmem>>, %arg5: memref<1x1x32xf32, #tpu.memory_space<vmem>>, %arg6: memref<1x96x32xbf16, #tpu.memory_space<vmem>>, %arg7: memref<1x4x32xbf16, #tpu.memory_space<vmem>>, %arg8: memref<1x32x32xbf16, #tpu.memory_space<vmem>>, %arg9: memref<1x1x32xf32, #tpu.memory_space<vmem>>, %arg10: memref<1x1x32xf32, #tpu.memory_space<vmem>>, %arg11: memref<1x1x32xf32, #tpu.memory_space<vmem>>, %arg12: memref<1x32x32xbf16, #tpu.memory_space<vmem>>, %arg13: memref<1x4x32xbf16, #tpu.memory_space<vmem>>, %arg14: memref<1x64x32xbf16, #tpu.memory_space<vmem>>, %arg15: memref<1x32x32xbf16, #tpu.memory_space<vmem>>, %arg16: memref<1x1x32xf32, #tpu.memory_space<vmem>>, %arg17: memref<1x1x32xf32, #tpu.memory_space<vmem>>, %arg18: memref<1x1x32xf32, #tpu.memory_space<vmem>>, %arg19: memref<1x32x64xbf16, #tpu.memory_space<vmem>>, %arg20: memref<1x1x64xf32, #tpu.memory_space<vmem>>, %arg21: memref<1x64x32xbf16, #tpu.memory_space<vmem>>, %arg22: memref<1x1x32xf32, #tpu.memory_space<vmem>>, %arg23: memref<1x32xf32, #tpu.memory_space<vmem>>, %arg24: memref<1x32xf32, #tpu.memory_space<vmem>>, %arg25: memref<2x8x32xf32, #tpu.memory_space<vmem>>, %arg26: memref<16x32xf32, #tpu.memory_space<vmem>>) attributes {dimension_semantics = [#tpu.dimension_semantics<parallel>, #tpu.dimension_semantics<arbitrary>], iteration_bounds = array<i64: 1, 2>, scalar_prefetch = 0 : i64, scratch_operands = 1 : i64, tpu.core_type = #tpu.core_type<tc>, window_params = [{transform_indices = @transform_0, window_bounds = array<i64: 2, 8, 32>}, {transform_indices = @transform_1, window_bounds = array<i64: 2, 8, 32>}, {transform_indices = @transform_2, window_bounds = array<i64: 1, 1, 32>}, {transform_indices = @transform_3, window_bounds = array<i64: 1, 1, 32>}, {transform_indices = @transform_4, window_bounds = array<i64: 1, 96, 32>}, {transform_indices = @transform_5, window_bounds = array<i64: 1, 4, 32>}, {transform_indices = @transform_6, window_bounds = array<i64: 1, 32, 32>}, {transform_indices = @transform_7, window_bounds = array<i64: 1, 1, 32>}, {transform_indices = @transform_8, window_bounds = array<i64: 1, 1, 32>}, {transform_indices = @transform_9, window_bounds = array<i64: 1, 1, 32>}, {transform_indices = @transform_10, window_bounds = array<i64: 1, 32, 32>}, {transform_indices = @transform_11, window_bounds = array<i64: 1, 4, 32>}, {transform_indices = @transform_12, window_bounds = array<i64: 1, 64, 32>}, {transform_indices = @transform_13, window_bounds = array<i64: 1, 32, 32>}, {transform_indices = @transform_14, window_bounds = array<i64: 1, 1, 32>}, {transform_indices = @transform_15, window_bounds = array<i64: 1, 1, 32>}, {transform_indices = @transform_16, window_bounds = array<i64: 1, 1, 32>}, {transform_indices = @transform_17, window_bounds = array<i64: 1, 32, 64>}, {transform_indices = @transform_18, window_bounds = array<i64: 1, 1, 64>}, {transform_indices = @transform_19, window_bounds = array<i64: 1, 64, 32>}, {transform_indices = @transform_20, window_bounds = array<i64: 1, 1, 32>}, {pipeline_mode = #tpu.pipeline_mode<synchronous>, transform_indices = @transform_21, window_bounds = array<i64: 1, 32>}, {pipeline_mode = #tpu.pipeline_mode<synchronous>, transform_indices = @transform_22, window_bounds = array<i64: 1, 32>}, {transform_indices = @transform_23, window_bounds = array<i64: 2, 8, 32>}]} {
    %c0_i32 = arith.constant 0 : i32
    %0 = arith.cmpi eq, %arg1, %c0_i32 : i32
    %1 = arith.extui %0 : i1 to i32
    %c0_i32_0 = arith.constant 0 : i32
    %2 = arith.cmpi ne, %1, %c0_i32_0 : i32
    scf.if %2 {
      %c0_107 = arith.constant 0 : index
      %c0_108 = arith.constant 0 : index
      %c0_109 = arith.constant 0 : index
      %243 = vector.load %arg2[%c0_107, %c0_108, %c0_109] : memref<2x8x32xf32, #tpu.memory_space<vmem>>, vector<2x8x32xf32>
      %244 = vector.shape_cast %243 : vector<2x8x32xf32> to vector<16x32xf32>
      %c0_110 = arith.constant 0 : index
      %c0_111 = arith.constant 0 : index
      %245 = vector.load %arg26[%c0_110, %c0_111] : memref<16x32xf32, #tpu.memory_space<vmem>>, vector<16x32xf32>
      tpu.vector_store %arg26[%c0_110, %c0_111], %244 {strides = array<i32>} : memref<16x32xf32, #tpu.memory_space<vmem>>, vector<16x32xf32>,
    } else {
    }
    %c0 = arith.constant 0 : index
    %c0_1 = arith.constant 0 : index
    %3 = vector.load %arg26[%c0, %c0_1] : memref<16x32xf32, #tpu.memory_space<vmem>>, vector<16x32xf32>
    %c0_2 = arith.constant 0 : index
    %c0_3 = arith.constant 0 : index
    %c0_4 = arith.constant 0 : index
    %4 = vector.load %arg3[%c0_2, %c0_3, %c0_4] : memref<2x8x32xbf16, #tpu.memory_space<vmem>>, vector<2x8x32xbf16>
    %5 = vector.shape_cast %4 : vector<2x8x32xbf16> to vector<16x32xbf16>
    %c0_5 = arith.constant 0 : index
    %c0_6 = arith.constant 0 : index
    %c0_7 = arith.constant 0 : index
    %6 = vector.load %arg4[%c0_5, %c0_6, %c0_7] : memref<1x1x32xf32, #tpu.memory_space<vmem>>, vector<1x1x32xf32>
    %7 = vector.shape_cast %6 : vector<1x1x32xf32> to vector<1x32xf32>
    %c0_8 = arith.constant 0 : index
    %c0_9 = arith.constant 0 : index
    %c0_10 = arith.constant 0 : index
    %8 = vector.load %arg5[%c0_8, %c0_9, %c0_10] : memref<1x1x32xf32, #tpu.memory_space<vmem>>, vector<1x1x32xf32>
    %9 = vector.shape_cast %8 : vector<1x1x32xf32> to vector<1x32xf32>
    %cst = arith.constant dense<0.000000e+00> : vector<16xf32>
    %10 = vector.multi_reduction <add>, %3, %cst [1] : vector<16x32xf32> to vector<16xf32>
    %11 = vector.shape_cast %10 : vector<16xf32> to vector<16x1xf32>
    %cst_11 = arith.constant 3.200000e+01 : f32
    %12 = vector.broadcast %cst_11 : f32 to vector<16x1xf32>
    %13 = arith.divf %11, %12 : vector<16x1xf32>
    %14 = vector.broadcast %13 : vector<16x1xf32> to vector<16x32xf32>
    %15 = arith.subf %3, %14 : vector<16x32xf32>
    %16 = arith.mulf %15, %15 : vector<16x32xf32>
    %cst_12 = arith.constant dense<0.000000e+00> : vector<16xf32>
    %17 = vector.multi_reduction <add>, %16, %cst_12 [1] : vector<16x32xf32> to vector<16xf32>
    %18 = vector.shape_cast %17 : vector<16xf32> to vector<16x1xf32>
    %cst_13 = arith.constant 3.200000e+01 : f32
    %19 = vector.broadcast %cst_13 : f32 to vector<16x1xf32>
    %20 = arith.divf %18, %19 : vector<16x1xf32>
    %cst_14 = arith.constant 9.99999974E-6 : f32
    %21 = vector.broadcast %cst_14 : f32 to vector<16x1xf32>
    %22 = arith.addf %20, %21 : vector<16x1xf32>
    %23 = math.rsqrt %22 : vector<16x1xf32>
    %24 = vector.broadcast %23 : vector<16x1xf32> to vector<16x32xf32>
    %25 = arith.mulf %15, %24 : vector<16x32xf32>
    %26 = vector.broadcast %7 : vector<1x32xf32> to vector<16x32xf32>
    %27 = arith.mulf %25, %26 : vector<16x32xf32>
    %28 = vector.broadcast %9 : vector<1x32xf32> to vector<16x32xf32>
    %29 = arith.addf %27, %28 : vector<16x32xf32>
    %30 = arith.truncf %29 : vector<16x32xf32> to vector<16x32xbf16>
    %c0_15 = arith.constant 0 : index
    %c0_16 = arith.constant 0 : index
    %c0_17 = arith.constant 0 : index
    %31 = vector.load %arg6[%c0_15, %c0_16, %c0_17] : memref<1x96x32xbf16, #tpu.memory_space<vmem>>, vector<1x96x32xbf16>
    %32 = vector.shape_cast %31 : vector<1x96x32xbf16> to vector<96x32xbf16>
    %cst_18 = arith.constant dense<0.000000e+00> : vector<96x16xf32>
    %33 = tpu.matmul %32, %30, %cst_18 {dimension_numbers = #tpu.dot_dimension_numbers<[1], [1], [0], [0], [0, 0, 1, 0], [], []>} : vector<96x32xbf16>, vector<16x32xbf16>, vector<96x16xf32> -> vector<96x16xf32>
    %c0_19 = arith.constant 0 : index
    %c0_20 = arith.constant 0 : index
    %c0_21 = arith.constant 0 : index
    %34 = vector.load %arg7[%c0_19, %c0_20, %c0_21] : memref<1x4x32xbf16, #tpu.memory_space<vmem>>, vector<1x4x32xbf16>
    %35 = vector.shape_cast %34 : vector<1x4x32xbf16> to vector<4x32xbf16>
    %cst_22 = arith.constant dense<0.000000e+00> : vector<4x16xf32>
    %36 = tpu.matmul %35, %30, %cst_22 {dimension_numbers = #tpu.dot_dimension_numbers<[1], [1], [0], [0], [0, 0, 1, 0], [], []>} : vector<4x32xbf16>, vector<16x32xbf16>, vector<4x16xf32> -> vector<4x16xf32>
    %37 = vector.extract_strided_slice %33 {offsets = [0, 0], sizes = [32, 16], strides = [1, 1]} : vector<96x16xf32> to vector<32x16xf32>
    %38 = vector.extract_strided_slice %33 {offsets = [32, 0], sizes = [32, 16], strides = [1, 1]} : vector<96x16xf32> to vector<32x16xf32>
    %39 = vector.extract_strided_slice %33 {offsets = [64, 0], sizes = [32, 16], strides = [1, 1]} : vector<96x16xf32> to vector<32x16xf32>
    %c0_23 = arith.constant 0 : index
    %c0_24 = arith.constant 0 : index
    %c0_25 = arith.constant 0 : index
    %40 = vector.load %arg8[%c0_23, %c0_24, %c0_25] : memref<1x32x32xbf16, #tpu.memory_space<vmem>>, vector<1x32x32xbf16>
    %41 = vector.shape_cast %40 : vector<1x32x32xbf16> to vector<32x32xbf16>
    %c0_26 = arith.constant 0 : index
    %c0_27 = arith.constant 0 : index
    %c0_28 = arith.constant 0 : index
    %42 = vector.load %arg9[%c0_26, %c0_27, %c0_28] : memref<1x1x32xf32, #tpu.memory_space<vmem>>, vector<1x1x32xf32>
    %43 = vector.shape_cast %42 : vector<1x1x32xf32> to vector<1x32xf32>
    %44 = vector.shape_cast %37 : vector<32x16xf32> to vector<4x8x16xf32>
    %45 = arith.truncf %44 : vector<4x8x16xf32> to vector<4x8x16xbf16>
    %46 = vector.shape_cast %38 : vector<32x16xf32> to vector<4x8x16xf32>
    %47 = arith.truncf %46 : vector<4x8x16xf32> to vector<4x8x16xbf16>
    %48 = vector.shape_cast %39 : vector<32x16xf32> to vector<4x8x16xf32>
    %49 = arith.truncf %48 : vector<4x8x16xf32> to vector<4x8x16xbf16>
    %50 = vector.extract_strided_slice %45 {offsets = [0, 0, 0], sizes = [4, 8, 8], strides = [1, 1, 1]} : vector<4x8x16xbf16> to vector<4x8x8xbf16>
    %51 = vector.extract_strided_slice %47 {offsets = [0, 0, 0], sizes = [4, 8, 8], strides = [1, 1, 1]} : vector<4x8x16xbf16> to vector<4x8x8xbf16>
    %52 = vector.extract_strided_slice %49 {offsets = [0, 0, 0], sizes = [4, 8, 8], strides = [1, 1, 1]} : vector<4x8x16xbf16> to vector<4x8x8xbf16>
    %cst_29 = arith.constant dense<0.000000e+00> : vector<4x8x8xf32>
    %53 = tpu.matmul %50, %51, %cst_29 {dimension_numbers = #tpu.dot_dimension_numbers<[1], [1], [2], [2], [0, 0, 0, 2, 1, 2], [0], [0]>} : vector<4x8x8xbf16>, vector<4x8x8xbf16>, vector<4x8x8xf32> -> vector<4x8x8xf32>
    %54 = vector.extract_strided_slice %36 {offsets = [0, 0], sizes = [4, 8], strides = [1, 1]} : vector<4x16xf32> to vector<4x8xf32>
    %55 = vector.shape_cast %54 : vector<4x8xf32> to vector<4x1x8xf32>
    %56 = vector.broadcast %55 : vector<4x1x8xf32> to vector<4x8x8xf32>
    %57 = arith.addf %53, %56 : vector<4x8x8xf32>
    %cst_30 = arith.constant dense<0xFF800000> : vector<4x8xf32>
    %58 = vector.multi_reduction <maximumf>, %57, %cst_30 [2] : vector<4x8x8xf32> to vector<4x8xf32>
    %59 = vector.shape_cast %58 : vector<4x8xf32> to vector<4x8x1xf32>
    %60 = vector.broadcast %59 : vector<4x8x1xf32> to vector<4x8x8xf32>
    %61 = arith.subf %57, %60 : vector<4x8x8xf32>
    %62 = math.exp %61 : vector<4x8x8xf32>
    %cst_31 = arith.constant dense<0.000000e+00> : vector<4x8xf32>
    %63 = vector.multi_reduction <add>, %62, %cst_31 [2] : vector<4x8x8xf32> to vector<4x8xf32>
    %64 = vector.shape_cast %63 : vector<4x8xf32> to vector<4x8x1xf32>
    %65 = tpu.reciprocal %64 {approx = true} : vector<4x8x1xf32> -> vector<4x8x1xf32>
    %66 = vector.broadcast %65 : vector<4x8x1xf32> to vector<4x8x8xf32>
    %67 = arith.mulf %62, %66 : vector<4x8x8xf32>
    %68 = arith.truncf %67 : vector<4x8x8xf32> to vector<4x8x8xbf16>
    %cst_32 = arith.constant dense<0.000000e+00> : vector<4x8x8xf32>
    %69 = tpu.matmul %52, %68, %cst_32 {dimension_numbers = #tpu.dot_dimension_numbers<[2], [2], [1], [1], [0, 0, 0, 1, 1, 1], [0], [0]>} : vector<4x8x8xbf16>, vector<4x8x8xbf16>, vector<4x8x8xf32> -> vector<4x8x8xf32>
    %70 = vector.shape_cast %69 : vector<4x8x8xf32> to vector<32x8xf32>
    %71 = arith.truncf %70 : vector<32x8xf32> to vector<32x8xbf16>
    %cst_33 = arith.constant dense<0.000000e+00> : vector<8x32xf32>
    %72 = tpu.matmul %71, %41, %cst_33 {dimension_numbers = #tpu.dot_dimension_numbers<[0], [0], [1], [1], [0, 1, 1, 1], [], []>} : vector<32x8xbf16>, vector<32x32xbf16>, vector<8x32xf32> -> vector<8x32xf32>
    %73 = vector.extract_strided_slice %45 {offsets = [0, 0, 8], sizes = [4, 8, 8], strides = [1, 1, 1]} : vector<4x8x16xbf16> to vector<4x8x8xbf16>
    %74 = vector.extract_strided_slice %47 {offsets = [0, 0, 8], sizes = [4, 8, 8], strides = [1, 1, 1]} : vector<4x8x16xbf16> to vector<4x8x8xbf16>
    %75 = vector.extract_strided_slice %49 {offsets = [0, 0, 8], sizes = [4, 8, 8], strides = [1, 1, 1]} : vector<4x8x16xbf16> to vector<4x8x8xbf16>
    %cst_34 = arith.constant dense<0.000000e+00> : vector<4x8x8xf32>
    %76 = tpu.matmul %73, %74, %cst_34 {dimension_numbers = #tpu.dot_dimension_numbers<[1], [1], [2], [2], [0, 0, 0, 2, 1, 2], [0], [0]>} : vector<4x8x8xbf16>, vector<4x8x8xbf16>, vector<4x8x8xf32> -> vector<4x8x8xf32>
    %77 = vector.extract_strided_slice %36 {offsets = [0, 8], sizes = [4, 8], strides = [1, 1]} : vector<4x16xf32> to vector<4x8xf32>
    %78 = vector.shape_cast %77 : vector<4x8xf32> to vector<4x1x8xf32>
    %79 = vector.broadcast %78 : vector<4x1x8xf32> to vector<4x8x8xf32>
    %80 = arith.addf %76, %79 : vector<4x8x8xf32>
    %cst_35 = arith.constant dense<0xFF800000> : vector<4x8xf32>
    %81 = vector.multi_reduction <maximumf>, %80, %cst_35 [2] : vector<4x8x8xf32> to vector<4x8xf32>
    %82 = vector.shape_cast %81 : vector<4x8xf32> to vector<4x8x1xf32>
    %83 = vector.broadcast %82 : vector<4x8x1xf32> to vector<4x8x8xf32>
    %84 = arith.subf %80, %83 : vector<4x8x8xf32>
    %85 = math.exp %84 : vector<4x8x8xf32>
    %cst_36 = arith.constant dense<0.000000e+00> : vector<4x8xf32>
    %86 = vector.multi_reduction <add>, %85, %cst_36 [2] : vector<4x8x8xf32> to vector<4x8xf32>
    %87 = vector.shape_cast %86 : vector<4x8xf32> to vector<4x8x1xf32>
    %88 = tpu.reciprocal %87 {approx = true} : vector<4x8x1xf32> -> vector<4x8x1xf32>
    %89 = vector.broadcast %88 : vector<4x8x1xf32> to vector<4x8x8xf32>
    %90 = arith.mulf %85, %89 : vector<4x8x8xf32>
    %91 = arith.truncf %90 : vector<4x8x8xf32> to vector<4x8x8xbf16>
    %cst_37 = arith.constant dense<0.000000e+00> : vector<4x8x8xf32>
    %92 = tpu.matmul %75, %91, %cst_37 {dimension_numbers = #tpu.dot_dimension_numbers<[2], [2], [1], [1], [0, 0, 0, 1, 1, 1], [0], [0]>} : vector<4x8x8xbf16>, vector<4x8x8xbf16>, vector<4x8x8xf32> -> vector<4x8x8xf32>
    %93 = vector.shape_cast %92 : vector<4x8x8xf32> to vector<32x8xf32>
    %94 = arith.truncf %93 : vector<32x8xf32> to vector<32x8xbf16>
    %cst_38 = arith.constant dense<0.000000e+00> : vector<8x32xf32>
    %95 = tpu.matmul %94, %41, %cst_38 {dimension_numbers = #tpu.dot_dimension_numbers<[0], [0], [1], [1], [0, 1, 1, 1], [], []>} : vector<32x8xbf16>, vector<32x32xbf16>, vector<8x32xf32> -> vector<8x32xf32>
    %96 = tpu.concatenate %72, %95 in 0 : vector<8x32xf32>, vector<8x32xf32> -> vector<16x32xf32>
    %97 = vector.broadcast %43 : vector<1x32xf32> to vector<16x32xf32>
    %98 = arith.addf %96, %97 : vector<16x32xf32>
    %99 = arith.addf %3, %98 : vector<16x32xf32>
    %c0_39 = arith.constant 0 : index
    %c0_40 = arith.constant 0 : index
    %c0_41 = arith.constant 0 : index
    %100 = vector.load %arg10[%c0_39, %c0_40, %c0_41] : memref<1x1x32xf32, #tpu.memory_space<vmem>>, vector<1x1x32xf32>
    %101 = vector.shape_cast %100 : vector<1x1x32xf32> to vector<1x32xf32>
    %c0_42 = arith.constant 0 : index
    %c0_43 = arith.constant 0 : index
    %c0_44 = arith.constant 0 : index
    %102 = vector.load %arg11[%c0_42, %c0_43, %c0_44] : memref<1x1x32xf32, #tpu.memory_space<vmem>>, vector<1x1x32xf32>
    %103 = vector.shape_cast %102 : vector<1x1x32xf32> to vector<1x32xf32>
    %cst_45 = arith.constant dense<0.000000e+00> : vector<16xf32>
    %104 = vector.multi_reduction <add>, %99, %cst_45 [1] : vector<16x32xf32> to vector<16xf32>
    %105 = vector.shape_cast %104 : vector<16xf32> to vector<16x1xf32>
    %cst_46 = arith.constant 3.200000e+01 : f32
    %106 = vector.broadcast %cst_46 : f32 to vector<16x1xf32>
    %107 = arith.divf %105, %106 : vector<16x1xf32>
    %108 = vector.broadcast %107 : vector<16x1xf32> to vector<16x32xf32>
    %109 = arith.subf %99, %108 : vector<16x32xf32>
    %110 = arith.mulf %109, %109 : vector<16x32xf32>
    %cst_47 = arith.constant dense<0.000000e+00> : vector<16xf32>
    %111 = vector.multi_reduction <add>, %110, %cst_47 [1] : vector<16x32xf32> to vector<16xf32>
    %112 = vector.shape_cast %111 : vector<16xf32> to vector<16x1xf32>
    %cst_48 = arith.constant 3.200000e+01 : f32
    %113 = vector.broadcast %cst_48 : f32 to vector<16x1xf32>
    %114 = arith.divf %112, %113 : vector<16x1xf32>
    %cst_49 = arith.constant 9.99999974E-6 : f32
    %115 = vector.broadcast %cst_49 : f32 to vector<16x1xf32>
    %116 = arith.addf %114, %115 : vector<16x1xf32>
    %117 = math.rsqrt %116 : vector<16x1xf32>
    %118 = vector.broadcast %117 : vector<16x1xf32> to vector<16x32xf32>
    %119 = arith.mulf %109, %118 : vector<16x32xf32>
    %120 = vector.broadcast %101 : vector<1x32xf32> to vector<16x32xf32>
    %121 = arith.mulf %119, %120 : vector<16x32xf32>
    %122 = vector.broadcast %103 : vector<1x32xf32> to vector<16x32xf32>
    %123 = arith.addf %121, %122 : vector<16x32xf32>
    %124 = arith.truncf %123 : vector<16x32xf32> to vector<16x32xbf16>
    %c0_50 = arith.constant 0 : index
    %c0_51 = arith.constant 0 : index
    %c0_52 = arith.constant 0 : index
    %125 = vector.load %arg12[%c0_50, %c0_51, %c0_52] : memref<1x32x32xbf16, #tpu.memory_space<vmem>>, vector<1x32x32xbf16>
    %126 = vector.shape_cast %125 : vector<1x32x32xbf16> to vector<32x32xbf16>
    %cst_53 = arith.constant dense<0.000000e+00> : vector<32x16xf32>
    %127 = tpu.matmul %126, %124, %cst_53 {dimension_numbers = #tpu.dot_dimension_numbers<[1], [1], [0], [0], [0, 0, 1, 0], [], []>} : vector<32x32xbf16>, vector<16x32xbf16>, vector<32x16xf32> -> vector<32x16xf32>
    %c0_54 = arith.constant 0 : index
    %c0_55 = arith.constant 0 : index
    %c0_56 = arith.constant 0 : index
    %128 = vector.load %arg14[%c0_54, %c0_55, %c0_56] : memref<1x64x32xbf16, #tpu.memory_space<vmem>>, vector<1x64x32xbf16>
    %129 = vector.shape_cast %128 : vector<1x64x32xbf16> to vector<64x32xbf16>
    %cst_57 = arith.constant dense<0.000000e+00> : vector<64x16xf32>
    %130 = tpu.matmul %129, %5, %cst_57 {dimension_numbers = #tpu.dot_dimension_numbers<[1], [1], [0], [0], [0, 0, 1, 0], [], []>} : vector<64x32xbf16>, vector<16x32xbf16>, vector<64x16xf32> -> vector<64x16xf32>
    %c0_58 = arith.constant 0 : index
    %c0_59 = arith.constant 0 : index
    %c0_60 = arith.constant 0 : index
    %131 = vector.load %arg13[%c0_58, %c0_59, %c0_60] : memref<1x4x32xbf16, #tpu.memory_space<vmem>>, vector<1x4x32xbf16>
    %132 = vector.shape_cast %131 : vector<1x4x32xbf16> to vector<4x32xbf16>
    %cst_61 = arith.constant dense<0.000000e+00> : vector<4x16xf32>
    %133 = tpu.matmul %132, %5, %cst_61 {dimension_numbers = #tpu.dot_dimension_numbers<[1], [1], [0], [0], [0, 0, 1, 0], [], []>} : vector<4x32xbf16>, vector<16x32xbf16>, vector<4x16xf32> -> vector<4x16xf32>
    %134 = vector.extract_strided_slice %130 {offsets = [0, 0], sizes = [32, 16], strides = [1, 1]} : vector<64x16xf32> to vector<32x16xf32>
    %135 = vector.extract_strided_slice %130 {offsets = [32, 0], sizes = [32, 16], strides = [1, 1]} : vector<64x16xf32> to vector<32x16xf32>
    %c0_62 = arith.constant 0 : index
    %c0_63 = arith.constant 0 : index
    %c0_64 = arith.constant 0 : index
    %136 = vector.load %arg15[%c0_62, %c0_63, %c0_64] : memref<1x32x32xbf16, #tpu.memory_space<vmem>>, vector<1x32x32xbf16>
    %137 = vector.shape_cast %136 : vector<1x32x32xbf16> to vector<32x32xbf16>
    %c0_65 = arith.constant 0 : index
    %c0_66 = arith.constant 0 : index
    %c0_67 = arith.constant 0 : index
    %138 = vector.load %arg16[%c0_65, %c0_66, %c0_67] : memref<1x1x32xf32, #tpu.memory_space<vmem>>, vector<1x1x32xf32>
    %139 = vector.shape_cast %138 : vector<1x1x32xf32> to vector<1x32xf32>
    %140 = vector.shape_cast %127 : vector<32x16xf32> to vector<4x8x16xf32>
    %141 = arith.truncf %140 : vector<4x8x16xf32> to vector<4x8x16xbf16>
    %142 = vector.shape_cast %134 : vector<32x16xf32> to vector<4x8x16xf32>
    %143 = arith.truncf %142 : vector<4x8x16xf32> to vector<4x8x16xbf16>
    %144 = vector.shape_cast %135 : vector<32x16xf32> to vector<4x8x16xf32>
    %145 = arith.truncf %144 : vector<4x8x16xf32> to vector<4x8x16xbf16>
    %146 = vector.extract_strided_slice %141 {offsets = [0, 0, 0], sizes = [4, 8, 8], strides = [1, 1, 1]} : vector<4x8x16xbf16> to vector<4x8x8xbf16>
    %147 = vector.extract_strided_slice %143 {offsets = [0, 0, 0], sizes = [4, 8, 8], strides = [1, 1, 1]} : vector<4x8x16xbf16> to vector<4x8x8xbf16>
    %148 = vector.extract_strided_slice %145 {offsets = [0, 0, 0], sizes = [4, 8, 8], strides = [1, 1, 1]} : vector<4x8x16xbf16> to vector<4x8x8xbf16>
    %cst_68 = arith.constant dense<0.000000e+00> : vector<4x8x8xf32>
    %149 = tpu.matmul %146, %147, %cst_68 {dimension_numbers = #tpu.dot_dimension_numbers<[1], [1], [2], [2], [0, 0, 0, 2, 1, 2], [0], [0]>} : vector<4x8x8xbf16>, vector<4x8x8xbf16>, vector<4x8x8xf32> -> vector<4x8x8xf32>
    %150 = vector.extract_strided_slice %133 {offsets = [0, 0], sizes = [4, 8], strides = [1, 1]} : vector<4x16xf32> to vector<4x8xf32>
    %151 = vector.shape_cast %150 : vector<4x8xf32> to vector<4x1x8xf32>
    %152 = vector.broadcast %151 : vector<4x1x8xf32> to vector<4x8x8xf32>
    %153 = arith.addf %149, %152 : vector<4x8x8xf32>
    %cst_69 = arith.constant dense<0xFF800000> : vector<4x8xf32>
    %154 = vector.multi_reduction <maximumf>, %153, %cst_69 [2] : vector<4x8x8xf32> to vector<4x8xf32>
    %155 = vector.shape_cast %154 : vector<4x8xf32> to vector<4x8x1xf32>
    %156 = vector.broadcast %155 : vector<4x8x1xf32> to vector<4x8x8xf32>
    %157 = arith.subf %153, %156 : vector<4x8x8xf32>
    %158 = math.exp %157 : vector<4x8x8xf32>
    %cst_70 = arith.constant dense<0.000000e+00> : vector<4x8xf32>
    %159 = vector.multi_reduction <add>, %158, %cst_70 [2] : vector<4x8x8xf32> to vector<4x8xf32>
    %160 = vector.shape_cast %159 : vector<4x8xf32> to vector<4x8x1xf32>
    %161 = tpu.reciprocal %160 {approx = true} : vector<4x8x1xf32> -> vector<4x8x1xf32>
    %162 = vector.broadcast %161 : vector<4x8x1xf32> to vector<4x8x8xf32>
    %163 = arith.mulf %158, %162 : vector<4x8x8xf32>
    %164 = arith.truncf %163 : vector<4x8x8xf32> to vector<4x8x8xbf16>
    %cst_71 = arith.constant dense<0.000000e+00> : vector<4x8x8xf32>
    %165 = tpu.matmul %148, %164, %cst_71 {dimension_numbers = #tpu.dot_dimension_numbers<[2], [2], [1], [1], [0, 0, 0, 1, 1, 1], [0], [0]>} : vector<4x8x8xbf16>, vector<4x8x8xbf16>, vector<4x8x8xf32> -> vector<4x8x8xf32>
    %166 = vector.shape_cast %165 : vector<4x8x8xf32> to vector<32x8xf32>
    %167 = arith.truncf %166 : vector<32x8xf32> to vector<32x8xbf16>
    %cst_72 = arith.constant dense<0.000000e+00> : vector<8x32xf32>
    %168 = tpu.matmul %167, %137, %cst_72 {dimension_numbers = #tpu.dot_dimension_numbers<[0], [0], [1], [1], [0, 1, 1, 1], [], []>} : vector<32x8xbf16>, vector<32x32xbf16>, vector<8x32xf32> -> vector<8x32xf32>
    %169 = vector.extract_strided_slice %141 {offsets = [0, 0, 8], sizes = [4, 8, 8], strides = [1, 1, 1]} : vector<4x8x16xbf16> to vector<4x8x8xbf16>
    %170 = vector.extract_strided_slice %143 {offsets = [0, 0, 8], sizes = [4, 8, 8], strides = [1, 1, 1]} : vector<4x8x16xbf16> to vector<4x8x8xbf16>
    %171 = vector.extract_strided_slice %145 {offsets = [0, 0, 8], sizes = [4, 8, 8], strides = [1, 1, 1]} : vector<4x8x16xbf16> to vector<4x8x8xbf16>
    %cst_73 = arith.constant dense<0.000000e+00> : vector<4x8x8xf32>
    %172 = tpu.matmul %169, %170, %cst_73 {dimension_numbers = #tpu.dot_dimension_numbers<[1], [1], [2], [2], [0, 0, 0, 2, 1, 2], [0], [0]>} : vector<4x8x8xbf16>, vector<4x8x8xbf16>, vector<4x8x8xf32> -> vector<4x8x8xf32>
    %173 = vector.extract_strided_slice %133 {offsets = [0, 8], sizes = [4, 8], strides = [1, 1]} : vector<4x16xf32> to vector<4x8xf32>
    %174 = vector.shape_cast %173 : vector<4x8xf32> to vector<4x1x8xf32>
    %175 = vector.broadcast %174 : vector<4x1x8xf32> to vector<4x8x8xf32>
    %176 = arith.addf %172, %175 : vector<4x8x8xf32>
    %cst_74 = arith.constant dense<0xFF800000> : vector<4x8xf32>
    %177 = vector.multi_reduction <maximumf>, %176, %cst_74 [2] : vector<4x8x8xf32> to vector<4x8xf32>
    %178 = vector.shape_cast %177 : vector<4x8xf32> to vector<4x8x1xf32>
    %179 = vector.broadcast %178 : vector<4x8x1xf32> to vector<4x8x8xf32>
    %180 = arith.subf %176, %179 : vector<4x8x8xf32>
    %181 = math.exp %180 : vector<4x8x8xf32>
    %cst_75 = arith.constant dense<0.000000e+00> : vector<4x8xf32>
    %182 = vector.multi_reduction <add>, %181, %cst_75 [2] : vector<4x8x8xf32> to vector<4x8xf32>
    %183 = vector.shape_cast %182 : vector<4x8xf32> to vector<4x8x1xf32>
    %184 = tpu.reciprocal %183 {approx = true} : vector<4x8x1xf32> -> vector<4x8x1xf32>
    %185 = vector.broadcast %184 : vector<4x8x1xf32> to vector<4x8x8xf32>
    %186 = arith.mulf %181, %185 : vector<4x8x8xf32>
    %187 = arith.truncf %186 : vector<4x8x8xf32> to vector<4x8x8xbf16>
    %cst_76 = arith.constant dense<0.000000e+00> : vector<4x8x8xf32>
    %188 = tpu.matmul %171, %187, %cst_76 {dimension_numbers = #tpu.dot_dimension_numbers<[2], [2], [1], [1], [0, 0, 0, 1, 1, 1], [0], [0]>} : vector<4x8x8xbf16>, vector<4x8x8xbf16>, vector<4x8x8xf32> -> vector<4x8x8xf32>
    %189 = vector.shape_cast %188 : vector<4x8x8xf32> to vector<32x8xf32>
    %190 = arith.truncf %189 : vector<32x8xf32> to vector<32x8xbf16>
    %cst_77 = arith.constant dense<0.000000e+00> : vector<8x32xf32>
    %191 = tpu.matmul %190, %137, %cst_77 {dimension_numbers = #tpu.dot_dimension_numbers<[0], [0], [1], [1], [0, 1, 1, 1], [], []>} : vector<32x8xbf16>, vector<32x32xbf16>, vector<8x32xf32> -> vector<8x32xf32>
    %192 = tpu.concatenate %168, %191 in 0 : vector<8x32xf32>, vector<8x32xf32> -> vector<16x32xf32>
    %193 = vector.broadcast %139 : vector<1x32xf32> to vector<16x32xf32>
    %194 = arith.addf %192, %193 : vector<16x32xf32>
    %195 = arith.addf %99, %194 : vector<16x32xf32>
    %c0_78 = arith.constant 0 : index
    %c0_79 = arith.constant 0 : index
    %c0_80 = arith.constant 0 : index
    %196 = vector.load %arg17[%c0_78, %c0_79, %c0_80] : memref<1x1x32xf32, #tpu.memory_space<vmem>>, vector<1x1x32xf32>
    %197 = vector.shape_cast %196 : vector<1x1x32xf32> to vector<1x32xf32>
    %c0_81 = arith.constant 0 : index
    %c0_82 = arith.constant 0 : index
    %c0_83 = arith.constant 0 : index
    %198 = vector.load %arg18[%c0_81, %c0_82, %c0_83] : memref<1x1x32xf32, #tpu.memory_space<vmem>>, vector<1x1x32xf32>
    %199 = vector.shape_cast %198 : vector<1x1x32xf32> to vector<1x32xf32>
    %cst_84 = arith.constant dense<0.000000e+00> : vector<16xf32>
    %200 = vector.multi_reduction <add>, %195, %cst_84 [1] : vector<16x32xf32> to vector<16xf32>
    %201 = vector.shape_cast %200 : vector<16xf32> to vector<16x1xf32>
    %cst_85 = arith.constant 3.200000e+01 : f32
    %202 = vector.broadcast %cst_85 : f32 to vector<16x1xf32>
    %203 = arith.divf %201, %202 : vector<16x1xf32>
    %204 = vector.broadcast %203 : vector<16x1xf32> to vector<16x32xf32>
    %205 = arith.subf %195, %204 : vector<16x32xf32>
    %206 = arith.mulf %205, %205 : vector<16x32xf32>
    %cst_86 = arith.constant dense<0.000000e+00> : vector<16xf32>
    %207 = vector.multi_reduction <add>, %206, %cst_86 [1] : vector<16x32xf32> to vector<16xf32>
    %208 = vector.shape_cast %207 : vector<16xf32> to vector<16x1xf32>
    %cst_87 = arith.constant 3.200000e+01 : f32
    %209 = vector.broadcast %cst_87 : f32 to vector<16x1xf32>
    %210 = arith.divf %208, %209 : vector<16x1xf32>
    %cst_88 = arith.constant 9.99999974E-6 : f32
    %211 = vector.broadcast %cst_88 : f32 to vector<16x1xf32>
    %212 = arith.addf %210, %211 : vector<16x1xf32>
    %213 = math.rsqrt %212 : vector<16x1xf32>
    %214 = vector.broadcast %213 : vector<16x1xf32> to vector<16x32xf32>
    %215 = arith.mulf %205, %214 : vector<16x32xf32>
    %216 = vector.broadcast %197 : vector<1x32xf32> to vector<16x32xf32>
    %217 = arith.mulf %215, %216 : vector<16x32xf32>
    %218 = vector.broadcast %199 : vector<1x32xf32> to vector<16x32xf32>
    %219 = arith.addf %217, %218 : vector<16x32xf32>
    %220 = arith.truncf %219 : vector<16x32xf32> to vector<16x32xbf16>
    %c0_89 = arith.constant 0 : index
    %c0_90 = arith.constant 0 : index
    %c0_91 = arith.constant 0 : index
    %221 = vector.load %arg19[%c0_89, %c0_90, %c0_91] : memref<1x32x64xbf16, #tpu.memory_space<vmem>>, vector<1x32x64xbf16>
    %222 = vector.shape_cast %221 : vector<1x32x64xbf16> to vector<32x64xbf16>
    %cst_92 = arith.constant dense<0.000000e+00> : vector<16x64xf32>
    %223 = tpu.matmul %220, %222, %cst_92 {dimension_numbers = #tpu.dot_dimension_numbers<[1], [0], [0], [1], [0, 0, 1, 1], [], []>} : vector<16x32xbf16>, vector<32x64xbf16>, vector<16x64xf32> -> vector<16x64xf32>
    %c0_93 = arith.constant 0 : index
    %c0_94 = arith.constant 0 : index
    %c0_95 = arith.constant 0 : index
    %224 = vector.load %arg20[%c0_93, %c0_94, %c0_95] : memref<1x1x64xf32, #tpu.memory_space<vmem>>, vector<1x1x64xf32>
    %225 = vector.shape_cast %224 : vector<1x1x64xf32> to vector<1x64xf32>
    %226 = vector.broadcast %225 : vector<1x64xf32> to vector<16x64xf32>
    %227 = arith.addf %223, %226 : vector<16x64xf32>
    %cst_96 = arith.constant 0.000000e+00 : f32
    %228 = vector.broadcast %cst_96 : f32 to vector<16x64xf32>
    %229 = arith.maximumf %227, %228 : vector<16x64xf32>
    %230 = arith.truncf %229 : vector<16x64xf32> to vector<16x64xbf16>
    %c0_97 = arith.constant 0 : index
    %c0_98 = arith.constant 0 : index
    %c0_99 = arith.constant 0 : index
    %231 = vector.load %arg21[%c0_97, %c0_98, %c0_99] : memref<1x64x32xbf16, #tpu.memory_space<vmem>>, vector<1x64x32xbf16>
    %232 = vector.shape_cast %231 : vector<1x64x32xbf16> to vector<64x32xbf16>
    %cst_100 = arith.constant dense<0.000000e+00> : vector<16x32xf32>
    %233 = tpu.matmul %230, %232, %cst_100 {dimension_numbers = #tpu.dot_dimension_numbers<[1], [0], [0], [1], [0, 0, 1, 1], [], []>} : vector<16x64xbf16>, vector<64x32xbf16>, vector<16x32xf32> -> vector<16x32xf32>
    %c0_101 = arith.constant 0 : index
    %c0_102 = arith.constant 0 : index
    %c0_103 = arith.constant 0 : index
    %234 = vector.load %arg22[%c0_101, %c0_102, %c0_103] : memref<1x1x32xf32, #tpu.memory_space<vmem>>, vector<1x1x32xf32>
    %235 = vector.shape_cast %234 : vector<1x1x32xf32> to vector<1x32xf32>
    %236 = vector.broadcast %235 : vector<1x32xf32> to vector<16x32xf32>
    %237 = arith.addf %233, %236 : vector<16x32xf32>
    %238 = arith.addf %195, %237 : vector<16x32xf32>
    %c0_104 = arith.constant 0 : index
    %c0_105 = arith.constant 0 : index
    %239 = vector.load %arg26[%c0_104, %c0_105] : memref<16x32xf32, #tpu.memory_space<vmem>>, vector<16x32xf32>
    tpu.vector_store %arg26[%c0_104, %c0_105], %238 {strides = array<i32>} : memref<16x32xf32, #tpu.memory_space<vmem>>, vector<16x32xf32>,
    %c1_i32 = arith.constant 1 : i32
    %240 = arith.cmpi eq, %arg1, %c1_i32 : i32
    %241 = arith.extui %240 : i1 to i32
    %c0_i32_106 = arith.constant 0 : i32
    %242 = arith.cmpi ne, %241, %c0_i32_106 : i32
    scf.if %242 {
      %c0_107 = arith.constant 0 : index
      %c0_108 = arith.constant 0 : index
      %243 = vector.load %arg23[%c0_107, %c0_108] : memref<1x32xf32, #tpu.memory_space<vmem>>, vector<1x32xf32>
      %c0_109 = arith.constant 0 : index
      %c0_110 = arith.constant 0 : index
      %244 = vector.load %arg24[%c0_109, %c0_110] : memref<1x32xf32, #tpu.memory_space<vmem>>, vector<1x32xf32>
      %cst_111 = arith.constant dense<0.000000e+00> : vector<16xf32>
      %245 = vector.multi_reduction <add>, %238, %cst_111 [1] : vector<16x32xf32> to vector<16xf32>
      %246 = vector.shape_cast %245 : vector<16xf32> to vector<16x1xf32>
      %cst_112 = arith.constant 3.200000e+01 : f32
      %247 = vector.broadcast %cst_112 : f32 to vector<16x1xf32>
      %248 = arith.divf %246, %247 : vector<16x1xf32>
      %249 = vector.broadcast %248 : vector<16x1xf32> to vector<16x32xf32>
      %250 = arith.subf %238, %249 : vector<16x32xf32>
      %251 = arith.mulf %250, %250 : vector<16x32xf32>
      %cst_113 = arith.constant dense<0.000000e+00> : vector<16xf32>
      %252 = vector.multi_reduction <add>, %251, %cst_113 [1] : vector<16x32xf32> to vector<16xf32>
      %253 = vector.shape_cast %252 : vector<16xf32> to vector<16x1xf32>
      %cst_114 = arith.constant 3.200000e+01 : f32
      %254 = vector.broadcast %cst_114 : f32 to vector<16x1xf32>
      %255 = arith.divf %253, %254 : vector<16x1xf32>
      %cst_115 = arith.constant 9.99999974E-6 : f32
      %256 = vector.broadcast %cst_115 : f32 to vector<16x1xf32>
      %257 = arith.addf %255, %256 : vector<16x1xf32>
      %258 = math.rsqrt %257 : vector<16x1xf32>
      %259 = vector.broadcast %258 : vector<16x1xf32> to vector<16x32xf32>
      %260 = arith.mulf %250, %259 : vector<16x32xf32>
      %261 = vector.broadcast %243 : vector<1x32xf32> to vector<16x32xf32>
      %262 = arith.mulf %260, %261 : vector<16x32xf32>
      %263 = vector.broadcast %244 : vector<1x32xf32> to vector<16x32xf32>
      %264 = arith.addf %262, %263 : vector<16x32xf32>
      %265 = vector.shape_cast %264 : vector<16x32xf32> to vector<2x8x32xf32>
      %c0_116 = arith.constant 0 : index
      %c0_117 = arith.constant 0 : index
      %c0_118 = arith.constant 0 : index
      %266 = vector.load %arg25[%c0_116, %c0_117, %c0_118] : memref<2x8x32xf32, #tpu.memory_space<vmem>>, vector<2x8x32xf32>
      tpu.vector_store %arg25[%c0_116, %c0_117, %c0_118], %265 {strides = array<i32>} : memref<2x8x32xf32, #tpu.memory_space<vmem>>, vector<2x8x32xf32>,
    } else {
    }
    return
  }
  func.func @transform_0(%arg0: i32, %arg1: i32) -> (i32, i32, i32) {
    %c0_i32 = arith.constant 0 : i32
    %c0_i32_0 = arith.constant 0 : i32
    %c0_i32_1 = arith.constant 0 : i32
    return %arg0, %c0_i32, %c0_i32_0 : i32, i32, i32
  }
  func.func @transform_1(%arg0: i32, %arg1: i32) -> (i32, i32, i32) {
    %c0_i32 = arith.constant 0 : i32
    %c0_i32_0 = arith.constant 0 : i32
    %c0_i32_1 = arith.constant 0 : i32
    return %arg0, %c0_i32, %c0_i32_0 : i32, i32, i32
  }
  func.func @transform_2(%arg0: i32, %arg1: i32) -> (i32, i32, i32) {
    %c0_i32 = arith.constant 0 : i32
    %c0_i32_0 = arith.constant 0 : i32
    %c0_i32_1 = arith.constant 0 : i32
    return %arg1, %c0_i32, %c0_i32_0 : i32, i32, i32
  }
  func.func @transform_3(%arg0: i32, %arg1: i32) -> (i32, i32, i32) {
    %c0_i32 = arith.constant 0 : i32
    %c0_i32_0 = arith.constant 0 : i32
    %c0_i32_1 = arith.constant 0 : i32
    return %arg1, %c0_i32, %c0_i32_0 : i32, i32, i32
  }
  func.func @transform_4(%arg0: i32, %arg1: i32) -> (i32, i32, i32) {
    %c0_i32 = arith.constant 0 : i32
    %c0_i32_0 = arith.constant 0 : i32
    %c0_i32_1 = arith.constant 0 : i32
    return %arg1, %c0_i32, %c0_i32_0 : i32, i32, i32
  }
  func.func @transform_5(%arg0: i32, %arg1: i32) -> (i32, i32, i32) {
    %c0_i32 = arith.constant 0 : i32
    %c0_i32_0 = arith.constant 0 : i32
    %c0_i32_1 = arith.constant 0 : i32
    return %arg1, %c0_i32, %c0_i32_0 : i32, i32, i32
  }
  func.func @transform_6(%arg0: i32, %arg1: i32) -> (i32, i32, i32) {
    %c0_i32 = arith.constant 0 : i32
    %c0_i32_0 = arith.constant 0 : i32
    %c0_i32_1 = arith.constant 0 : i32
    return %arg1, %c0_i32, %c0_i32_0 : i32, i32, i32
  }
  func.func @transform_7(%arg0: i32, %arg1: i32) -> (i32, i32, i32) {
    %c0_i32 = arith.constant 0 : i32
    %c0_i32_0 = arith.constant 0 : i32
    %c0_i32_1 = arith.constant 0 : i32
    return %arg1, %c0_i32, %c0_i32_0 : i32, i32, i32
  }
  func.func @transform_8(%arg0: i32, %arg1: i32) -> (i32, i32, i32) {
    %c0_i32 = arith.constant 0 : i32
    %c0_i32_0 = arith.constant 0 : i32
    %c0_i32_1 = arith.constant 0 : i32
    return %arg1, %c0_i32, %c0_i32_0 : i32, i32, i32
  }
  func.func @transform_9(%arg0: i32, %arg1: i32) -> (i32, i32, i32) {
    %c0_i32 = arith.constant 0 : i32
    %c0_i32_0 = arith.constant 0 : i32
    %c0_i32_1 = arith.constant 0 : i32
    return %arg1, %c0_i32, %c0_i32_0 : i32, i32, i32
  }
  func.func @transform_10(%arg0: i32, %arg1: i32) -> (i32, i32, i32) {
    %c0_i32 = arith.constant 0 : i32
    %c0_i32_0 = arith.constant 0 : i32
    %c0_i32_1 = arith.constant 0 : i32
    return %arg1, %c0_i32, %c0_i32_0 : i32, i32, i32
  }
  func.func @transform_11(%arg0: i32, %arg1: i32) -> (i32, i32, i32) {
    %c0_i32 = arith.constant 0 : i32
    %c0_i32_0 = arith.constant 0 : i32
    %c0_i32_1 = arith.constant 0 : i32
    return %arg1, %c0_i32, %c0_i32_0 : i32, i32, i32
  }
  func.func @transform_12(%arg0: i32, %arg1: i32) -> (i32, i32, i32) {
    %c0_i32 = arith.constant 0 : i32
    %c0_i32_0 = arith.constant 0 : i32
    %c0_i32_1 = arith.constant 0 : i32
    return %arg1, %c0_i32, %c0_i32_0 : i32, i32, i32
  }
  func.func @transform_13(%arg0: i32, %arg1: i32) -> (i32, i32, i32) {
    %c0_i32 = arith.constant 0 : i32
    %c0_i32_0 = arith.constant 0 : i32
    %c0_i32_1 = arith.constant 0 : i32
    return %arg1, %c0_i32, %c0_i32_0 : i32, i32, i32
  }
  func.func @transform_14(%arg0: i32, %arg1: i32) -> (i32, i32, i32) {
    %c0_i32 = arith.constant 0 : i32
    %c0_i32_0 = arith.constant 0 : i32
    %c0_i32_1 = arith.constant 0 : i32
    return %arg1, %c0_i32, %c0_i32_0 : i32, i32, i32
  }
  func.func @transform_15(%arg0: i32, %arg1: i32) -> (i32, i32, i32) {
    %c0_i32 = arith.constant 0 : i32
    %c0_i32_0 = arith.constant 0 : i32
    %c0_i32_1 = arith.constant 0 : i32
    return %arg1, %c0_i32, %c0_i32_0 : i32, i32, i32
  }
  func.func @transform_16(%arg0: i32, %arg1: i32) -> (i32, i32, i32) {
    %c0_i32 = arith.constant 0 : i32
    %c0_i32_0 = arith.constant 0 : i32
    %c0_i32_1 = arith.constant 0 : i32
    return %arg1, %c0_i32, %c0_i32_0 : i32, i32, i32
  }
  func.func @transform_17(%arg0: i32, %arg1: i32) -> (i32, i32, i32) {
    %c0_i32 = arith.constant 0 : i32
    %c0_i32_0 = arith.constant 0 : i32
    %c0_i32_1 = arith.constant 0 : i32
    return %arg1, %c0_i32, %c0_i32_0 : i32, i32, i32
  }
  func.func @transform_18(%arg0: i32, %arg1: i32) -> (i32, i32, i32) {
    %c0_i32 = arith.constant 0 : i32
    %c0_i32_0 = arith.constant 0 : i32
    %c0_i32_1 = arith.constant 0 : i32
    return %arg1, %c0_i32, %c0_i32_0 : i32, i32, i32
  }
  func.func @transform_19(%arg0: i32, %arg1: i32) -> (i32, i32, i32) {
    %c0_i32 = arith.constant 0 : i32
    %c0_i32_0 = arith.constant 0 : i32
    %c0_i32_1 = arith.constant 0 : i32
    return %arg1, %c0_i32, %c0_i32_0 : i32, i32, i32
  }
  func.func @transform_20(%arg0: i32, %arg1: i32) -> (i32, i32, i32) {
    %c0_i32 = arith.constant 0 : i32
    %c0_i32_0 = arith.constant 0 : i32
    %c0_i32_1 = arith.constant 0 : i32
    return %arg1, %c0_i32, %c0_i32_0 : i32, i32, i32
  }
  func.func @transform_21(%arg0: i32, %arg1: i32) -> (i32, i32) {
    %c0_i32 = arith.constant 0 : i32
    %c0_i32_0 = arith.constant 0 : i32
    %c0_i32_1 = arith.constant 0 : i32
    return %c0_i32, %c0_i32_0 : i32, i32
  }
  func.func @transform_22(%arg0: i32, %arg1: i32) -> (i32, i32) {
    %c0_i32 = arith.constant 0 : i32
    %c0_i32_0 = arith.constant 0 : i32
    %c0_i32_1 = arith.constant 0 : i32
    return %c0_i32, %c0_i32_0 : i32, i32
  }
  func.func @transform_23(%arg0: i32, %arg1: i32) -> (i32, i32, i32) {
    %c0_i32 = arith.constant 0 : i32
    %c0_i32_0 = arith.constant 0 : i32
    %c0_i32_1 = arith.constant 0 : i32
    return %arg0, %c0_i32, %c0_i32_0 : i32, i32, i32
  }
}

</mosaic_0001>

<bundles_post_ra>
// kernel: _lambda_.2
= control target key start
LH: loop header
LB: loop body
LE: loop exit
PB: predicated region body
PF: predicated region fallthrough
CT: control target
= control target key end

     0   :  { %s3089_s18 = smov 0   ;;  %s3091_s19 = smov 0   ;;  %s3531_s0 = inlined_call_operand.vmem [shape: f32[2,8,32], index: 0, kind: input, shape index: {}]   ;;  %s3532_s1 = inlined_call_operand.vmem [shape: f32[2,1,32], index: 1, kind: input, shape index: {}, may-alias: {1,7}]   ;;  %s3533_s2 = inlined_call_operand.vmem [shape: f32[2,1,32], index: 2, kind: input, shape index: {}, may-alias: {2,8}]   ;;  %s3534_s3 = inlined_call_operand.vmem [shape: bf16[2,96,32], index: 3, kind: input, shape index: {}]   ;;  %s3535_s4 = inlined_call_operand.vmem [shape: bf16[2,4,32], index: 4, kind: input, shape index: {}]   ;;  %s3536_s5 = inlined_call_operand.vmem [shape: bf16[2,32,32], index: 5, kind: input, shape index: {}]   ;;  %s3537_s6 = inlined_call_operand.vmem [shape: f32[2,1,32], index: 6, kind: input, shape index: {}]   ;;  %s3538_s7 = inlined_call_operand.vmem [shape: f32[2,1,32], index: 7, kind: input, shape index: {}, may-alias: {1,7}]   ;;  %s3539_s8 = inlined_call_operand.vmem [shape: f32[2,1,32], index: 8, kind: input, shape index: {}, may-alias: {2,8}]   ;;  %s3540_s9 = inlined_call_operand.vmem [shape: bf16[2,32,64], index: 9, kind: input, shape index: {}]   ;;  %s3541_s10 = inlined_call_operand.vmem [shape: f32[2,1,64], index: 10, kind: input, shape index: {}]   ;;  %s3542_s11 = inlined_call_operand.vmem [shape: bf16[2,64,32], index: 11, kind: input, shape index: {}]   ;;  %s3543_s12 = inlined_call_operand.vmem [shape: f32[2,1,32], index: 12, kind: input, shape index: {}]   ;;  %s3544_s13 = inlined_call_operand.vmem [shape: f32[1,32], index: 13, kind: input, shape index: {}]   ;;  %s3545_s14 = inlined_call_operand.vmem [shape: f32[1,32], index: 14, kind: input, shape index: {}]   ;;  %s3546_s15 = inlined_call_operand.vmem [shape: f32[2,8,32], index: 15, kind: output, shape index: {}]  }
   0x1   :  { %3550 = sst [smem:[#allocation6_spill]] %s3533_s2  ;;  %s3093_s20 = smov 0  }
   0x2   :  { %3551 = sst [smem:[#allocation7_spill]] %s3534_s3 }
   0x3   :  { %3552 = sst [smem:[#allocation8_spill]] %s3535_s4 }
   0x4   :  { %3553 = sst [smem:[#allocation9_spill]] %s3536_s5 }
   0x5   :  { %3554 = sst [smem:[#allocation10_spill]] %s3544_s13 }
   0x6   :  { %3555 = sst [smem:[#allocation11_spill]] %s3545_s14 }
   0x7   :  { %3556 = sst [smem:[#allocation12_spill]] %s3546_s15 }
   0x8 LB: > { %3557 = sst [smem:[#allocation3_spill]] %s2999_s19  ;;  %s34_s21 = sadd.s32 1, %s2999_s19  ;;  %s3003_s20 = sphi %s3093_s20, %s25_s20   ;;  %s2999_s19 = sphi %s3091_s19, %s3573_s19   ;;  %s2995_s18 = sphi %s3089_s18, %s3572_s18  }
   0x9   : > { %3558 = sst [smem:[#allocation4_spill]] %s3003_s20  ;;  %p2617_p0 = scmp.ge.s32.totalorder %s3003_s20, 1 }
   0xa   : > { %p35_p1 = scmp.ge.s32.totalorder %s34_s21, 2  ;;  %p555_p2 = scmp.lt.s32.totalorder %s3003_s20, 3 }
   0xc   : > { %s3575_s21 = smov (%p35_p1, %s34_s21), 0  ;;  %p556_p3 = pnand %p2617_p0, %p555_p2 }
   0xd   : > { %3559 = sst [smem:[#allocation5_spill]] %s3575_s21  ;;  %p654_p4 = scmp.lt.s32.totalorder (!%p556_p3), %s2995_s18, 1 }
   0xe   : > { %559 = sbr.rel (%p556_p3) target bundleno = 3746 (0xea2), region = 80  ;;  %s3561_s4 = sld [smem:[#allocation8_spill]] (!%p556_p3) }
   0xf   : > { %s3562_s3 = sld [smem:[#allocation7_spill]] (!%p556_p3)  ;;  %s3563_s5 = sld [smem:[#allocation9_spill]] (!%p556_p3) }
  0x10   : > { %p2626_p5 = scmp.ne.s32.totalorder (!%p556_p3), %s2995_s18, 0 }
  0x15   : > { %s3111_s22 = scalar_select %p654_p4, %s2995_s18, 1 }
  0x16   : > { %v710_v0 = vld [vmem:[%s3531_s0] sm:$0xff] (!%p2626_p5)  ;;  %vm712_vm0 = vcmask (!%p2626_p5), 261120   ;;  %v711_v1 = vld [vmem:[%s3531_s0 + $0x8] sm:$0xff] (!%p2626_p5) }
  0x17   : > { %s2893_s29 = smul.u32 48, %s3111_s22  ;;  %s2619_s30 = sshll.u32 %s3111_s22, 1  ;;  %713 = vst.msk [vmem:[#allocation2] sm:$0xff] (!%p2626_p5), %vm712_vm0, %v710_v0  ;;  %714 = vst.msk [vmem:[#allocation2 + $0x8] sm:$0xff] (!%p2626_p5), %vm712_vm0, %v711_v1 }
  0x18   : > { %s3126_s23 = scalar_lea.vmem %s3561_s4, %s2619_s30  ;;  %s2682_s24 = sshll.u32 %s3111_s22, 4 }
  0x19   : > { %s3132_s20 = scalar_lea.vmem %s3562_s3, %s2893_s29  ;;  %s3137_s25 = scalar_lea.vmem %s3563_s5, %s2682_s24 }
  0x1a   : > { %s679_s30 = scalar_lea.vmem %s3538_s7, %s3111_s22  ;;  %s682_s4 = scalar_lea.vmem %s3539_s8, %s3111_s22 }
  0x1b   : > { %s3154_s29 = scalar_lea.vmem %s3540_s9, %s2682_s24  ;;  %s690_s3 = scalar_lea.vmem %s3541_s10, %s3111_s22 }
  0x1c   : > { %s2684_s5 = sshll.u32 %s3111_s22, 5  ;;  %s698_s16 = scalar_lea.vmem %s3543_s12, %s3111_s22 }
  0x1d   : > { %s3164_s28 = scalar_lea.vmem %s3542_s11, %s2684_s5  ;;  %709 = sbr.rel (%p2626_p5) target bundleno = 36 (0x24), region = 84 }
  0x24 PF: > { %v3177_v2 = vld [vmem:[#allocation2] sm:$0xff]  ;;  %vm719_vm1 = vcmask 261120   ;;  %v3179_v3 = vld [vmem:[#allocation2 + $0x8] sm:$0xff]  ;;  %v3005_v16 = vmov 0.0   ;;  %s3564_s15 = scalar_lea.vmem %s3532_s1, %s3111_s22  ;;  %s3565_s2 = sld [smem:[#allocation6_spill]]  ;;  %v2925_v37 = vld [vmem:[%s3132_s20 + $0x10] sm:$0xff]  }
  0x25   : > { %v720_v4 = vsel %vm719_vm1, %v3177_v2, 0.0  ;;  %v723_v5 = vsel %vm719_vm1, %v3179_v3, 0.0  ;;  %2754 = vmatprep.subr.bf16.mxu1 %v3005_v16  ;;  %v2923_v17 = vld [vmem:[%s3132_s20] sm:$0xff]   ;;  %v2924_v36 = vld [vmem:[%s3132_s20 + $0x8] sm:$0xff]   ;;  %v2926_v38 = vld [vmem:[%s3132_s20 + $0x18] sm:$0xff]   ;;  %vm3006_vm2 = vmmov 0   ;;  %s3567_s17 = scalar_lea.vmem %s3537_s6, %s3111_s22 }
  0x26   : > { %721 = vadd.xlane.f32.xlu0 %v720_v4  ;;  %2742 = vmatprep.mubr.msk.bf16.mxu0 %vm719_vm1, %v2923_v17  ;;  %v2627_v26 = vld [vmem:[%s3564_s15] ss:$0 sm:$0xff]  ;;  %v2928_v41 = vld [vmem:[%s3132_s20 + $0x28] sm:$0xff]   ;;  %vm1034_vm3 = vcmask 1043456   ;;  %vm1030_vm4 = vcmask 64512   ;;  %vm2326_vm5 = vcmask 523264  }
  0x27   : > { %v908_v39 = vld [vmem:[%s3126_s23] sm:$0x3]  ;;  %2756 = vmatprep.mubr.msk.bf16.mxu1 %vm3006_vm2, %v3005_v16  ;;  %p2675_p6 = scmp.ne.s32.totalorder %s2995_s18, 1 }
  0x28   : > { %v2927_v40 = vld [vmem:[%s3132_s20 + $0x20] sm:$0xff]   ;;  %s3008_s20 = smov 120   ;;  %s3569_s15 = sld [smem:[#allocation11_spill]] (!%p2675_p6) }
  0x2a   : > { %724 = vadd.xlane.f32.xlu0 %v723_v5  ;;  %s3566_s13 = scalar_lea.vmem %s3565_s2, %s3111_s22  ;;  %s3568_s22 = sld [smem:[#allocation10_spill]] (!%p2675_p6) }
  0x2b   : > { %v2628_v30 = vld [vmem:[%s3566_s13] ss:$0 sm:$0xff]  ;;  %s3570_s2 = sld [smem:[#allocation12_spill]] (!%p2675_p6) }
  0xb3   : > { %v722_v6 = vpop.xlane.xlu0 %721 }
  0xb4   : > { %v727_v7 = vmul.f32 0.03125, %v722_v6 }
  0xb6   : > { %v729_v8 = vsub.f32 %v3177_v2, %v727_v7 }
  0xb7   : > { %v725_v9 = vpop.xlane.xlu0 %724 }
  0xb8   : > { %v728_v10 = vmul.f32 0.03125, %v725_v9  ;;  %v731_v11 = vmul.f32 %v729_v8, %v729_v8 }
  0xba   : > { %v730_v12 = vsub.f32 %v3179_v3, %v728_v10  ;;  %v733_v13 = vsel %vm719_vm1, %v731_v11, 0.0 }
  0xbb   : > { %734 = vadd.xlane.f32.xlu1 %v733_v13 }
  0xbc   : > { %v732_v14 = vmul.f32 %v730_v12, %v730_v12 }
  0xbe   : > { %v736_v15 = vsel %vm719_vm1, %v732_v14, 0.0  ;;  %v973_v14 = vlaneseq }
  0xbf   : > { %737 = vadd.xlane.f32.xlu1 %v736_v15 }
  0xc0   : > { %v974_v17 = vshrl.u32 %v973_v14, 7 }
 0x148   : > { %v735_v18 = vpop.xlane.xlu1 %734 }
 0x149   : > { %v739_v19 = vmul.f32 0.03125, %v735_v18 }
 0x14b   : > { %v741_v20 = vadd.f32 1e-05, %v739_v19 }
 0x14c   : > { %v738_v21 = vpop.xlane.xlu1 %737 }
 0x14d   : > { %2937 = vrsqrt.f32 %v741_v20  ;;  %v740_v22 = vmul.f32 0.03125, %v738_v21  ;;  %v996_v21 = vsub.s32 0, %v974_v17 }
 0x14f   : > { %v742_v23 = vadd.f32 1e-05, %v740_v22 }
 0x151   : > { %2939 = vrsqrt.f32 %v742_v23 }
 0x157   : > { %v2938_v24 = vpop.eup %2937 }
 0x158   : > { %v745_v25 = vmul.f32 %v2938_v24, %v729_v8 }
 0x15a   : > { %v753_v29 = vmul.f32 %v2627_v26, %v745_v25 }
 0x15b   : > { %v2940_v27 = vpop.eup %2939 }
 0x15c   : > { %v746_v28 = vmul.f32 %v2940_v27, %v730_v12  ;;  %v761_v32 = vadd.f32 %v2628_v30, %v753_v29  ;;  %v3007_v12 = vmov 1966171168  }
 0x15d   : > { %v971_v13 = vunpack.c.l.s4 %v3007_v12 }
 0x15e   : > { %v754_v31 = vmul.f32 %v2627_v26, %v746_v28 }
 0x15f   : > { %v972_v15 = vunpack.c.0.s8 %v971_v13 }
 0x160   : > { %v762_v33 = vadd.f32 %v2628_v30, %v754_v31 }
 0x161   : > { %v975_v18 = vsub.s32 %v972_v15, %v974_v17 }
 0x162   : > { %v763_v34 = vpack.c.bf16 %v762_v33, %v761_v32 }
 0x164   : > { %2892 = vmatprep.subr.msk.bf16.mxu0 %vm719_vm1, %v763_v34  ;;  %v825_v35 = vsel %vm719_vm1, %v763_v34, 0 }
 0x165   : > { %2741 = vmatpush3.bf16.xpose.msra.mxu0 %v825_v35  ;;  %2755 = vmatpush3.bf16.xpose.msra.mxu1 %v825_v35 }
 0x166   : > { %2760 = vmatprep.subr.bf16.mxu1 %v3005_v16  ;;  %2772 = vmatprep.subr.bf16.mxu0 %v3005_v16 }
 0x16c   : > { %2743 = vmatmul.mubr.msk.bf16.vlgmr.msra.gmra.mrb[0].mxu0 %vm719_vm1, %v2924_v36  ;;  %2757 = vmatmul.mubr.msk.bf16.vlgmr.msra.gmra.mrb[0].mxu1 %vm719_vm1, %v908_v39 }
 0x16d   : > { %2746 = vmatprep.mubr.msk.bf16.mxu0 %vm719_vm1, %v2925_v37  ;;  %2762 = vmatprep.mubr.msk.bf16.mxu1 %vm3006_vm2, %v3005_v16 }
 0x174   : > { %2747 = vmatmul.mubr.msk.bf16.gmra.mrb[4].mxu0 %vm719_vm1, %v2926_v38 }
 0x175   : > { %2750 = vmatprep.mubr.msk.bf16.mxu0 %vm719_vm1, %v2927_v40 }
 0x17c   : > { %2751 = vmatmul.mubr.msk.bf16.gmra.mrb[8].mxu0 %vm719_vm1, %v2928_v41 }
 0x17d   : > { %2774 = vmatprep.mubr.msk.bf16.mxu0 %vm3006_vm2, %v3005_v16 }
 0x23f   : > { %v2744_v42 = vpop.f32.mrb[0].mxu0  ;;  %v946_v58 = vpop.f32.mrb[0].mxu1 }
 0x240   : > { %v861_v43 = vpop.f32.mrb[1].mxu0  ;;  %v3229_v48 = vpack.c.bf16 %v2744_v42, %v2744_v42  ;;  %v2758_v59 = vpop.f32.mrb[1].mxu1  ;;  %v976_v19 = vrot.slane %v946_v58, %v975_v18 }
 0x241   : > { %v3224_v44 = vpack.c.bf16 %v861_v43, %v861_v43  ;;  %v2745_v45 = vpop.f32.mrb[2].mxu0  ;;  %v949_v61 = vpop.f32.mrb[2].mxu1 }
 0x242   : > { %v864_v46 = vpop.f32.mrb[3].mxu0  ;;  %v3232_v49 = vpack.c.bf16 %v2745_v45, %v2745_v45  ;;  %v2759_v62 = vpop.f32.mrb[3].mxu1  ;;  %v984_v20 = vrot.slane %v976_v19, %v975_v18  ;;  %v977_v22 = vcombine.high %v976_v19, %v976_v19 }
 0x243   : > { %v3226_v47 = vpack.c.bf16 %v864_v46, %v864_v46  ;;  %1014 = vxpose.xlu0.c.b16.start.end [1/1] (short) (narrow) %v3224_v44, 16 }
 0x244   : > { %v3276_v23 = vrot.slane %v984_v20, %v996_v21  ;;  %v992_v24 = vcombine.high %v984_v20, %v984_v20  ;;  %v991_v32 = vrot.slane %v977_v22, %v975_v18 }
 0x245   : > { %1078 = vxpose.xlu1.c.b16.start.end [1/1] (short) (narrow) %v3226_v47, 16 }
 0x246   : > { %v3280_v31 = vrot.slane %v992_v24, %v996_v21  ;;  %v3283_v37 = vrot.slane %v991_v32, %v996_v21 }
 0x247   : > { %1140 = vxpose.xlu0.c.b16.start.end [1/1] (short) (narrow) %v3229_v48, 16  ;;  %v2748_v50 = vpop.f32.mrb[4].mxu0 }
 0x248   : > { %v3235_v51 = vpack.c.bf16 %v2748_v50, %v2748_v50  ;;  %v877_v52 = vpop.f32.mrb[5].mxu0  ;;  %v993_v50 = vcombine.high %v991_v32, %v991_v32 }
 0x249   : > { %1202 = vxpose.xlu1.c.b16.start.end [1/1] (short) (narrow) %v3232_v49, 16  ;;  %v3238_v53 = vpack.c.bf16 %v877_v52, %v877_v52  ;;  %v2749_v54 = vpop.f32.mrb[6].mxu0 }
 0x24a   : > { %v1160_v55 = vsel %vm1034_vm3, %v3235_v51, 0  ;;  %v880_v56 = vpop.f32.mrb[7].mxu0  ;;  %v3256_v5 = vpack.c.bf16 %v2749_v54, %v2749_v54  ;;  %v3288_v52 = vrot.slane %v993_v50, %v996_v21 }
 0x24b   : > { %v1036_v57 = vsel %vm1034_vm3, %v3238_v53, 0  ;;  %2773 = vmatpush3.bf16.msra.mxu0 %v1160_v55  ;;  %v3248_v63 = vpack.c.bf16 %v880_v56, %v880_v56 }
 0x24c   : > { %2761 = vmatpush3.bf16.msra.mxu1 %v1036_v57  ;;  %2784 = vmatprep.subr.bf16.mxu0 %v3005_v16  ;;  %v1222_v7 = vsel %vm1034_vm3, %v3256_v5, 0 }
 0x24d   : > { %2766 = vmatprep.subr.bf16.mxu1 %v3005_v16  ;;  %v1098_v1 = vsel %vm1034_vm3, %v3248_v63, 0 }
 0x24f   : > { %v3246_v60 = vpop.f32.mrb[8].mxu0 }
 0x250   : > { %v3270_v9 = vpop.f32.mrb[9].mxu0 }
 0x251   : > { %v3272_v10 = vpop.f32.mrb[10].mxu0 }
 0x252   : > { %v3274_v11 = vpop.f32.mrb[11].mxu0 }
 0x2a9   : > { %v1022_v0 = vpop.trf.xlu0 }
 0x2aa   : > { %2763 = vmatmul.mubr.msk.bf16.vlgmr.msra.gmra.mrb[4].mxu1 %vm1030_vm4, %v1022_v0 }
 0x2ab   : > { %2767 = vmatpush3.bf16.msra.mxu1 %v1098_v1  ;;  %2768 = vmatprep.mubr.msk.bf16.mxu1 %vm3006_vm2, %v3005_v16  ;;  %v1086_v6 = vpop.trf.xlu1 }
 0x2ac   : > { %2778 = vmatprep.subr.bf16.mxu1 %v3005_v16 }
 0x2ad   : > { %v1148_v4 = vpop.trf.xlu0 }
 0x2ae   : > { %2775 = vmatmul.mubr.msk.bf16.vlgmr.msra.gmra.mrb[12].mxu0 %vm1030_vm4, %v1148_v4 }
 0x2af   : > { %2786 = vmatprep.mubr.msk.bf16.mxu0 %vm3006_vm2, %v3005_v16  ;;  %v1210_v8 = vpop.trf.xlu1 }
 0x2b2   : > { %2769 = vmatmul.mubr.msk.bf16.vlgmr.msra.gmra.mrb[8].mxu1 %vm1030_vm4, %v1086_v6 }
 0x2b3   : > { %2779 = vmatpush3.bf16.msra.mxu1 %v1222_v7  ;;  %2780 = vmatprep.mubr.msk.bf16.mxu1 %vm3006_vm2, %v3005_v16 }
 0x2b4   : > { %2790 = vmatprep.subr.bf16.mxu1 %v3005_v16 }
 0x2ba   : > { %2781 = vmatmul.mubr.msk.bf16.vlgmr.msra.gmra.mrb[12].mxu1 %vm1030_vm4, %v1210_v8 }
 0x2bb   : > { %2792 = vmatprep.mubr.msk.bf16.mxu1 %vm3006_vm2, %v3005_v16 }
 0x37d   : > { %v1072_v25 = vpop.f32.mrb[4].mxu1 }
 0x37e   : > { %v1073_v26 = vadd.f32 %v1072_v25, %v3276_v23  ;;  %v2764_v27 = vpop.f32.mrb[5].mxu1 }
 0x37f   : > { %v1075_v28 = vpop.f32.mrb[6].mxu1 }
 0x380   : > { %v2765_v29 = vpop.f32.mrb[7].mxu1  ;;  %v1264_v30 = vsel %vm1030_vm4, %v1073_v26, -inf }
 0x381   : > { %1265 = vmax.xlane.f32.xlu0 %v1264_v30  ;;  %v1196_v33 = vpop.f32.mrb[12].mxu0 }
 0x382   : > { %v1197_v34 = vadd.f32 %v1196_v33, %v3280_v31  ;;  %v2776_v35 = vpop.f32.mrb[13].mxu0 }
 0x383   : > { %v1199_v36 = vpop.f32.mrb[14].mxu0 }
 0x384   : > { %v1270_v38 = vsel %vm1030_vm4, %v1197_v34, -inf  ;;  %v2777_v39 = vpop.f32.mrb[15].mxu0 }
 0x385   : > { %v1134_v40 = vpop.f32.mrb[8].mxu1  ;;  %1271 = vmax.xlane.f32.xlu0 %v1270_v38 }
 0x386   : > { %v1135_v41 = vadd.f32 %v1134_v40, %v3283_v37  ;;  %v2770_v42 = vpop.f32.mrb[9].mxu1 }
 0x387   : > { %v1137_v43 = vpop.f32.mrb[10].mxu1  ;;  %v3332_v42 = vpack.c.bf16 %v3246_v60, %v3246_v60 }
 0x388   : > { %v2771_v45 = vpop.f32.mrb[11].mxu1  ;;  %v1267_v46 = vsel %vm1030_vm4, %v1135_v41, -inf  ;;  %v3336_v43 = vpack.c.bf16 %v3274_v11, %v3274_v11  ;;  %v3354_v11 = vpack.c.bf16 %v3272_v10, %v3272_v10 }
 0x389   : > { %1268 = vmax.xlane.f32.xlu1 %v1267_v46 }
 0x38d   : > { %v1258_v54 = vpop.f32.mrb[12].mxu1 }
 0x38e   : > { %v1259_v55 = vadd.f32 %v1258_v54, %v3288_v52  ;;  %v2782_v56 = vpop.f32.mrb[13].mxu1 }
 0x38f   : > { %v1261_v57 = vpop.f32.mrb[14].mxu1  ;;  %v3374_v56 = vld [vmem:[%s3137_s25 + $0x8] sm:$0xff]  }
 0x390   : > { %v2783_v58 = vpop.f32.mrb[15].mxu1  ;;  %v1273_v59 = vsel %vm1030_vm4, %v1259_v55, -inf }
 0x391   : > { %1274 = vmax.xlane.f32.xlu1 %v1273_v59 }
 0x40e   : > { %v1266_v61 = vpop.xlane.xlu0 %1265 }
 0x40f   : > { %v1276_v62 = vsub.f32 %v1073_v26, %v1266_v61 }
 0x411   : > { %v1280_v0 = vmul.f32 1.442695, %v1276_v62 }
 0x412   : > { %v1272_v1 = vpop.xlane.xlu0 %1271 }
 0x413   : > { %2941 = vpow2.f32 %v1280_v0  ;;  %v1278_v4 = vsub.f32 %v1197_v34, %v1272_v1  ;;  %v3318_v34 = vpack.c.bf16 %v3270_v9, %v3270_v9 }
 0x415   : > { %v1284_v6 = vmul.f32 1.442695, %v1278_v4 }
 0x416   : > { %v1269_v7 = vpop.xlane.xlu1 %1268 }
 0x417   : > { %2943 = vpow2.f32 %v1284_v6  ;;  %v1277_v8 = vsub.f32 %v1135_v41, %v1269_v7 }
 0x419   : > { %v1282_v12 = vmul.f32 1.442695, %v1277_v8 }
 0x41b   : > { %2945 = vpow2.f32 %v1282_v12 }
 0x41d   : > { %v2942_v13 = vpop.eup %2941 }
 0x41e   : > { %v1275_v14 = vpop.xlane.xlu1 %1274  ;;  %v1288_v15 = vsel %vm1030_vm4, %v2942_v13, 0.0 }
 0x41f   : > { %v1279_v17 = vsub.f32 %v1259_v55, %v1275_v14  ;;  %1289 = vadd.xlane.f32.xlu0 %v1288_v15 }
 0x421   : > { %v2944_v18 = vpop.eup %2943  ;;  %v1286_v19 = vmul.f32 1.442695, %v1279_v17 }
 0x422   : > { %v1294_v20 = vsel %vm1030_vm4, %v2944_v18, 0.0 }
 0x423   : > { %2947 = vpow2.f32 %v1286_v19  ;;  %1295 = vadd.xlane.f32.xlu0 %v1294_v20 }
 0x425   : > { %v2946_v21 = vpop.eup %2945 }
 0x426   : > { %v1291_v22 = vsel %vm1030_vm4, %v2946_v21, 0.0 }
 0x427   : > { %1292 = vadd.xlane.f32.xlu1 %v1291_v22 }
 0x42d   : > { %v2948_v24 = vpop.eup %2947 }
 0x42e   : > { %v1297_v25 = vsel %vm1030_vm4, %v2948_v24, 0.0 }
 0x42f   : > { %1298 = vadd.xlane.f32.xlu1 %v1297_v25 }
 0x439   : > { %1570 = vrot.lane.b32.xlu0 %v3224_v44, %s3008_s20 }
 0x43d   : > { %1590 = vrot.lane.b32.xlu0 %v3238_v53, %s3008_s20 }
 0x440   : > { %1642 = vrot.lane.b32.xlu1 %v3226_v47, %s3008_s20 }
 0x441   : > { %1734 = vrot.lane.b32.xlu0 %v3235_v51, %s3008_s20 }
 0x444   : > { %1714 = vrot.lane.b32.xlu1 %v3229_v48, %s3008_s20 }
 0x448   : > { %1786 = vrot.lane.b32.xlu1 %v3232_v49, %s3008_s20 }
 0x44c   : > { %1662 = vrot.lane.b32.xlu1 %v3248_v63, %s3008_s20 }
 0x450   : > { %1806 = vrot.lane.b32.xlu1 %v3256_v5, %s3008_s20 }
 0x4ac   : > { %v1290_v44 = vpop.xlane.xlu0 %1289 }
 0x4ad   : > { %2949 = vrcp.f32 %v1290_v44 }
 0x4b0   : > { %v1296_v53 = vpop.xlane.xlu0 %1295 }
 0x4b1   : > { %2951 = vrcp.f32 %v1296_v53 }
 0x4b4   : > { %v1293_v47 = vpop.xlane.xlu1 %1292  ;;  %v1571_v26 = vpop.permute.xlu0 %1570 }
 0x4b5   : > { %2953 = vrcp.f32 %v1293_v47  ;;  %1573 = vxpose.xlu1.c.b16.start.end [1/1] (short) (narrow) %v1571_v26, 16 }
 0x4b7   : > { %v2950_v51 = vpop.eup %2949 }
 0x4b8   : > { %v1304_v27 = vmul.f32 %v2950_v51, %v2942_v13  ;;  %v1591_v60 = vpop.permute.xlu0 %1590 }
 0x4ba   : > { %v1308_v48 = vpack.c.bf16 %v1304_v27, %v1304_v27 }
 0x4bb   : > { %v2952_v28 = vpop.eup %2951 }
 0x4bc   : > { %v1299_v29 = vpop.xlane.xlu1 %1298  ;;  %v1316_v49 = vsel %vm1030_vm4, %v1308_v48, 0  ;;  %v1306_v30 = vmul.f32 %v2952_v28, %v2944_v18  ;;  %v1735_v10 = vpop.permute.xlu0 %1734 }
 0x4bd   : > { %2955 = vrcp.f32 %v1299_v29  ;;  %2785 = vmatpush3.bf16.xpose.msra.mxu0 %v1316_v49  ;;  %v1743_v55 = vsel %vm1034_vm3, %v1735_v10, 0 }
 0x4be   : > { %2796 = vmatprep.subr.bf16.mxu0 %v3005_v16  ;;  %v1310_v33 = vpack.c.bf16 %v1306_v30, %v1306_v30 }
 0x4bf   : > { %v2954_v63 = vpop.eup %2953 }
 0x4c0   : > { %v3314_v5 = vpop.permute.xlu1 %1642  ;;  %v1305_v32 = vmul.f32 %v2954_v63, %v2946_v21  ;;  %v1408_v39 = vsel %vm1030_vm4, %v1310_v33, 0 }
 0x4c2   : > { %v1309_v35 = vpack.c.bf16 %v1305_v32, %v1305_v32 }
 0x4c4   : > { %v3320_v36 = vpop.permute.xlu1 %1714  ;;  %2787 = vmatmul.mubr.msk.bf16.vlgmr.msra.gmra.mrb[16].mxu0 %vm1030_vm4, %v3318_v34  ;;  %v1362_v38 = vsel %vm1030_vm4, %v1309_v35, 0 }
 0x4c5   : > { %2791 = vmatpush3.bf16.xpose.msra.mxu1 %v1362_v38  ;;  %2797 = vmatpush3.bf16.xpose.msra.mxu0 %v1408_v39 }
 0x4c6   : > { %2798 = vmatprep.mubr.msk.bf16.mxu0 %vm3006_vm2, %v3005_v16  ;;  %2802 = vmatprep.subr.bf16.mxu1 %v3005_v16 }
 0x4c7   : > { %v2956_v40 = vpop.eup %2955  ;;  %2808 = vmatprep.subr.bf16.mxu0 %v3005_v16 }
 0x4c8   : > { %v1787_v9 = vpop.permute.xlu1 %1786  ;;  %v1307_v41 = vmul.f32 %v2956_v40, %v2948_v24 }
 0x4c9   : > { %1789 = vxpose.xlu1.c.b16.start.end [1/1] (short) (narrow) %v1787_v9, 16 }
 0x4ca   : > { %v1311_v45 = vpack.c.bf16 %v1307_v41, %v1307_v41 }
 0x4cc   : > { %2793 = vmatmul.mubr.msk.bf16.vlgmr.msra.gmra.mrb[16].mxu1 %vm1030_vm4, %v3336_v43  ;;  %2799 = vmatmul.mubr.msk.bf16.vlgmr.msra.gmra.mrb[20].mxu0 %vm1030_vm4, %v3332_v42  ;;  %v1454_v46 = vsel %vm1030_vm4, %v1311_v45, 0 }
 0x4cd   : > { %1664 = vrot.lane.b32.xlu1 %v3283_v37, %s3008_s20  ;;  %2803 = vmatpush3.bf16.xpose.msra.mxu1 %v1454_v46  ;;  %v1599_v37 = vsel %vm1034_vm3, %v1591_v60, 0 }
 0x4ce   : > { %2804 = vmatprep.mubr.msk.bf16.mxu1 %vm3006_vm2, %v3005_v16  ;;  %2816 = vmatprep.subr.bf16.mxu1 %v3005_v16 }
 0x4cf   : > { %2812 = vmatprep.mubr.msk.bf16.mxu0 %vm3006_vm2, %v3005_v16 }
 0x4d1   : > { %1736 = vrot.lane.b32.xlu1 %v3280_v31, %s3008_s20  ;;  %v1663_v31 = vpop.permute.xlu1 %1662 }
 0x4d2   : > { %v1671_v44 = vsel %vm1034_vm3, %v1663_v31, 0 }
 0x4d4   : > { %2805 = vmatmul.mubr.msk.bf16.vlgmr.msra.gmra.mrb[20].mxu1 %vm1030_vm4, %v3354_v11 }
 0x4d5   : > { %1808 = vrot.lane.b32.xlu1 %v3288_v52, %s3008_s20  ;;  %2817 = vmatpush3.bf16.msra.mxu1 %v1599_v37  ;;  %v1807_v50 = vpop.permute.xlu1 %1806  ;;  %v3370_v52 = vld [vmem:[%s3137_s25] sm:$0xff]  }
 0x4d6   : > { %2818 = vmatprep.mubr.msk.bf16.mxu1 %vm3006_vm2, %v3005_v16  ;;  %2828 = vmatprep.subr.bf16.mxu1 %v3005_v16  ;;  %v1815_v47 = vsel %vm1034_vm3, %v1807_v50, 0 }
 0x4d7   : > { %2809 = vmatpush3.bf16.msra.mxu0 %v3370_v52 }
 0x4d8   : > { %2810 = vmatprep.subr.bf16.mxu0 %v3005_v16 }
 0x4db   : > { %2811 = vmatpush3.bf16.msra.mxu0 %v3374_v56 }
 0x4dc   : > { %2822 = vmatprep.subr.bf16.mxu0 %v3005_v16 }
 0x51b   : > { %v1581_v54 = vpop.trf.xlu1 }
 0x51c   : > { %2819 = vmatmul.mubr.msk.bf16.vlgmr.msra.gmra.mrb[24].mxu1 %vm1030_vm4, %v1581_v54 }
 0x51d   : > { %2829 = vmatpush3.bf16.msra.mxu1 %v1743_v55  ;;  %2830 = vmatprep.mubr.msk.bf16.mxu1 %vm3006_vm2, %v3005_v16 }
 0x51e   : > { %2840 = vmatprep.subr.bf16.mxu1 %v3005_v16 }
 0x52f   : > { %v1797_v26 = vpop.trf.xlu1 }
 0x53f   : > { %v1665_v32 = vpop.permute.xlu1 %1664 }
 0x543   : > { %v1737_v39 = vpop.permute.xlu1 %1736 }
 0x547   : > { %v1809_v10 = vpop.permute.xlu1 %1808 }
 0x597   : > { %v1352_v57 = vpop.f32.mrb[16].mxu0 }
 0x598   : > { %v2788_v58 = vpop.f32.mrb[17].mxu0 }
 0x599   : > { %v1355_v59 = vpop.f32.mrb[18].mxu0 }
 0x59a   : > { %v2789_v61 = vpop.f32.mrb[19].mxu0 }
 0x59f   : > { %v1398_v62 = vpop.f32.mrb[16].mxu1  ;;  %v1444_v0 = vpop.f32.mrb[20].mxu0 }
 0x5a0   : > { %v1496_v1 = vpack.c.bf16 %v1398_v62, %v1352_v57  ;;  %v2794_v4 = vpop.f32.mrb[17].mxu1  ;;  %v2800_v6 = vpop.f32.mrb[21].mxu0 }
 0x5a1   : > { %v1401_v7 = vpop.f32.mrb[18].mxu1  ;;  %v1447_v8 = vpop.f32.mrb[22].mxu0 }
 0x5a2   : > { %v2801_v12 = vpop.f32.mrb[23].mxu0  ;;  %1498 = vxpose.xlu0.c.b16.start [1/2] (short) (narrow) %v1496_v1, 16  ;;  %v2795_v13 = vpop.f32.mrb[19].mxu1 }
 0x5a7   : > { %v1490_v14 = vpop.f32.mrb[20].mxu1 }
 0x5a8   : > { %v1497_v15 = vpack.c.bf16 %v1490_v14, %v1444_v0  ;;  %v2806_v17 = vpop.f32.mrb[21].mxu1 }
 0x5a9   : > { %v1493_v18 = vpop.f32.mrb[22].mxu1 }
 0x5aa   : > { %1499 = vxpose.xlu0.c.b16.end [2/2] (short) (narrow) %v1497_v15, 16  ;;  %v2807_v19 = vpop.f32.mrb[23].mxu1 }
 0x5ae   : > { %1645 = vxpose.xlu0.c.b16.start.end [1/1] (short) (narrow) %v3314_v5, 16 }
 0x5b2   : > { %1717 = vxpose.xlu0.c.b16.start.end [1/1] (short) (narrow) %v3320_v36, 16 }
 0x5bb   : > { %1592 = vrot.lane.b32.xlu0 %v3276_v23, %s3008_s20 }
 0x5ef   : > { %v1635_v20 = vpop.f32.mrb[24].mxu1 }
 0x5f0   : > { %v2820_v21 = vpop.f32.mrb[25].mxu1 }
 0x5f1   : > { %v1638_v22 = vpop.f32.mrb[26].mxu1 }
 0x5f2   : > { %v2821_v24 = vpop.f32.mrb[27].mxu1 }
 0x60c   : > { %v1506_v25 = vpop.trf.xlu0 }
 0x60d   : > { %2813 = vmatmul.mubr.msk.bf16.vlgmr.msra.gmra.mrb[24].mxu0 %vm719_vm1, %v1506_v25 }
 0x60e   : > { %2823 = vmatpush3.bf16.msra.mxu0 %v1671_v44  ;;  %2824 = vmatprep.mubr.msk.bf16.mxu0 %vm3006_vm2, %v3005_v16 }
 0x60f   : > { %2834 = vmatprep.subr.bf16.mxu0 %v3005_v16 }
 0x614   : > { %v1653_v53 = vpop.trf.xlu0 }
 0x615   : > { %2825 = vmatmul.mubr.msk.bf16.vlgmr.msra.gmra.mrb[28].mxu0 %vm1030_vm4, %v1653_v53 }
 0x616   : > { %2835 = vmatpush3.bf16.msra.mxu0 %v1815_v47  ;;  %2836 = vmatprep.mubr.msk.bf16.mxu0 %vm3006_vm2, %v3005_v16 }
 0x617   : > { %2846 = vmatprep.subr.bf16.mxu0 %v3005_v16 }
 0x618   : > { %v1725_v23 = vpop.trf.xlu0 }
 0x619   : > { %2831 = vmatmul.mubr.msk.bf16.vlgmr.msra.gmra.mrb[28].mxu1 %vm1030_vm4, %v1725_v23 }
 0x61a   : > { %2842 = vmatprep.mubr.msk.bf16.mxu1 %vm3006_vm2, %v3005_v16 }
 0x61d   : > { %2837 = vmatmul.mubr.msk.bf16.vlgmr.msra.gmra.mrb[32].mxu0 %vm1030_vm4, %v1797_v26 }
 0x61e   : > { %2848 = vmatprep.mubr.msk.bf16.mxu0 %vm3006_vm2, %v3005_v16 }
 0x62d   : > { %v1593_v51 = vpop.permute.xlu0 %1592 }
 0x62e   : > { %v1636_v27 = vadd.f32 %v1635_v20, %v1593_v51 }
 0x630   : > { %v1857_v48 = vsel %vm1030_vm4, %v1636_v27, -inf }
 0x631   : > { %1858 = vmax.xlane.f32.xlu0 %v1857_v48 }
 0x6be   : > { %v1859_v28 = vpop.xlane.xlu0 %1858 }
 0x6bf   : > { %v1869_v30 = vsub.f32 %v1636_v27, %v1859_v28 }
 0x6c1   : > { %v1873_v33 = vmul.f32 1.442695, %v1869_v30 }
 0x6c3   : > { %2957 = vpow2.f32 %v1873_v33 }
 0x6cd   : > { %v2958_v62 = vpop.eup %2957 }
 0x6ce   : > { %v1881_v0 = vsel %vm1030_vm4, %v2958_v62, 0.0 }
 0x6e0   : > { %v3400_v29 = vpop.f32.mrb[24].mxu0 }
 0x6e1   : > { %v2814_v49 = vpop.f32.mrb[25].mxu0 }
 0x6e2   : > { %v1566_v63 = vpop.f32.mrb[26].mxu0 }
 0x6e3   : > { %v2815_v5 = vpop.f32.mrb[27].mxu0 }
 0x6e8   : > { %v1707_v35 = vpop.f32.mrb[28].mxu0 }
 0x6e9   : > { %v1708_v36 = vadd.f32 %v1707_v35, %v1665_v32  ;;  %v2826_v38 = vpop.f32.mrb[29].mxu0 }
 0x6ea   : > { %v1710_v40 = vpop.f32.mrb[30].mxu0 }
 0x6eb   : > { %v2827_v9 = vpop.f32.mrb[31].mxu0  ;;  %v1860_v41 = vsel %vm1030_vm4, %v1708_v36, -inf }
 0x6ec   : > { %1861 = vmax.xlane.f32.xlu1 %v1860_v41  ;;  %v1779_v45 = vpop.f32.mrb[28].mxu1 }
 0x6ed   : > { %v1780_v46 = vadd.f32 %v1779_v45, %v1737_v39  ;;  %v2832_v60 = vpop.f32.mrb[29].mxu1 }
 0x6ee   : > { %v1782_v37 = vpop.f32.mrb[30].mxu1 }
 0x6ef   : > { %v1863_v31 = vsel %vm1030_vm4, %v1780_v46, -inf  ;;  %v2833_v50 = vpop.f32.mrb[31].mxu1 }
 0x6f0   : > { %v1851_v54 = vpop.f32.mrb[32].mxu0  ;;  %1864 = vmax.xlane.f32.xlu0 %v1863_v31 }
 0x6f1   : > { %v1852_v55 = vadd.f32 %v1851_v54, %v1809_v10  ;;  %v2838_v57 = vpop.f32.mrb[33].mxu0 }
 0x6f2   : > { %v1854_v58 = vpop.f32.mrb[34].mxu0 }
 0x6f3   : > { %v1866_v59 = vsel %vm1030_vm4, %v1852_v55, -inf  ;;  %v2839_v61 = vpop.f32.mrb[35].mxu0 }
 0x6f4   : > { %1867 = vmax.xlane.f32.xlu0 %v1866_v59 }
 0x6f8   : > { %1882 = vadd.xlane.f32.xlu0 %v1881_v0 }
 0x779   : > { %v1862_v1 = vpop.xlane.xlu1 %1861 }
 0x77a   : > { %v1870_v4 = vsub.f32 %v1708_v36, %v1862_v1 }
 0x77c   : > { %v1875_v6 = vmul.f32 1.442695, %v1870_v4 }
 0x77d   : > { %v1865_v7 = vpop.xlane.xlu0 %1864 }
 0x77e   : > { %2959 = vpow2.f32 %v1875_v6  ;;  %v1871_v8 = vsub.f32 %v1780_v46, %v1865_v7 }
 0x780   : > { %v1877_v12 = vmul.f32 1.442695, %v1871_v8 }
 0x781   : > { %v1868_v13 = vpop.xlane.xlu0 %1867 }
 0x782   : > { %2961 = vpow2.f32 %v1877_v12  ;;  %v1872_v25 = vsub.f32 %v1852_v55, %v1868_v13 }
 0x784   : > { %v1879_v44 = vmul.f32 1.442695, %v1872_v25 }
 0x785   : > { %v1883_v14 = vpop.xlane.xlu0 %1882 }
 0x786   : > { %2963 = vrcp.f32 %v1883_v14 }
 0x787   : > { %2965 = vpow2.f32 %v1879_v44  ;;  %v2931_v44 = vld [vmem:[%s3154_s29] sm:$0xff]  }
 0x788   : > { %v2960_v15 = vpop.eup %2959 }
 0x789   : > { %v1884_v17 = vsel %vm1030_vm4, %v2960_v15, 0.0 }
 0x78a   : > { %1885 = vadd.xlane.f32.xlu1 %v1884_v17 }
 0x78c   : > { %v2962_v18 = vpop.eup %2961 }
 0x78d   : > { %v1887_v19 = vsel %vm1030_vm4, %v2962_v18, 0.0 }
 0x78e   : > { %1888 = vadd.xlane.f32.xlu0 %v1887_v19 }
 0x790   : > { %v2964_v20 = vpop.eup %2963 }
 0x791   : > { %v1897_v21 = vmul.f32 %v2964_v20, %v2958_v62  ;;  %v2966_v53 = vpop.eup %2965 }
 0x792   : > { %v1890_v47 = vsel %vm1030_vm4, %v2966_v53, 0.0 }
 0x793   : > { %v1901_v22 = vpack.c.bf16 %v1897_v21, %v1897_v21 }
 0x795   : > { %v1912_v24 = vsel %vm1030_vm4, %v1901_v22, 0 }
 0x796   : > { %2841 = vmatpush3.bf16.xpose.msra.mxu1 %v1912_v24 }
 0x797   : > { %2852 = vmatprep.subr.bf16.mxu1 %v3005_v16 }
 0x79b   : > { %1955 = vrot.lane.b32.xlu1 %v3336_v43, %s3008_s20  ;;  %v3424_v43 = vld [vmem:[%s3567_s17] ss:$0 sm:$0xff] }
 0x7a4   : > { %1906 = vrot.lane.b32.xlu0 %v3318_v34, %s3008_s20  ;;  %v2168_v34 = vadd.f32 %v3424_v43, %v3400_v29 }
 0x7a6   : > { %v3429_v23 = vadd.f32 %v2168_v34, %v3177_v2 }
 0x7a8   : > { %v2174_v26 = vsel %vm719_vm1, %v3429_v23, 0.0 }
 0x7bf   : > { %1891 = vadd.xlane.f32.xlu1 %v1890_v47  ;;  %v2934_v47 = vld [vmem:[%s3164_s28 + $0x8] sm:$0xff]  }
 0x7d0   : > { %2004 = vrot.lane.b32.xlu1 %v3332_v42, %s3008_s20 }
 0x7d4   : > { %2053 = vrot.lane.b32.xlu1 %v3354_v11, %s3008_s20 }
 0x7f8   : > { %2175 = vadd.xlane.f32.xlu1 %v2174_v26 }
 0x817   : > { %v1886_v42 = vpop.xlane.xlu1 %1885 }
 0x818   : > { %2967 = vrcp.f32 %v1886_v42 }
 0x81b   : > { %v1889_v51 = vpop.xlane.xlu0 %1888  ;;  %v1956_v5 = vpop.permute.xlu1 %1955 }
 0x81c   : > { %2969 = vrcp.f32 %v1889_v51 }
 0x81f   : > { %v1907_v11 = vpop.permute.xlu0 %1906 }
 0x820   : > { %2843 = vmatmul.mubr.msk.bf16.vlgmr.msra.gmra.mrb[32].mxu1 %vm1030_vm4, %v1907_v11 }
 0x821   : > { %2854 = vmatprep.mubr.msk.bf16.mxu1 %vm3006_vm2, %v3005_v16 }
 0x822   : > { %v2968_v27 = vpop.eup %2967 }
 0x823   : > { %v1898_v48 = vmul.f32 %v2968_v27, %v2960_v15 }
 0x825   : > { %v1902_v28 = vpack.c.bf16 %v1898_v48, %v1898_v48 }
 0x826   : > { %v2970_v29 = vpop.eup %2969 }
 0x827   : > { %v1961_v2 = vsel %vm1030_vm4, %v1902_v28, 0  ;;  %v1899_v49 = vmul.f32 %v2970_v29, %v2962_v18  ;;  %v2663_v28 = vld [vmem:[%s679_s30] ss:$0 sm:$0xff] }
 0x828   : > { %2847 = vmatpush3.bf16.xpose.msra.mxu0 %v1961_v2 }
 0x829   : > { %v1903_v30 = vpack.c.bf16 %v1899_v49, %v1899_v49  ;;  %2858 = vmatprep.subr.bf16.mxu0 %v3005_v16 }
 0x82b   : > { %v2010_v63 = vsel %vm1030_vm4, %v1903_v30, 0  ;;  %v2664_v30 = vld [vmem:[%s682_s4] ss:$0 sm:$0xff] }
 0x82c   : > { %2853 = vmatpush3.bf16.xpose.msra.mxu1 %v2010_v63 }
 0x82d   : > { %2864 = vmatprep.subr.bf16.mxu1 %v3005_v16 }
 0x82f   : > { %2849 = vmatmul.mubr.msk.bf16.vlgmr.msra.gmra.mrb[36].mxu0 %vm1030_vm4, %v1956_v5 }
 0x830   : > { %2860 = vmatprep.mubr.msk.bf16.mxu0 %vm3006_vm2, %v3005_v16 }
 0x84c   : > { %v1892_v32 = vpop.xlane.xlu1 %1891 }
 0x84d   : > { %2971 = vrcp.f32 %v1892_v32 }
 0x850   : > { %v2005_v33 = vpop.permute.xlu1 %2004 }
 0x851   : > { %2855 = vmatmul.mubr.msk.bf16.vlgmr.msra.gmra.mrb[36].mxu1 %vm1030_vm4, %v2005_v33 }
 0x852   : > { %2865 = vmatpush3.bf16.msra.mxu1 %v3370_v52  ;;  %2868 = vmatprep.mubr.msk.bf16.mxu1 %vm3006_vm2, %v3005_v16 }
 0x853   : > { %2866 = vmatprep.subr.bf16.mxu1 %v3005_v16 }
 0x854   : > { %v2054_v40 = vpop.permute.xlu1 %2053 }
 0x856   : > { %2867 = vmatpush3.bf16.msra.mxu1 %v3374_v56 }
 0x857   : > { %v2972_v35 = vpop.eup %2971  ;;  %2880 = vmatprep.subr.bf16.mxu1 %v3005_v16 }
 0x858   : > { %v1900_v36 = vmul.f32 %v2972_v35, %v2966_v53  ;;  %v2932_v53 = vld [vmem:[%s3154_s29 + $0x8] sm:$0xff]   ;;  %v2935_v35 = vld [vmem:[%s3164_s28 + $0x10] sm:$0xff]  }
 0x85a   : > { %v1904_v38 = vpack.c.bf16 %v1900_v36, %v1900_v36  ;;  %v2936_v36 = vld [vmem:[%s3164_s28 + $0x18] sm:$0xff]  }
 0x85c   : > { %v2059_v39 = vsel %vm1030_vm4, %v1904_v38, 0  ;;  %v2665_v38 = vld [vmem:[%s690_s3] ss:$0 sm:$0xff] }
 0x85d   : > { %2859 = vmatpush3.bf16.xpose.msra.mxu0 %v2059_v39 }
 0x85e   : > { %2872 = vmatprep.subr.bf16.mxu0 %v3005_v16 }
 0x864   : > { %2861 = vmatmul.mubr.msk.bf16.vlgmr.msra.gmra.mrb[40].mxu0 %vm1030_vm4, %v2054_v40 }
 0x865   : > { %2876 = vmatprep.mubr.msk.bf16.mxu0 %vm3006_vm2, %v3005_v16  ;;  %2873 = vmatpush3.bf16.msra.mxu0 %v2931_v44 }
 0x866   : > { %2874 = vmatprep.subr.bf16.mxu0 %v3005_v16 }
 0x869   : > { %2875 = vmatpush3.bf16.msra.mxu0 %v2932_v53 }
 0x885   : > { %v2176_v52 = vpop.xlane.xlu1 %2175 }
 0x886   : > { %v2180_v9 = vmul.f32 0.03125, %v2176_v52 }
 0x888   : > { %v2182_v56 = vsub.f32 %v3429_v23, %v2180_v9 }
 0x88a   : > { %v2184_v41 = vmul.f32 %v2182_v56, %v2182_v56 }
 0x88c   : > { %v2186_v45 = vsel %vm719_vm1, %v2184_v41, 0.0 }
 0x88d   : > { %2187 = vadd.xlane.f32.xlu1 %v2186_v45 }
 0x8f3   : > { %v1948_v46 = vpop.f32.mrb[32].mxu1 }
 0x8f4   : > { %v2844_v60 = vpop.f32.mrb[33].mxu1 }
 0x8f5   : > { %v1951_v37 = vpop.f32.mrb[34].mxu1 }
 0x8f6   : > { %v2845_v31 = vpop.f32.mrb[35].mxu1 }
 0x902   : > { %v1997_v50 = vpop.f32.mrb[36].mxu0 }
 0x903   : > { %v2101_v10 = vpack.c.bf16 %v1997_v50, %v1948_v46  ;;  %v2850_v54 = vpop.f32.mrb[37].mxu0 }
 0x904   : > { %v2000_v55 = vpop.f32.mrb[38].mxu0 }
 0x905   : > { %v2851_v57 = vpop.f32.mrb[39].mxu0  ;;  %2103 = vxpose.xlu0.c.b16.start [1/2] (short) (narrow) %v2101_v10, 16 }
 0x924   : > { %v2046_v58 = vpop.f32.mrb[36].mxu1 }
 0x925   : > { %v2856_v59 = vpop.f32.mrb[37].mxu1 }
 0x926   : > { %v2049_v61 = vpop.f32.mrb[38].mxu1 }
 0x927   : > { %v2857_v62 = vpop.f32.mrb[39].mxu1 }
 0x937   : > { %v2095_v0 = vpop.f32.mrb[40].mxu0 }
 0x938   : > { %v2102_v1 = vpack.c.bf16 %v2095_v0, %v2046_v58  ;;  %v2862_v4 = vpop.f32.mrb[41].mxu0 }
 0x939   : > { %v2098_v6 = vpop.f32.mrb[42].mxu0 }
 0x93a   : > { %v2863_v7 = vpop.f32.mrb[43].mxu0  ;;  %2104 = vxpose.xlu0.c.b16.end [2/2] (short) (narrow) %v2102_v1, 16 }
 0x99c   : > { %v2111_v8 = vpop.trf.xlu0 }
 0x99d   : > { %2869 = vmatmul.mubr.msk.bf16.vlgmr.msra.gmra.mrb[40].mxu1 %vm719_vm1, %v2111_v8 }
 0x99e   : > { %2888 = vmatprep.mubr.msk.bf16.mxu1 %vm3006_vm2, %v3005_v16 }
 0xa70   : > { %v2156_v12 = vpop.f32.mrb[40].mxu1 }
 0xa71   : > { %v2169_v13 = vadd.f32 %v3424_v43, %v2156_v12  ;;  %v2870_v14 = vpop.f32.mrb[41].mxu1  ;;  %v2188_v43 = vpop.xlane.xlu1 %2187 }
 0xa72   : > { %v2159_v15 = vpop.f32.mrb[42].mxu1  ;;  %v2192_v34 = vmul.f32 0.03125, %v2188_v43 }
 0xa73   : > { %v3462_v17 = vadd.f32 %v2169_v13, %v3179_v3  ;;  %v2871_v18 = vpop.f32.mrb[43].mxu1  ;;  %v2933_v3 = vld [vmem:[%s3164_s28] sm:$0xff]  }
 0xa74   : > { %2881 = vmatpush3.bf16.msra.mxu1 %v2933_v3  ;;  %v2194_v26 = vadd.f32 1e-05, %v2192_v34 }
 0xa75   : > { %v2177_v19 = vsel %vm719_vm1, %v3462_v17, 0.0  ;;  %2882 = vmatprep.subr.bf16.mxu1 %v3005_v16 }
 0xa76   : > { %2178 = vadd.xlane.f32.xlu0 %v2177_v19  ;;  %2973 = vrsqrt.f32 %v2194_v26 }
 0xa78   : > { %2883 = vmatpush3.bf16.msra.mxu1 %v2934_v47 }
 0xa79   : > { %2884 = vmatprep.subr.bf16.mxu1 %v3005_v16 }
 0xa7c   : > { %2885 = vmatpush3.bf16.msra.mxu1 %v2935_v35 }
 0xa7d   : > { %2886 = vmatprep.subr.bf16.mxu1 %v3005_v16  ;;  %v2669_v16 = vld [vmem:[%s698_s16] ss:$0 sm:$0xff] }
 0xa80   : > { %v2974_v27 = vpop.eup %2973  ;;  %2887 = vmatpush3.bf16.msra.mxu1 %v2936_v36 }
 0xa81   : > { %v2198_v48 = vmul.f32 %v2974_v27, %v2182_v56 }
 0xa83   : > { %v2206_v2 = vmul.f32 %v2663_v28, %v2198_v48 }
 0xa85   : > { %v2214_v5 = vadd.f32 %v2664_v30, %v2206_v2 }
 0xb03   : > { %v2179_v20 = vpop.xlane.xlu0 %2178 }
 0xb04   : > { %v2181_v21 = vmul.f32 0.03125, %v2179_v20 }
 0xb06   : > { %v2183_v22 = vsub.f32 %v3462_v17, %v2181_v21 }
 0xb08   : > { %v2185_v24 = vmul.f32 %v2183_v22, %v2183_v22 }
 0xb0a   : > { %v2189_v25 = vsel %vm719_vm1, %v2185_v24, 0.0 }
 0xb0b   : > { %2190 = vadd.xlane.f32.xlu1 %v2189_v25  ;;  %v2677_v25 = vld [vmem:[%s3569_s15] ss:$0 sm:$0xff] (!%p2675_p6) }
 0xb98   : > { %v2191_v42 = vpop.xlane.xlu1 %2190 }
 0xb99   : > { %v2193_v51 = vmul.f32 0.03125, %v2191_v42 }
 0xb9b   : > { %v2195_v11 = vadd.f32 1e-05, %v2193_v51 }
 0xb9d   : > { %2975 = vrsqrt.f32 %v2195_v11 }
 0xba7   : > { %v2976_v29 = vpop.eup %2975 }
 0xba8   : > { %v2199_v49 = vmul.f32 %v2976_v29, %v2183_v22  ;;  %v2676_v22 = vld [vmem:[%s3568_s22] ss:$0 sm:$0xff] (!%p2675_p6) }
 0xbaa   : > { %v2207_v63 = vmul.f32 %v2663_v28, %v2199_v49 }
 0xbac   : > { %v2215_v32 = vadd.f32 %v2664_v30, %v2207_v63 }
 0xbae   : > { %v2216_v33 = vpack.c.bf16 %v2215_v32, %v2214_v5 }
 0xbb0   : > { %2877 = vmatmul.mubr.msk.bf16.vlgmr.msra.gmra.mrb[44].mxu0 %vm719_vm1, %v2216_v33 }
 0xc83   : > { %v2277_v39 = vpop.f32.mrb[44].mxu0 }
 0xc84   : > { %v2278_v40 = vadd.f32 %v2665_v38, %v2277_v39  ;;  %v2878_v52 = vpop.f32.mrb[45].mxu0 }
 0xc85   : > { %v2280_v9 = vpop.f32.mrb[46].mxu0 }
 0xc86   : > { %v2281_v56 = vadd.f32 %v2665_v38, %v2280_v9  ;;  %v2879_v41 = vpop.f32.mrb[47].mxu0  ;;  %v2284_v45 = vmax.f32 %v2278_v40, 0.0 }
 0xc88   : > { %v2285_v46 = vmax.f32 %v2281_v56, 0.0 }
 0xc8a   : > { %v2286_v60 = vpack.c.bf16 %v2285_v46, %v2284_v45 }
 0xc8c   : > { %2889 = vmatmul.mubr.msk.bf16.vlgmr.msra.gmra.mrb[44].mxu1 %vm2326_vm5, %v2286_v60 }
 0xd5f   : > { %v2364_v37 = vpop.f32.mrb[44].mxu1 }
 0xd60   : > { %v2365_v31 = vadd.f32 %v2669_v16, %v2364_v37  ;;  %v2890_v50 = vpop.f32.mrb[45].mxu1  ;;  %2378 = sbr.rel (%p2675_p6) target bundleno = 3746 (0xea2), region = 88 }
 0xd61   : > { %v2367_v10 = vpop.f32.mrb[46].mxu1 }
 0xd62   : > { %v2371_v54 = vadd.f32 %v2365_v31, %v3429_v23  ;;  %v2368_v55 = vadd.f32 %v2669_v16, %v2367_v10  ;;  %v2891_v57 = vpop.f32.mrb[47].mxu1 }
 0xd64   : > { %2373 = vst.msk [vmem:[#allocation2] sm:$0xff] %vm719_vm1, %v2371_v54  ;;  %v2372_v58 = vadd.f32 %v2368_v55, %v3462_v17  ;;  %v2381_v59 = vsel (!%p2675_p6), %vm719_vm1, %v2371_v54, 0.0 }
 0xd65   : > { %2382 = vadd.xlane.f32.xlu0 (!%p2675_p6), %v2381_v59 }
 0xd66   : > { %2374 = vst.msk [vmem:[#allocation2 + $0x8] sm:$0xff] %vm719_vm1, %v2372_v58  ;;  %v2384_v61 = vsel (!%p2675_p6), %vm719_vm1, %v2372_v58, 0.0 }
 0xd69   : > { %2385 = vadd.xlane.f32.xlu0 %v2384_v61 }
 0xdf2   : > { %v2383_v62 = vpop.xlane.xlu0 %2382 }
 0xdf3   : > { %v2387_v0 = vmul.f32 0.03125, %v2383_v62 }
 0xdf5   : > { %v2389_v23 = vsub.f32 %v2371_v54, %v2387_v0 }
 0xdf6   : > { %v2386_v1 = vpop.xlane.xlu0 %2385 }
 0xdf7   : > { %v2388_v4 = vmul.f32 0.03125, %v2386_v1  ;;  %v2391_v6 = vmul.f32 %v2389_v23, %v2389_v23 }
 0xdf9   : > { %v2390_v7 = vsub.f32 %v2372_v58, %v2388_v4  ;;  %v2393_v8 = vsel %vm719_vm1, %v2391_v6, 0.0 }
 0xdfa   : > { %2394 = vadd.xlane.f32.xlu1 %v2393_v8 }
 0xdfb   : > { %v2392_v12 = vmul.f32 %v2390_v7, %v2390_v7 }
 0xdfd   : > { %v2396_v13 = vsel %vm719_vm1, %v2392_v12, 0.0 }
 0xdfe   : > { %2397 = vadd.xlane.f32.xlu1 %v2396_v13 }
 0xe87   : > { %v2395_v14 = vpop.xlane.xlu1 %2394 }
 0xe88   : > { %v2399_v15 = vmul.f32 0.03125, %v2395_v14 }
 0xe8a   : > { %v2401_v17 = vadd.f32 1e-05, %v2399_v15 }
 0xe8b   : > { %v2398_v18 = vpop.xlane.xlu1 %2397 }
 0xe8c   : > { %2977 = vrsqrt.f32 %v2401_v17  ;;  %v2400_v19 = vmul.f32 0.03125, %v2398_v18 }
 0xe8e   : > { %v2402_v20 = vadd.f32 1e-05, %v2400_v19 }
 0xe90   : > { %2979 = vrsqrt.f32 %v2402_v20 }
 0xe96   : > { %v2978_v21 = vpop.eup %2977 }
 0xe97   : > { %v2405_v24 = vmul.f32 %v2978_v21, %v2389_v23 }
 0xe99   : > { %v2413_v44 = vmul.f32 %v2676_v22, %v2405_v24 }
 0xe9a   : > { %v2980_v53 = vpop.eup %2979 }
 0xe9b   : > { %v2421_v3 = vadd.f32 %v2677_v25, %v2413_v44  ;;  %v2406_v47 = vmul.f32 %v2980_v53, %v2390_v7 }
 0xe9d   : > { %2423 = vst.msk [vmem:[%s3570_s2] sm:$0xff] %vm719_vm1, %v2421_v3  ;;  %v2414_v43 = vmul.f32 %v2676_v22, %v2406_v47 }
 0xe9f   : > { %v2422_v34 = vadd.f32 %v2677_v25, %v2414_v43 }
 0xea1   : > { %2424 = vst.msk [vmem:[%s3570_s2 + $0x8] sm:$0xff] %vm719_vm1, %v2422_v34 }
 0xea2 PF: > { %s3571_s25 = sld [smem:[#allocation4_spill]]  ;;  %s3572_s18 = sld [smem:[#allocation3_spill]] }
 0xea3   : > { %s3573_s19 = sld [smem:[#allocation5_spill]] }
 0xea8   : > { %s25_s20 = sadd.s32 1, %s3571_s25  }
 0xea9   : > { %p22_p7 = scmp.ge.s32.totalorder %s25_s20, 4  }
 0xeab   :  { %24 = sbr.rel (!%p22_p7) target bundleno = 8 (0x8), region = 154 }

// kernel: _lambda_.3
= control target key start
LH: loop header
LB: loop body
LE: loop exit
PB: predicated region body
PF: predicated region fallthrough
CT: control target
= control target key end

     0   :  { %s5349_s30 = smov 0   ;;  %s5351_s24 = smov 0   ;;  %s6117_s0 = inlined_call_operand.vmem [shape: f32[2,8,32], index: 0, kind: input, shape index: {}]   ;;  %s6118_s1 = inlined_call_operand.vmem [shape: bf16[2,8,32], index: 1, kind: input, shape index: {}]   ;;  %s6119_s2 = inlined_call_operand.vmem [shape: f32[2,1,32], index: 2, kind: input, shape index: {}, may-alias: {2,8,15}]   ;;  %s6120_s3 = inlined_call_operand.vmem [shape: f32[2,1,32], index: 3, kind: input, shape index: {}, may-alias: {3,9,16}]   ;;  %s6121_s4 = inlined_call_operand.vmem [shape: bf16[2,96,32], index: 4, kind: input, shape index: {}]   ;;  %s6122_s5 = inlined_call_operand.vmem [shape: bf16[2,4,32], index: 5, kind: input, shape index: {}]   ;;  %s6123_s6 = inlined_call_operand.vmem [shape: bf16[2,32,32], index: 6, kind: input, shape index: {}]   ;;  %s6124_s7 = inlined_call_operand.vmem [shape: f32[2,1,32], index: 7, kind: input, shape index: {}]   ;;  %s6125_s8 = inlined_call_operand.vmem [shape: f32[2,1,32], index: 8, kind: input, shape index: {}, may-alias: {2,8,15}]   ;;  %s6126_s9 = inlined_call_operand.vmem [shape: f32[2,1,32], index: 9, kind: input, shape index: {}, may-alias: {3,9,16}]   ;;  %s6127_s10 = inlined_call_operand.vmem [shape: bf16[2,32,32], index: 10, kind: input, shape index: {}]   ;;  %s6128_s11 = inlined_call_operand.vmem [shape: bf16[2,4,32], index: 11, kind: input, shape index: {}]   ;;  %s6129_s12 = inlined_call_operand.vmem [shape: bf16[2,64,32], index: 12, kind: input, shape index: {}]   ;;  %s6130_s13 = inlined_call_operand.vmem [shape: bf16[2,32,32], index: 13, kind: input, shape index: {}]   ;;  %s6131_s14 = inlined_call_operand.vmem [shape: f32[2,1,32], index: 14, kind: input, shape index: {}]   ;;  %s6132_s15 = inlined_call_operand.vmem [shape: f32[2,1,32], index: 15, kind: input, shape index: {}, may-alias: {2,8,15}]   ;;  %s6133_s16 = inlined_call_operand.vmem [shape: f32[2,1,32], index: 16, kind: input, shape index: {}, may-alias: {3,9,16}]   ;;  %s6134_s17 = inlined_call_operand.vmem [shape: bf16[2,32,64], index: 17, kind: input, shape index: {}]   ;;  %s6135_s18 = inlined_call_operand.vmem [shape: f32[2,1,64], index: 18, kind: input, shape index: {}]   ;;  %s6136_s19 = inlined_call_operand.vmem [shape: bf16[2,64,32], index: 19, kind: input, shape index: {}]   ;;  %s6137_s20 = inlined_call_operand.vmem [shape: f32[2,1,32], index: 20, kind: input, shape index: {}]   ;;  %s6138_s21 = inlined_call_operand.vmem [shape: f32[1,32], index: 21, kind: input, shape index: {}]   ;;  %s6139_s22 = inlined_call_operand.vmem [shape: f32[1,32], index: 22, kind: input, shape index: {}]   ;;  %s6140_s23 = inlined_call_operand.vmem [shape: f32[2,8,32], index: 23, kind: output, shape index: {}]  }
   0x1   :  { %6147 = sst [smem:[#allocation9_spill]] %s6117_s0 }
   0x2   :  { %6148 = sst [smem:[#allocation10_spill]] %s6118_s1 }
   0x3   :  { %6149 = sst [smem:[#allocation11_spill]] %s6119_s2 }
   0x4   :  { %6150 = sst [smem:[#allocation12_spill]] %s6120_s3 }
   0x5   :  { %6151 = sst [smem:[#allocation13_spill]] %s6121_s4  ;;  %s5347_s4 = smov 0  }
   0x6   :  { %6152 = sst [smem:[#allocation14_spill]] %s6122_s5 }
   0x7   :  { %6153 = sst [smem:[#allocation15_spill]] %s6123_s6 }
   0x8   :  { %6154 = sst [smem:[#allocation16_spill]] %s6124_s7 }
   0x9   :  { %6155 = sst [smem:[#allocation17_spill]] %s6127_s10 }
   0xa   :  { %6156 = sst [smem:[#allocation18_spill]] %s6128_s11 }
   0xb   :  { %6157 = sst [smem:[#allocation19_spill]] %s6129_s12 }
   0xc   :  { %6158 = sst [smem:[#allocation20_spill]] %s6130_s13 }
   0xd   :  { %6159 = sst [smem:[#allocation21_spill]] %s6132_s15 }
   0xe   :  { %6160 = sst [smem:[#allocation22_spill]] %s6135_s18 }
   0xf   :  { %6161 = sst [smem:[#allocation23_spill]] %s6136_s19 }
  0x10   :  { %6162 = sst [smem:[#allocation24_spill]] %s6137_s20 }
  0x11   :  { %6163 = sst [smem:[#allocation25_spill]] %s6138_s21 }
  0x12   :  { %6164 = sst [smem:[#allocation26_spill]] %s6139_s22 }
  0x13   :  { %6165 = sst [smem:[#allocation27_spill]] %s6140_s23 }
  0x14 LB: > { %6166 = sst [smem:[#allocation3_spill]] %s5213_s4  ;;  %s42_s25 = sadd.s32 1, %s5217_s30  ;;  %s5221_s24 = sphi %s5351_s24, %s33_s24   ;;  %s5217_s30 = sphi %s5349_s30, %s6212_s30   ;;  %s5213_s4 = sphi %s5347_s4, %s6211_s4  }
  0x15   : > { %6167 = sst [smem:[#allocation4_spill]] %s5217_s30  ;;  %p4559_p0 = scmp.ge.s32.totalorder %s5221_s24, 1 }
  0x16   : > { %6168 = sst [smem:[#allocation5_spill]] %s5221_s24  ;;  %p43_p1 = scmp.ge.s32.totalorder %s42_s25, 2 }
  0x17   : > { %p829_p2 = scmp.lt.s32.totalorder %s5221_s24, 3 }
  0x18   : > { %s6214_s25 = smov (%p43_p1, %s42_s25), 0 }
  0x19   : > { %6169 = sst [smem:[#allocation6_spill]] %s6214_s25  ;;  %p830_p3 = pnand %p4559_p0, %p829_p2 }
  0x1b   : > { %833 = sbr.rel (%p830_p3) target bundleno = 6407 (0x1907), region = 112 }
  0x22   : > { %p983_p4 = scmp.lt.s32.totalorder %s5213_s4, 1  ;;  %s6172_s26 = sld [smem:[#allocation14_spill]] }
  0x23   : > { %s6174_s21 = sld [smem:[#allocation13_spill]]  ;;  %s6175_s7 = sld [smem:[#allocation15_spill]] }
  0x24   : > { %s5369_s5 = scalar_select %p983_p4, %s5213_s4, 1 }
  0x25   : > { %s6177_s10 = sld [smem:[#allocation17_spill]]  ;;  %s6178_s11 = sld [smem:[#allocation18_spill]] }
  0x26   : > { %s5066_s3 = smul.u32 48, %s5369_s5  ;;  %s4561_s0 = sshll.u32 %s5369_s5, 1 }
  0x27   : > { %s4668_s24 = sshll.u32 %s5369_s5, 4  ;;  %s4670_s4 = sshll.u32 %s5369_s5, 5 }
  0x28   : > { %s5384_s30 = scalar_lea.vmem %s6172_s26, %s4561_s0  ;;  %s6179_s12 = sld [smem:[#allocation19_spill]] }
  0x29   : > { %6173 = sst [smem:[#allocation7_spill]] %s5384_s30  ;;  %s5390_s2 = scalar_lea.vmem %s6174_s21, %s5066_s3 }
  0x2a   : > { %s5395_s28 = scalar_lea.vmem %s6175_s7, %s4668_s24  ;;  %s6180_s13 = sld [smem:[#allocation20_spill]] }
  0x2b   : > { %s5412_s3 = scalar_lea.vmem %s6177_s10, %s4668_s24  ;;  %s5417_s7 = scalar_lea.vmem %s6178_s11, %s4561_s0 }
  0x2c   : > { %s5445_s11 = scalar_lea.vmem %s6134_s17, %s4668_s24  ;;  %s6184_s21 = sld [smem:[#allocation23_spill]] }
  0x2d   : > { %s6185_s0 = sld [smem:[#allocation24_spill]]  ;;  %s6186_s6 = sld [smem:[#allocation3_spill]] }
  0x2e   : > { %s5423_s25 = scalar_lea.vmem %s6179_s12, %s4670_s4  ;;  %s6183_s12 = sld [smem:[#allocation22_spill]] }
  0x30   : > { %s5428_s18 = scalar_lea.vmem %s6180_s13, %s4668_s24 }
  0x31   : > { %6181 = sst [smem:[#allocation8_spill]] %s5428_s18 }
  0x32   : > { %s5454_s23 = scalar_lea.vmem %s6184_s21, %s4670_s4 }
  0x33   : > { %s1055_s15 = scalar_lea.vmem %s6185_s0, %s5369_s5  ;;  %p4575_p5 = scmp.ne.s32.totalorder %s6186_s6, 0 }
  0x34   : > { %s1047_s13 = scalar_lea.vmem %s6183_s12, %s5369_s5  ;;  %s6187_s24 = sld [smem:[#allocation9_spill]] (!%p4575_p5)  ;;  %vm1069_vm0 = vcmask (!%p4575_p5), 261120  }
  0x35   : > { %1066 = sbr.rel (%p4575_p5) target bundleno = 61 (0x3d), region = 116 }
  0x3a   : > { %s6188_s29 = smov (!%p4575_p5), %s6187_s24  ;;  %v1067_v0 = vld [vmem:[%s6187_s24] sm:$0xff] (!%p4575_p5) }
  0x3b   : > { %v1068_v1 = vld [vmem:[%s6188_s29 + $0x8] sm:$0xff] (!%p4575_p5)  ;;  %1070 = vst.msk [vmem:[#allocation2] sm:$0xff] (!%p4575_p5), %vm1069_vm0, %v1067_v0 }
  0x3c   : > { %1071 = vst.msk [vmem:[#allocation2 + $0x8] sm:$0xff] %vm1069_vm0, %v1068_v1 }
  0x3d PF: > { %vm1078_vm1 = vcmask 261120   ;;  %v5223_v16 = vmov 0.0   ;;  %v5096_v17 = vld [vmem:[%s5390_s2] sm:$0xff]   ;;  %s6189_s4 = sld [smem:[#allocation11_spill]]  ;;  %s6191_s30 = sld [smem:[#allocation12_spill]]  ;;  %v5097_v36 = vld [vmem:[%s5390_s2 + $0x8] sm:$0xff]  }
  0x3e   : > { %4791 = vmatprep.subr.bf16.mxu1 %v5223_v16  ;;  %4779 = vmatprep.mubr.msk.bf16.mxu0 %vm1078_vm1, %v5096_v17  ;;  %s6193_s19 = sld [smem:[#allocation7_spill]]  ;;  %v5098_v37 = vld [vmem:[%s5390_s2 + $0x10] sm:$0xff]   ;;  %v5099_v38 = vld [vmem:[%s5390_s2 + $0x18] sm:$0xff]   ;;  %v5100_v40 = vld [vmem:[%s5390_s2 + $0x20] sm:$0xff]   ;;  %vm5224_vm2 = vmmov 0   ;;  %vm1393_vm3 = vcmask 1043456   ;;  %s6198_s1 = scalar_lea.vmem %s6126_s9, %s5369_s5 }
  0x3f   : > { %v5101_v41 = vld [vmem:[%s5390_s2 + $0x28] sm:$0xff]   ;;  %4793 = vmatprep.mubr.msk.bf16.mxu1 %vm5224_vm2, %v5223_v16  ;;  %vm1389_vm4 = vcmask 64512   ;;  %s5226_s2 = smov 120   ;;  %s6194_s6 = sld [smem:[#allocation16_spill]]  ;;  %vm4177_vm5 = vcmask 523264  }
  0x40   : > { %s6196_s26 = sld [smem:[#allocation10_spill]] }
  0x43   : > { %v5467_v2 = vld [vmem:[#allocation2] sm:$0xff]  ;;  %v5469_v3 = vld [vmem:[#allocation2 + $0x8] sm:$0xff]  ;;  %s6190_s18 = scalar_lea.vmem %s6189_s4, %s5369_s5  ;;  %s6192_s21 = scalar_lea.vmem %s6191_s30, %s5369_s5 }
  0x44   : > { %v1079_v4 = vsel %vm1078_vm1, %v5467_v2, 0.0  ;;  %v1082_v5 = vsel %vm1078_vm1, %v5469_v3, 0.0  ;;  %v4576_v26 = vld [vmem:[%s6190_s18] ss:$0 sm:$0xff]  ;;  %s6197_s4 = scalar_lea.vmem %s6125_s8, %s5369_s5  ;;  %s6200_s30 = scalar_lea.vmem %s6131_s14, %s5369_s5 }
  0x45   : > { %1080 = vadd.xlane.f32.xlu0 %v1079_v4  ;;  %v4577_v30 = vld [vmem:[%s6192_s21] ss:$0 sm:$0xff]  ;;  %s6195_s27 = scalar_lea.vmem %s6194_s6, %s5369_s5  ;;  %s6203_s6 = scalar_lea.vmem %s6133_s16, %s5369_s5 }
  0x46   : > { %v1267_v39 = vld [vmem:[%s6193_s19] sm:$0x3]  ;;  %s6201_s19 = sld [smem:[#allocation21_spill]] }
  0x49   : > { %1083 = vadd.xlane.f32.xlu0 %v1082_v5 }
  0xd2   : > { %v1081_v6 = vpop.xlane.xlu0 %1080 }
  0xd3   : > { %v1086_v7 = vmul.f32 0.03125, %v1081_v6 }
  0xd5   : > { %v1088_v8 = vsub.f32 %v5467_v2, %v1086_v7 }
  0xd6   : > { %v1084_v9 = vpop.xlane.xlu0 %1083 }
  0xd7   : > { %v1087_v10 = vmul.f32 0.03125, %v1084_v9  ;;  %v1090_v11 = vmul.f32 %v1088_v8, %v1088_v8 }
  0xd9   : > { %v1089_v12 = vsub.f32 %v5469_v3, %v1087_v10  ;;  %v1092_v13 = vsel %vm1078_vm1, %v1090_v11, 0.0 }
  0xda   : > { %1093 = vadd.xlane.f32.xlu1 %v1092_v13 }
  0xdb   : > { %v1091_v14 = vmul.f32 %v1089_v12, %v1089_v12 }
  0xdd   : > { %v1095_v15 = vsel %vm1078_vm1, %v1091_v14, 0.0  ;;  %v1332_v14 = vlaneseq }
  0xde   : > { %1096 = vadd.xlane.f32.xlu1 %v1095_v15 }
  0xdf   : > { %v1333_v17 = vshrl.u32 %v1332_v14, 7 }
 0x167   : > { %v1094_v18 = vpop.xlane.xlu1 %1093 }
 0x168   : > { %v1098_v19 = vmul.f32 0.03125, %v1094_v18 }
 0x16a   : > { %v1100_v20 = vadd.f32 1e-05, %v1098_v19 }
 0x16b   : > { %v1097_v21 = vpop.xlane.xlu1 %1096 }
 0x16c   : > { %5119 = vrsqrt.f32 %v1100_v20  ;;  %v1099_v22 = vmul.f32 0.03125, %v1097_v21  ;;  %v5570_v21 = vsub.s32 0, %v1333_v17 }
 0x16e   : > { %v1101_v23 = vadd.f32 1e-05, %v1099_v22 }
 0x170   : > { %5121 = vrsqrt.f32 %v1101_v23 }
 0x176   : > { %v5120_v24 = vpop.eup %5119 }
 0x177   : > { %v1104_v25 = vmul.f32 %v5120_v24, %v1088_v8 }
 0x179   : > { %v1112_v29 = vmul.f32 %v4576_v26, %v1104_v25 }
 0x17a   : > { %v5122_v27 = vpop.eup %5121 }
 0x17b   : > { %v1105_v28 = vmul.f32 %v5122_v27, %v1089_v12  ;;  %v1120_v32 = vadd.f32 %v4577_v30, %v1112_v29  ;;  %v5225_v12 = vmov 1966171168  }
 0x17c   : > { %v1330_v13 = vunpack.c.l.s4 %v5225_v12 }
 0x17d   : > { %v1113_v31 = vmul.f32 %v4576_v26, %v1105_v28 }
 0x17e   : > { %v1331_v15 = vunpack.c.0.s8 %v1330_v13 }
 0x17f   : > { %v1121_v33 = vadd.f32 %v4577_v30, %v1113_v31 }
 0x180   : > { %v5566_v18 = vsub.s32 %v1331_v15, %v1333_v17 }
 0x181   : > { %v1122_v34 = vpack.c.bf16 %v1121_v33, %v1120_v32 }
 0x183   : > { %5063 = vmatprep.subr.msk.bf16.mxu0 %vm1078_vm1, %v1122_v34  ;;  %v1184_v35 = vsel %vm1078_vm1, %v1122_v34, 0 }
 0x184   : > { %4778 = vmatpush3.bf16.xpose.msra.mxu0 %v1184_v35  ;;  %4792 = vmatpush3.bf16.xpose.msra.mxu1 %v1184_v35 }
 0x185   : > { %4797 = vmatprep.subr.bf16.mxu1 %v5223_v16  ;;  %4809 = vmatprep.subr.bf16.mxu0 %v5223_v16 }
 0x18b   : > { %4780 = vmatmul.mubr.msk.bf16.vlgmr.msra.gmra.mrb[0].mxu0 %vm1078_vm1, %v5097_v36  ;;  %4794 = vmatmul.mubr.msk.bf16.vlgmr.msra.gmra.mrb[0].mxu1 %vm1078_vm1, %v1267_v39 }
 0x18c   : > { %4783 = vmatprep.mubr.msk.bf16.mxu0 %vm1078_vm1, %v5098_v37  ;;  %4799 = vmatprep.mubr.msk.bf16.mxu1 %vm5224_vm2, %v5223_v16 }
 0x193   : > { %4784 = vmatmul.mubr.msk.bf16.gmra.mrb[4].mxu0 %vm1078_vm1, %v5099_v38 }
 0x194   : > { %4787 = vmatprep.mubr.msk.bf16.mxu0 %vm1078_vm1, %v5100_v40 }
 0x19b   : > { %4788 = vmatmul.mubr.msk.bf16.gmra.mrb[8].mxu0 %vm1078_vm1, %v5101_v41 }
 0x19c   : > { %4811 = vmatprep.mubr.msk.bf16.mxu0 %vm5224_vm2, %v5223_v16 }
 0x25e   : > { %v4781_v42 = vpop.f32.mrb[0].mxu0  ;;  %v1305_v58 = vpop.f32.mrb[0].mxu1 }
 0x25f   : > { %v1220_v43 = vpop.f32.mrb[1].mxu0  ;;  %v5519_v48 = vpack.c.bf16 %v4781_v42, %v4781_v42  ;;  %v4795_v59 = vpop.f32.mrb[1].mxu1  ;;  %v1335_v19 = vrot.slane %v1305_v58, %v5566_v18 }
 0x260   : > { %v5514_v44 = vpack.c.bf16 %v1220_v43, %v1220_v43  ;;  %v4782_v45 = vpop.f32.mrb[2].mxu0  ;;  %v1308_v61 = vpop.f32.mrb[2].mxu1 }
 0x261   : > { %v1223_v46 = vpop.f32.mrb[3].mxu0  ;;  %v5522_v49 = vpack.c.bf16 %v4782_v45, %v4782_v45  ;;  %v4796_v62 = vpop.f32.mrb[3].mxu1  ;;  %v1343_v20 = vrot.slane %v1335_v19, %v5566_v18  ;;  %v1336_v22 = vcombine.high %v1335_v19, %v1335_v19 }
 0x262   : > { %v5516_v47 = vpack.c.bf16 %v1223_v46, %v1223_v46  ;;  %1373 = vxpose.xlu0.c.b16.start.end [1/1] (short) (narrow) %v5514_v44, 16 }
 0x263   : > { %v5573_v23 = vrot.slane %v1343_v20, %v5570_v21  ;;  %v1351_v24 = vcombine.high %v1343_v20, %v1343_v20  ;;  %v1350_v32 = vrot.slane %v1336_v22, %v5566_v18 }
 0x264   : > { %1437 = vxpose.xlu1.c.b16.start.end [1/1] (short) (narrow) %v5516_v47, 16 }
 0x265   : > { %v5578_v31 = vrot.slane %v1351_v24, %v5570_v21  ;;  %v5583_v37 = vrot.slane %v1350_v32, %v5570_v21 }
 0x266   : > { %1499 = vxpose.xlu0.c.b16.start.end [1/1] (short) (narrow) %v5519_v48, 16  ;;  %v4785_v50 = vpop.f32.mrb[4].mxu0 }
 0x267   : > { %v5525_v51 = vpack.c.bf16 %v4785_v50, %v4785_v50  ;;  %v1236_v52 = vpop.f32.mrb[5].mxu0  ;;  %v1352_v50 = vcombine.high %v1350_v32, %v1350_v32 }
 0x268   : > { %1561 = vxpose.xlu1.c.b16.start.end [1/1] (short) (narrow) %v5522_v49, 16  ;;  %v5528_v53 = vpack.c.bf16 %v1236_v52, %v1236_v52  ;;  %v4786_v54 = vpop.f32.mrb[6].mxu0 }
 0x269   : > { %v1519_v55 = vsel %vm1393_vm3, %v5525_v51, 0  ;;  %v1239_v56 = vpop.f32.mrb[7].mxu0  ;;  %v5546_v5 = vpack.c.bf16 %v4786_v54, %v4786_v54  ;;  %v5589_v52 = vrot.slane %v1352_v50, %v5570_v21 }
 0x26a   : > { %v1395_v57 = vsel %vm1393_vm3, %v5528_v53, 0  ;;  %4810 = vmatpush3.bf16.msra.mxu0 %v1519_v55  ;;  %v5538_v63 = vpack.c.bf16 %v1239_v56, %v1239_v56 }
 0x26b   : > { %4798 = vmatpush3.bf16.msra.mxu1 %v1395_v57  ;;  %4821 = vmatprep.subr.bf16.mxu0 %v5223_v16  ;;  %v1581_v7 = vsel %vm1393_vm3, %v5546_v5, 0 }
 0x26c   : > { %4803 = vmatprep.subr.bf16.mxu1 %v5223_v16  ;;  %v1457_v1 = vsel %vm1393_vm3, %v5538_v63, 0 }
 0x26e   : > { %v5536_v60 = vpop.f32.mrb[8].mxu0 }
 0x26f   : > { %v5560_v9 = vpop.f32.mrb[9].mxu0 }
 0x270   : > { %v5562_v10 = vpop.f32.mrb[10].mxu0 }
 0x271   : > { %v5564_v11 = vpop.f32.mrb[11].mxu0 }
 0x2c8   : > { %v1381_v0 = vpop.trf.xlu0 }
 0x2c9   : > { %4800 = vmatmul.mubr.msk.bf16.vlgmr.msra.gmra.mrb[4].mxu1 %vm1389_vm4, %v1381_v0 }
 0x2ca   : > { %4804 = vmatpush3.bf16.msra.mxu1 %v1457_v1  ;;  %4805 = vmatprep.mubr.msk.bf16.mxu1 %vm5224_vm2, %v5223_v16  ;;  %v1445_v6 = vpop.trf.xlu1 }
 0x2cb   : > { %4815 = vmatprep.subr.bf16.mxu1 %v5223_v16 }
 0x2cc   : > { %v1507_v4 = vpop.trf.xlu0 }
 0x2cd   : > { %4812 = vmatmul.mubr.msk.bf16.vlgmr.msra.gmra.mrb[12].mxu0 %vm1389_vm4, %v1507_v4 }
 0x2ce   : > { %4823 = vmatprep.mubr.msk.bf16.mxu0 %vm5224_vm2, %v5223_v16  ;;  %v1569_v8 = vpop.trf.xlu1 }
 0x2d1   : > { %4806 = vmatmul.mubr.msk.bf16.vlgmr.msra.gmra.mrb[8].mxu1 %vm1389_vm4, %v1445_v6 }
 0x2d2   : > { %4816 = vmatpush3.bf16.msra.mxu1 %v1581_v7  ;;  %4817 = vmatprep.mubr.msk.bf16.mxu1 %vm5224_vm2, %v5223_v16 }
 0x2d3   : > { %4827 = vmatprep.subr.bf16.mxu1 %v5223_v16 }
 0x2d9   : > { %4818 = vmatmul.mubr.msk.bf16.vlgmr.msra.gmra.mrb[12].mxu1 %vm1389_vm4, %v1569_v8 }
 0x2da   : > { %4829 = vmatprep.mubr.msk.bf16.mxu1 %vm5224_vm2, %v5223_v16 }
 0x39c   : > { %v1431_v25 = vpop.f32.mrb[4].mxu1 }
 0x39d   : > { %v1432_v26 = vadd.f32 %v1431_v25, %v5573_v23  ;;  %v4801_v27 = vpop.f32.mrb[5].mxu1 }
 0x39e   : > { %v1434_v28 = vpop.f32.mrb[6].mxu1 }
 0x39f   : > { %v4802_v29 = vpop.f32.mrb[7].mxu1  ;;  %v1623_v30 = vsel %vm1389_vm4, %v1432_v26, -inf }
 0x3a0   : > { %1624 = vmax.xlane.f32.xlu0 %v1623_v30  ;;  %v1555_v33 = vpop.f32.mrb[12].mxu0 }
 0x3a1   : > { %v1556_v34 = vadd.f32 %v1555_v33, %v5578_v31  ;;  %v4813_v35 = vpop.f32.mrb[13].mxu0 }
 0x3a2   : > { %v1558_v36 = vpop.f32.mrb[14].mxu0 }
 0x3a3   : > { %v1629_v38 = vsel %vm1389_vm4, %v1556_v34, -inf  ;;  %v4814_v39 = vpop.f32.mrb[15].mxu0  ;;  %v5619_v36 = vpack.c.bf16 %v5560_v9, %v5560_v9 }
 0x3a4   : > { %v1493_v40 = vpop.f32.mrb[8].mxu1  ;;  %1630 = vmax.xlane.f32.xlu0 %v1629_v38 }
 0x3a5   : > { %v1494_v41 = vadd.f32 %v1493_v40, %v5583_v37  ;;  %v4807_v42 = vpop.f32.mrb[9].mxu1 }
 0x3a6   : > { %v1496_v43 = vpop.f32.mrb[10].mxu1 }
 0x3a7   : > { %v4808_v45 = vpop.f32.mrb[11].mxu1  ;;  %v1626_v46 = vsel %vm1389_vm4, %v1494_v41, -inf }
 0x3a8   : > { %1627 = vmax.xlane.f32.xlu1 %v1626_v46  ;;  %v5633_v45 = vpack.c.bf16 %v5536_v60, %v5536_v60  ;;  %v5637_v46 = vpack.c.bf16 %v5564_v11, %v5564_v11  ;;  %v5655_v11 = vpack.c.bf16 %v5562_v10, %v5562_v10 }
 0x3ac   : > { %v1617_v54 = vpop.f32.mrb[12].mxu1 }
 0x3ad   : > { %v1618_v55 = vadd.f32 %v1617_v54, %v5589_v52  ;;  %v4819_v56 = vpop.f32.mrb[13].mxu1 }
 0x3ae   : > { %v1620_v57 = vpop.f32.mrb[14].mxu1 }
 0x3af   : > { %v4820_v58 = vpop.f32.mrb[15].mxu1  ;;  %v1632_v59 = vsel %vm1389_vm4, %v1618_v55, -inf }
 0x3b0   : > { %1633 = vmax.xlane.f32.xlu1 %v1632_v59  ;;  %v5675_v58 = vld [vmem:[%s5395_s28 + $0x8] sm:$0xff]  }
 0x42d   : > { %v1625_v61 = vpop.xlane.xlu0 %1624 }
 0x42e   : > { %v1635_v62 = vsub.f32 %v1432_v26, %v1625_v61 }
 0x430   : > { %v1639_v0 = vmul.f32 1.442695, %v1635_v62 }
 0x431   : > { %v1631_v1 = vpop.xlane.xlu0 %1630 }
 0x432   : > { %5123 = vpow2.f32 %v1639_v0  ;;  %v1637_v4 = vsub.f32 %v1556_v34, %v1631_v1 }
 0x434   : > { %v1643_v6 = vmul.f32 1.442695, %v1637_v4 }
 0x435   : > { %v1628_v7 = vpop.xlane.xlu1 %1627 }
 0x436   : > { %5125 = vpow2.f32 %v1643_v6  ;;  %v1636_v8 = vsub.f32 %v1494_v41, %v1628_v7 }
 0x438   : > { %v1641_v12 = vmul.f32 1.442695, %v1636_v8 }
 0x43a   : > { %5127 = vpow2.f32 %v1641_v12 }
 0x43c   : > { %v5124_v13 = vpop.eup %5123 }
 0x43d   : > { %v1634_v14 = vpop.xlane.xlu1 %1633  ;;  %v1647_v15 = vsel %vm1389_vm4, %v5124_v13, 0.0 }
 0x43e   : > { %v1638_v17 = vsub.f32 %v1618_v55, %v1634_v14  ;;  %1648 = vadd.xlane.f32.xlu0 %v1647_v15 }
 0x440   : > { %v5126_v19 = vpop.eup %5125  ;;  %v1645_v20 = vmul.f32 1.442695, %v1638_v17 }
 0x441   : > { %v1653_v22 = vsel %vm1389_vm4, %v5126_v19, 0.0 }
 0x442   : > { %5129 = vpow2.f32 %v1645_v20  ;;  %1654 = vadd.xlane.f32.xlu0 %v1653_v22 }
 0x444   : > { %v5128_v24 = vpop.eup %5127 }
 0x445   : > { %v1650_v25 = vsel %vm1389_vm4, %v5128_v24, 0.0 }
 0x446   : > { %1651 = vadd.xlane.f32.xlu1 %v1650_v25 }
 0x44c   : > { %v5130_v26 = vpop.eup %5129 }
 0x44d   : > { %v1656_v27 = vsel %vm1389_vm4, %v5130_v26, 0.0 }
 0x44e   : > { %1657 = vadd.xlane.f32.xlu1 %v1656_v27 }
 0x458   : > { %1929 = vrot.lane.b32.xlu0 %v5514_v44, %s5226_s2 }
 0x45c   : > { %1949 = vrot.lane.b32.xlu0 %v5528_v53, %s5226_s2 }
 0x45f   : > { %2001 = vrot.lane.b32.xlu1 %v5516_v47, %s5226_s2 }
 0x460   : > { %2093 = vrot.lane.b32.xlu0 %v5525_v51, %s5226_s2 }
 0x463   : > { %2073 = vrot.lane.b32.xlu1 %v5519_v48, %s5226_s2 }
 0x467   : > { %2145 = vrot.lane.b32.xlu1 %v5522_v49, %s5226_s2 }
 0x46b   : > { %2021 = vrot.lane.b32.xlu1 %v5538_v63, %s5226_s2 }
 0x46f   : > { %2165 = vrot.lane.b32.xlu1 %v5546_v5, %s5226_s2 }
 0x4cb   : > { %v1649_v44 = vpop.xlane.xlu0 %1648 }
 0x4cc   : > { %5131 = vrcp.f32 %v1649_v44 }
 0x4cf   : > { %v1655_v53 = vpop.xlane.xlu0 %1654 }
 0x4d0   : > { %5133 = vrcp.f32 %v1655_v53 }
 0x4d3   : > { %v1652_v47 = vpop.xlane.xlu1 %1651  ;;  %v1930_v28 = vpop.permute.xlu0 %1929 }
 0x4d4   : > { %5135 = vrcp.f32 %v1652_v47  ;;  %1932 = vxpose.xlu1.c.b16.start.end [1/1] (short) (narrow) %v1930_v28, 16 }
 0x4d6   : > { %v5132_v51 = vpop.eup %5131 }
 0x4d7   : > { %v1663_v29 = vmul.f32 %v5132_v51, %v5124_v13  ;;  %v1950_v60 = vpop.permute.xlu0 %1949 }
 0x4d9   : > { %v1667_v48 = vpack.c.bf16 %v1663_v29, %v1663_v29 }
 0x4da   : > { %v5134_v30 = vpop.eup %5133 }
 0x4db   : > { %v1658_v32 = vpop.xlane.xlu1 %1657  ;;  %v1675_v49 = vsel %vm1389_vm4, %v1667_v48, 0  ;;  %v1665_v33 = vmul.f32 %v5134_v30, %v5126_v19  ;;  %v2094_v10 = vpop.permute.xlu0 %2093 }
 0x4dc   : > { %5137 = vrcp.f32 %v1658_v32  ;;  %4822 = vmatpush3.bf16.xpose.msra.mxu0 %v1675_v49  ;;  %v2102_v57 = vsel %vm1393_vm3, %v2094_v10, 0 }
 0x4dd   : > { %4833 = vmatprep.subr.bf16.mxu0 %v5223_v16  ;;  %v1669_v35 = vpack.c.bf16 %v1665_v33, %v1665_v33 }
 0x4de   : > { %v5136_v63 = vpop.eup %5135 }
 0x4df   : > { %v5615_v5 = vpop.permute.xlu1 %2001  ;;  %v1664_v34 = vmul.f32 %v5136_v63, %v5128_v24  ;;  %v1767_v41 = vsel %vm1389_vm4, %v1669_v35, 0 }
 0x4e1   : > { %v1668_v38 = vpack.c.bf16 %v1664_v34, %v1664_v34 }
 0x4e3   : > { %v5621_v39 = vpop.permute.xlu1 %2073  ;;  %4824 = vmatmul.mubr.msk.bf16.vlgmr.msra.gmra.mrb[16].mxu0 %vm1389_vm4, %v5619_v36  ;;  %v1721_v40 = vsel %vm1389_vm4, %v1668_v38, 0 }
 0x4e4   : > { %4828 = vmatpush3.bf16.xpose.msra.mxu1 %v1721_v40  ;;  %4834 = vmatpush3.bf16.xpose.msra.mxu0 %v1767_v41 }
 0x4e5   : > { %4835 = vmatprep.mubr.msk.bf16.mxu0 %vm5224_vm2, %v5223_v16  ;;  %4839 = vmatprep.subr.bf16.mxu1 %v5223_v16 }
 0x4e6   : > { %v5138_v42 = vpop.eup %5137  ;;  %4845 = vmatprep.subr.bf16.mxu0 %v5223_v16 }
 0x4e7   : > { %v2146_v9 = vpop.permute.xlu1 %2145  ;;  %v1666_v43 = vmul.f32 %v5138_v42, %v5130_v26 }
 0x4e8   : > { %2148 = vxpose.xlu1.c.b16.start.end [1/1] (short) (narrow) %v2146_v9, 16 }
 0x4e9   : > { %v1670_v50 = vpack.c.bf16 %v1666_v43, %v1666_v43 }
 0x4eb   : > { %4830 = vmatmul.mubr.msk.bf16.vlgmr.msra.gmra.mrb[16].mxu1 %vm1389_vm4, %v5637_v46  ;;  %4836 = vmatmul.mubr.msk.bf16.vlgmr.msra.gmra.mrb[20].mxu0 %vm1389_vm4, %v5633_v45  ;;  %v1813_v54 = vsel %vm1389_vm4, %v1670_v50, 0 }
 0x4ec   : > { %2023 = vrot.lane.b32.xlu1 %v5583_v37, %s5226_s2  ;;  %4840 = vmatpush3.bf16.xpose.msra.mxu1 %v1813_v54  ;;  %v1958_v37 = vsel %vm1393_vm3, %v1950_v60, 0 }
 0x4ed   : > { %4841 = vmatprep.mubr.msk.bf16.mxu1 %vm5224_vm2, %v5223_v16  ;;  %4853 = vmatprep.subr.bf16.mxu1 %v5223_v16 }
 0x4ee   : > { %4849 = vmatprep.mubr.msk.bf16.mxu0 %vm5224_vm2, %v5223_v16 }
 0x4f0   : > { %2095 = vrot.lane.b32.xlu1 %v5578_v31, %s5226_s2  ;;  %v2022_v31 = vpop.permute.xlu1 %2021 }
 0x4f1   : > { %v2030_v47 = vsel %vm1393_vm3, %v2022_v31, 0 }
 0x4f3   : > { %4842 = vmatmul.mubr.msk.bf16.vlgmr.msra.gmra.mrb[20].mxu1 %vm1389_vm4, %v5655_v11 }
 0x4f4   : > { %2167 = vrot.lane.b32.xlu1 %v5589_v52, %s5226_s2  ;;  %4854 = vmatpush3.bf16.msra.mxu1 %v1958_v37  ;;  %v2166_v55 = vpop.permute.xlu1 %2165  ;;  %v5671_v52 = vld [vmem:[%s5395_s28] sm:$0xff]  }
 0x4f5   : > { %4855 = vmatprep.mubr.msk.bf16.mxu1 %vm5224_vm2, %v5223_v16  ;;  %4865 = vmatprep.subr.bf16.mxu1 %v5223_v16  ;;  %v2174_v51 = vsel %vm1393_vm3, %v2166_v55, 0 }
 0x4f6   : > { %4846 = vmatpush3.bf16.msra.mxu0 %v5671_v52 }
 0x4f7   : > { %4847 = vmatprep.subr.bf16.mxu0 %v5223_v16 }
 0x4fa   : > { %4848 = vmatpush3.bf16.msra.mxu0 %v5675_v58 }
 0x4fb   : > { %4859 = vmatprep.subr.bf16.mxu0 %v5223_v16 }
 0x53a   : > { %v1940_v56 = vpop.trf.xlu1 }
 0x53b   : > { %4856 = vmatmul.mubr.msk.bf16.vlgmr.msra.gmra.mrb[24].mxu1 %vm1389_vm4, %v1940_v56 }
 0x53c   : > { %4866 = vmatpush3.bf16.msra.mxu1 %v2102_v57  ;;  %4867 = vmatprep.mubr.msk.bf16.mxu1 %vm5224_vm2, %v5223_v16 }
 0x53d   : > { %4877 = vmatprep.subr.bf16.mxu1 %v5223_v16 }
 0x54e   : > { %v2156_v29 = vpop.trf.xlu1 }
 0x55e   : > { %v2024_v38 = vpop.permute.xlu1 %2023 }
 0x562   : > { %v2096_v9 = vpop.permute.xlu1 %2095 }
 0x566   : > { %v2168_v57 = vpop.permute.xlu1 %2167 }
 0x5b6   : > { %v1711_v59 = vpop.f32.mrb[16].mxu0 }
 0x5b7   : > { %v4825_v61 = vpop.f32.mrb[17].mxu0 }
 0x5b8   : > { %v1714_v62 = vpop.f32.mrb[18].mxu0 }
 0x5b9   : > { %v4826_v0 = vpop.f32.mrb[19].mxu0 }
 0x5be   : > { %v1757_v1 = vpop.f32.mrb[16].mxu1  ;;  %v1803_v4 = vpop.f32.mrb[20].mxu0 }
 0x5bf   : > { %v1855_v6 = vpack.c.bf16 %v1757_v1, %v1711_v59  ;;  %v4831_v7 = vpop.f32.mrb[17].mxu1  ;;  %v4837_v8 = vpop.f32.mrb[21].mxu0 }
 0x5c0   : > { %v1760_v12 = vpop.f32.mrb[18].mxu1  ;;  %v1806_v13 = vpop.f32.mrb[22].mxu0 }
 0x5c1   : > { %v4838_v14 = vpop.f32.mrb[23].mxu0  ;;  %1857 = vxpose.xlu0.c.b16.start [1/2] (short) (narrow) %v1855_v6, 16  ;;  %v4832_v15 = vpop.f32.mrb[19].mxu1 }
 0x5c6   : > { %v1849_v17 = vpop.f32.mrb[20].mxu1 }
 0x5c7   : > { %v1856_v19 = vpack.c.bf16 %v1849_v17, %v1803_v4  ;;  %v4843_v20 = vpop.f32.mrb[21].mxu1 }
 0x5c8   : > { %v1852_v22 = vpop.f32.mrb[22].mxu1 }
 0x5c9   : > { %1858 = vxpose.xlu0.c.b16.end [2/2] (short) (narrow) %v1856_v19, 16  ;;  %v4844_v24 = vpop.f32.mrb[23].mxu1 }
 0x5cd   : > { %2004 = vxpose.xlu0.c.b16.start.end [1/1] (short) (narrow) %v5615_v5, 16 }
 0x5d1   : > { %2076 = vxpose.xlu0.c.b16.start.end [1/1] (short) (narrow) %v5621_v39, 16 }
 0x5da   : > { %1951 = vrot.lane.b32.xlu0 %v5573_v23, %s5226_s2 }
 0x60e   : > { %v1994_v25 = vpop.f32.mrb[24].mxu1 }
 0x60f   : > { %v4857_v26 = vpop.f32.mrb[25].mxu1 }
 0x610   : > { %v1997_v27 = vpop.f32.mrb[26].mxu1 }
 0x611   : > { %v4858_v44 = vpop.f32.mrb[27].mxu1 }
 0x62b   : > { %v1865_v53 = vpop.trf.xlu0 }
 0x62c   : > { %4850 = vmatmul.mubr.msk.bf16.vlgmr.msra.gmra.mrb[24].mxu0 %vm1078_vm1, %v1865_v53 }
 0x62d   : > { %4860 = vmatpush3.bf16.msra.mxu0 %v2030_v47  ;;  %4861 = vmatprep.mubr.msk.bf16.mxu0 %vm5224_vm2, %v5223_v16 }
 0x62e   : > { %4871 = vmatprep.subr.bf16.mxu0 %v5223_v16 }
 0x633   : > { %v2012_v28 = vpop.trf.xlu0 }
 0x634   : > { %4862 = vmatmul.mubr.msk.bf16.vlgmr.msra.gmra.mrb[28].mxu0 %vm1389_vm4, %v2012_v28 }
 0x635   : > { %4872 = vmatpush3.bf16.msra.mxu0 %v2174_v51  ;;  %4873 = vmatprep.mubr.msk.bf16.mxu0 %vm5224_vm2, %v5223_v16 }
 0x636   : > { %4883 = vmatprep.subr.bf16.mxu0 %v5223_v16 }
 0x637   : > { %v2084_v23 = vpop.trf.xlu0 }
 0x638   : > { %4868 = vmatmul.mubr.msk.bf16.vlgmr.msra.gmra.mrb[28].mxu1 %vm1389_vm4, %v2084_v23 }
 0x639   : > { %4879 = vmatprep.mubr.msk.bf16.mxu1 %vm5224_vm2, %v5223_v16 }
 0x63c   : > { %4874 = vmatmul.mubr.msk.bf16.vlgmr.msra.gmra.mrb[32].mxu0 %vm1389_vm4, %v2156_v29 }
 0x63d   : > { %4885 = vmatprep.mubr.msk.bf16.mxu0 %vm5224_vm2, %v5223_v16 }
 0x64c   : > { %v1952_v48 = vpop.permute.xlu0 %1951 }
 0x64d   : > { %v1995_v30 = vadd.f32 %v1994_v25, %v1952_v48 }
 0x64f   : > { %v2216_v32 = vsel %vm1389_vm4, %v1995_v30, -inf }
 0x650   : > { %2217 = vmax.xlane.f32.xlu0 %v2216_v32 }
 0x6dd   : > { %v2218_v49 = vpop.xlane.xlu0 %2217 }
 0x6de   : > { %v2228_v5 = vsub.f32 %v1995_v30, %v2218_v49 }
 0x6e0   : > { %v2232_v39 = vmul.f32 1.442695, %v2228_v5 }
 0x6e2   : > { %5139 = vpow2.f32 %v2232_v39 }
 0x6ec   : > { %v5140_v6 = vpop.eup %5139 }
 0x6ed   : > { %v2240_v7 = vsel %vm1389_vm4, %v5140_v6, 0.0 }
 0x6ff   : > { %v5701_v33 = vpop.f32.mrb[24].mxu0 }
 0x700   : > { %v4851_v63 = vpop.f32.mrb[25].mxu0 }
 0x701   : > { %v1925_v34 = vpop.f32.mrb[26].mxu0 }
 0x702   : > { %v4852_v35 = vpop.f32.mrb[27].mxu0 }
 0x707   : > { %v2066_v40 = vpop.f32.mrb[28].mxu0 }
 0x708   : > { %v2067_v41 = vadd.f32 %v2066_v40, %v2024_v38  ;;  %v4863_v42 = vpop.f32.mrb[29].mxu0 }
 0x709   : > { %v2069_v43 = vpop.f32.mrb[30].mxu0 }
 0x70a   : > { %v4864_v50 = vpop.f32.mrb[31].mxu0  ;;  %v2219_v54 = vsel %vm1389_vm4, %v2067_v41, -inf }
 0x70b   : > { %2220 = vmax.xlane.f32.xlu1 %v2219_v54  ;;  %v2138_v60 = vpop.f32.mrb[28].mxu1 }
 0x70c   : > { %v2139_v37 = vadd.f32 %v2138_v60, %v2096_v9  ;;  %v4869_v31 = vpop.f32.mrb[29].mxu1 }
 0x70d   : > { %v2141_v55 = vpop.f32.mrb[30].mxu1 }
 0x70e   : > { %v2222_v10 = vsel %vm1389_vm4, %v2139_v37, -inf  ;;  %v4870_v56 = vpop.f32.mrb[31].mxu1 }
 0x70f   : > { %v2210_v59 = vpop.f32.mrb[32].mxu0  ;;  %2223 = vmax.xlane.f32.xlu0 %v2222_v10 }
 0x710   : > { %v2211_v61 = vadd.f32 %v2210_v59, %v2168_v57  ;;  %v4875_v62 = vpop.f32.mrb[33].mxu0 }
 0x711   : > { %v2213_v0 = vpop.f32.mrb[34].mxu0 }
 0x712   : > { %v2225_v1 = vsel %vm1389_vm4, %v2211_v61, -inf  ;;  %v4876_v4 = vpop.f32.mrb[35].mxu0 }
 0x713   : > { %2226 = vmax.xlane.f32.xlu0 %v2225_v1 }
 0x717   : > { %2241 = vadd.xlane.f32.xlu0 %v2240_v7 }
 0x798   : > { %v2221_v8 = vpop.xlane.xlu1 %2220 }
 0x799   : > { %v2229_v12 = vsub.f32 %v2067_v41, %v2221_v8 }
 0x79b   : > { %v2234_v13 = vmul.f32 1.442695, %v2229_v12 }
 0x79c   : > { %v2224_v14 = vpop.xlane.xlu0 %2223 }
 0x79d   : > { %5141 = vpow2.f32 %v2234_v13  ;;  %v2230_v15 = vsub.f32 %v2139_v37, %v2224_v14 }
 0x79f   : > { %v2236_v17 = vmul.f32 1.442695, %v2230_v15 }
 0x7a0   : > { %v2227_v19 = vpop.xlane.xlu0 %2226 }
 0x7a1   : > { %5143 = vpow2.f32 %v2236_v17  ;;  %v2231_v28 = vsub.f32 %v2211_v61, %v2227_v19 }
 0x7a3   : > { %v2238_v51 = vmul.f32 1.442695, %v2231_v28 }
 0x7a4   : > { %v2242_v20 = vpop.xlane.xlu0 %2241 }
 0x7a5   : > { %5145 = vrcp.f32 %v2242_v20 }
 0x7a6   : > { %5147 = vpow2.f32 %v2238_v51 }
 0x7a7   : > { %v5142_v22 = vpop.eup %5141 }
 0x7a8   : > { %v2243_v24 = vsel %vm1389_vm4, %v5142_v22, 0.0 }
 0x7a9   : > { %2244 = vadd.xlane.f32.xlu1 %v2243_v24 }
 0x7ab   : > { %v5144_v25 = vpop.eup %5143 }
 0x7ac   : > { %v2246_v26 = vsel %vm1389_vm4, %v5144_v25, 0.0 }
 0x7ad   : > { %2247 = vadd.xlane.f32.xlu0 %v2246_v26 }
 0x7af   : > { %v5146_v27 = vpop.eup %5145 }
 0x7b0   : > { %v2256_v44 = vmul.f32 %v5146_v27, %v5140_v6  ;;  %v5148_v23 = vpop.eup %5147 }
 0x7b1   : > { %v2249_v29 = vsel %vm1389_vm4, %v5148_v23, 0.0 }
 0x7b2   : > { %v2260_v53 = vpack.c.bf16 %v2256_v44, %v2256_v44 }
 0x7b4   : > { %v2271_v47 = vsel %vm1389_vm4, %v2260_v53, 0 }
 0x7b5   : > { %4878 = vmatpush3.bf16.xpose.msra.mxu1 %v2271_v47 }
 0x7b6   : > { %4889 = vmatprep.subr.bf16.mxu1 %v5223_v16 }
 0x7ba   : > { %2314 = vrot.lane.b32.xlu1 %v5637_v46, %s5226_s2  ;;  %v5725_v46 = vld [vmem:[%s6195_s27] ss:$0 sm:$0xff] }
 0x7c3   : > { %2265 = vrot.lane.b32.xlu0 %v5619_v36, %s5226_s2  ;;  %v2527_v36 = vadd.f32 %v5725_v46, %v5701_v33 }
 0x7c5   : > { %v5730_v48 = vadd.f32 %v2527_v36, %v5467_v2 }
 0x7c7   : > { %v2533_v30 = vsel %vm1078_vm1, %v5730_v48, 0.0 }
 0x7de   : > { %2250 = vadd.xlane.f32.xlu1 %v2249_v29  ;;  %v5104_v29 = vld [vmem:[%s5412_s3] sm:$0xff]  }
 0x7ef   : > { %2363 = vrot.lane.b32.xlu1 %v5633_v45, %s5226_s2 }
 0x7f3   : > { %2412 = vrot.lane.b32.xlu1 %v5655_v11, %s5226_s2 }
 0x817   : > { %2534 = vadd.xlane.f32.xlu1 %v2533_v30  ;;  %v5108_v30 = vld [vmem:[%s5423_s25 + $0x8] sm:$0xff]  }
 0x836   : > { %v2245_v45 = vpop.xlane.xlu1 %2244 }
 0x837   : > { %5149 = vrcp.f32 %v2245_v45 }
 0x83a   : > { %v2248_v32 = vpop.xlane.xlu0 %2247  ;;  %v2315_v39 = vpop.permute.xlu1 %2314 }
 0x83b   : > { %5151 = vrcp.f32 %v2248_v32 }
 0x83e   : > { %v2266_v11 = vpop.permute.xlu0 %2265 }
 0x83f   : > { %4880 = vmatmul.mubr.msk.bf16.vlgmr.msra.gmra.mrb[32].mxu1 %vm1389_vm4, %v2266_v11 }
 0x840   : > { %4891 = vmatprep.mubr.msk.bf16.mxu1 %vm5224_vm2, %v5223_v16 }
 0x841   : > { %v5150_v49 = vpop.eup %5149 }
 0x842   : > { %v2257_v63 = vmul.f32 %v5150_v49, %v5142_v22 }
 0x844   : > { %v2261_v33 = vpack.c.bf16 %v2257_v63, %v2257_v63 }
 0x845   : > { %v5152_v5 = vpop.eup %5151 }
 0x846   : > { %v2320_v2 = vsel %vm1389_vm4, %v2261_v33, 0  ;;  %v2258_v34 = vmul.f32 %v5152_v5, %v5144_v25 }
 0x847   : > { %4884 = vmatpush3.bf16.xpose.msra.mxu0 %v2320_v2 }
 0x848   : > { %v2262_v35 = vpack.c.bf16 %v2258_v34, %v2258_v34  ;;  %4895 = vmatprep.subr.bf16.mxu0 %v5223_v16  ;;  %v4612_v34 = vld [vmem:[%s6197_s4] ss:$0 sm:$0xff] }
 0x84a   : > { %v2369_v38 = vsel %vm1389_vm4, %v2262_v35, 0 }
 0x84b   : > { %4890 = vmatpush3.bf16.xpose.msra.mxu1 %v2369_v38 }
 0x84c   : > { %4901 = vmatprep.subr.bf16.mxu1 %v5223_v16 }
 0x84e   : > { %4886 = vmatmul.mubr.msk.bf16.vlgmr.msra.gmra.mrb[36].mxu0 %vm1389_vm4, %v2315_v39 }
 0x84f   : > { %4897 = vmatprep.mubr.msk.bf16.mxu0 %vm5224_vm2, %v5223_v16 }
 0x86b   : > { %v2251_v40 = vpop.xlane.xlu1 %2250 }
 0x86c   : > { %5153 = vrcp.f32 %v2251_v40  ;;  %v4613_v40 = vld [vmem:[%s6198_s1] ss:$0 sm:$0xff] }
 0x86f   : > { %v2364_v41 = vpop.permute.xlu1 %2363 }
 0x870   : > { %4892 = vmatmul.mubr.msk.bf16.vlgmr.msra.gmra.mrb[36].mxu1 %vm1389_vm4, %v2364_v41 }
 0x871   : > { %4902 = vmatpush3.bf16.msra.mxu1 %v5671_v52  ;;  %4905 = vmatprep.mubr.msk.bf16.mxu1 %vm5224_vm2, %v5223_v16 }
 0x872   : > { %4903 = vmatprep.subr.bf16.mxu1 %v5223_v16 }
 0x873   : > { %v2413_v54 = vpop.permute.xlu1 %2412 }
 0x875   : > { %4904 = vmatpush3.bf16.msra.mxu1 %v5675_v58 }
 0x876   : > { %v5154_v42 = vpop.eup %5153 }
 0x877   : > { %v2259_v9 = vmul.f32 %v5154_v42, %v5148_v23 }
 0x879   : > { %v2263_v43 = vpack.c.bf16 %v2259_v9, %v2259_v9 }
 0x87b   : > { %v2418_v50 = vsel %vm1389_vm4, %v2263_v43, 0 }
 0x87c   : > { %4896 = vmatpush3.bf16.xpose.msra.mxu0 %v2418_v50 }
 0x883   : > { %4898 = vmatmul.mubr.msk.bf16.vlgmr.msra.gmra.mrb[40].mxu0 %vm1389_vm4, %v2413_v54  ;;  %v5105_v54 = vld [vmem:[%s5412_s3 + $0x8] sm:$0xff]   ;;  %s6199_s3 = sld [smem:[#allocation8_spill]] }
 0x884   : > { %4911 = vmatprep.mubr.msk.bf16.mxu0 %vm1078_vm1, %v5104_v29 }
 0x8a4   : > { %v2535_v60 = vpop.xlane.xlu1 %2534 }
 0x8a5   : > { %v2539_v37 = vmul.f32 0.03125, %v2535_v60 }
 0x8a7   : > { %v2541_v52 = vsub.f32 %v5730_v48, %v2539_v37  ;;  %v2761_v37 = vld [vmem:[%s5417_s7] sm:$0x3] }
 0x8a9   : > { %v2543_v31 = vmul.f32 %v2541_v52, %v2541_v52 }
 0x8ab   : > { %v2545_v55 = vsel %vm1078_vm1, %v2543_v31, 0.0  ;;  %v5110_v31 = vld [vmem:[%s5423_s25 + $0x18] sm:$0xff]  }
 0x8ac   : > { %2546 = vadd.xlane.f32.xlu1 %v2545_v55 }
 0x912   : > { %v2307_v10 = vpop.f32.mrb[32].mxu1 }
 0x913   : > { %v4881_v56 = vpop.f32.mrb[33].mxu1 }
 0x914   : > { %v2310_v58 = vpop.f32.mrb[34].mxu1 }
 0x915   : > { %v4882_v57 = vpop.f32.mrb[35].mxu1 }
 0x921   : > { %v2356_v59 = vpop.f32.mrb[36].mxu0 }
 0x922   : > { %v2460_v61 = vpack.c.bf16 %v2356_v59, %v2307_v10  ;;  %v4887_v62 = vpop.f32.mrb[37].mxu0 }
 0x923   : > { %v2359_v0 = vpop.f32.mrb[38].mxu0 }
 0x924   : > { %v4888_v1 = vpop.f32.mrb[39].mxu0  ;;  %2462 = vxpose.xlu0.c.b16.start [1/2] (short) (narrow) %v2460_v61, 16 }
 0x939   : > { %v2547_v45 = vpop.xlane.xlu1 %2546 }
 0x93a   : > { %v2551_v32 = vmul.f32 0.03125, %v2547_v45 }
 0x93c   : > { %v2553_v11 = vadd.f32 1e-05, %v2551_v32 }
 0x93e   : > { %5155 = vrsqrt.f32 %v2553_v11 }
 0x943   : > { %v2405_v4 = vpop.f32.mrb[36].mxu1 }
 0x944   : > { %v4893_v6 = vpop.f32.mrb[37].mxu1 }
 0x945   : > { %v2408_v7 = vpop.f32.mrb[38].mxu1 }
 0x946   : > { %v4894_v8 = vpop.f32.mrb[39].mxu1 }
 0x948   : > { %v5156_v5 = vpop.eup %5155 }
 0x949   : > { %v2557_v2 = vmul.f32 %v5156_v5, %v2541_v52  ;;  %v5109_v52 = vld [vmem:[%s5423_s25 + $0x10] sm:$0xff]  }
 0x94b   : > { %v2565_v39 = vmul.f32 %v4612_v34, %v2557_v2 }
 0x94d   : > { %v2573_v42 = vadd.f32 %v4613_v40, %v2565_v39 }
 0x956   : > { %v2454_v12 = vpop.f32.mrb[40].mxu0 }
 0x957   : > { %v2461_v13 = vpack.c.bf16 %v2454_v12, %v2405_v4  ;;  %v4899_v14 = vpop.f32.mrb[41].mxu0 }
 0x958   : > { %v2457_v15 = vpop.f32.mrb[42].mxu0 }
 0x959   : > { %v4900_v17 = vpop.f32.mrb[43].mxu0  ;;  %2463 = vxpose.xlu0.c.b16.end [2/2] (short) (narrow) %v2461_v13, 16 }
 0x9bb   : > { %v2470_v19 = vpop.trf.xlu0 }
 0x9bc   : > { %4906 = vmatmul.mubr.msk.bf16.vlgmr.msra.gmra.mrb[40].mxu1 %vm1078_vm1, %v2470_v19 }
 0xa8f   : > { %v2515_v20 = vpop.f32.mrb[40].mxu1 }
 0xa90   : > { %v2528_v22 = vadd.f32 %v5725_v46, %v2515_v20  ;;  %v4907_v24 = vpop.f32.mrb[41].mxu1  ;;  %v5107_v46 = vld [vmem:[%s5423_s25] sm:$0xff]  }
 0xa91   : > { %v2518_v25 = vpop.f32.mrb[42].mxu1  ;;  %4917 = vmatprep.mubr.msk.bf16.mxu1 %vm1078_vm1, %v5107_v46 }
 0xa92   : > { %v5757_v26 = vadd.f32 %v2528_v22, %v5469_v3  ;;  %v4908_v27 = vpop.f32.mrb[43].mxu1  ;;  %v5106_v3 = vld [vmem:[%s6196_s26] sm:$0xff]  }
 0xa93   : > { %5065 = vmatprep.subr.msk.bf16.mxu1 %vm1078_vm1, %v5106_v3  ;;  %v2694_v36 = vsel %vm1078_vm1, %v5106_v3, 0 }
 0xa94   : > { %v2536_v44 = vsel %vm1078_vm1, %v5757_v26, 0.0  ;;  %4916 = vmatpush3.bf16.xpose.msra.mxu1 %v2694_v36 }
 0xa95   : > { %2537 = vadd.xlane.f32.xlu0 %v2536_v44  ;;  %4937 = vmatprep.subr.bf16.mxu1 %v5223_v16 }
 0xa9b   : > { %4918 = vmatmul.mubr.msk.bf16.vlgmr.msra.gmra.mrb[44].mxu1 %vm1078_vm1, %v5108_v30 }
 0xa9c   : > { %4921 = vmatprep.mubr.msk.bf16.mxu1 %vm1078_vm1, %v5109_v52 }
 0xaa3   : > { %4922 = vmatmul.mubr.msk.bf16.gmra.mrb[48].mxu1 %vm1078_vm1, %v5110_v31 }
 0xaa4   : > { %4939 = vmatprep.mubr.msk.bf16.mxu1 %vm5224_vm2, %v5223_v16 }
 0xb22   : > { %v2538_v53 = vpop.xlane.xlu0 %2537 }
 0xb23   : > { %v2540_v47 = vmul.f32 0.03125, %v2538_v53 }
 0xb25   : > { %v2542_v28 = vsub.f32 %v5757_v26, %v2540_v47 }
 0xb27   : > { %v2544_v51 = vmul.f32 %v2542_v28, %v2542_v28 }
 0xb29   : > { %v2548_v23 = vsel %vm1078_vm1, %v2544_v51, 0.0 }
 0xb2a   : > { %2549 = vadd.xlane.f32.xlu1 %v2548_v23 }
 0xb6e   : > { %v4919_v60 = vpop.f32.mrb[44].mxu1 }
 0xb6f   : > { %v2730_v55 = vpop.f32.mrb[45].mxu1  ;;  %v5833_v25 = vpack.c.bf16 %v4919_v60, %v4919_v60 }
 0xb70   : > { %v5797_v10 = vpack.c.bf16 %v2730_v55, %v2730_v55  ;;  %v4920_v56 = vpop.f32.mrb[46].mxu1 }
 0xb71   : > { %v2733_v58 = vpop.f32.mrb[47].mxu1  ;;  %v5835_v27 = vpack.c.bf16 %v4920_v56, %v4920_v56  ;;  %v3011_v53 = vsel %vm1393_vm3, %v5833_v25, 0 }
 0xb72   : > { %v2887_v57 = vsel %vm1393_vm3, %v5797_v10, 0  ;;  %v5805_v59 = vpack.c.bf16 %v2733_v58, %v2733_v58 }
 0xb74   : > { %v2949_v61 = vsel %vm1393_vm3, %v5805_v59, 0 }
 0xb75   : > { %4938 = vmatpush3.bf16.msra.mxu1 %v2949_v61 }
 0xb76   : > { %4949 = vmatprep.subr.bf16.mxu1 %v5223_v16  ;;  %v5825_v15 = vpop.f32.mrb[48].mxu1 }
 0xb77   : > { %v5827_v19 = vpop.f32.mrb[49].mxu1 }
 0xb78   : > { %v5829_v22 = vpop.f32.mrb[50].mxu1 }
 0xb79   : > { %v5831_v24 = vpop.f32.mrb[51].mxu1 }
 0xbb7   : > { %v2550_v49 = vpop.xlane.xlu1 %2549 }
 0xbb8   : > { %v2552_v63 = vmul.f32 0.03125, %v2550_v49 }
 0xbba   : > { %v2554_v33 = vadd.f32 1e-05, %v2552_v63 }
 0xbbc   : > { %5157 = vrsqrt.f32 %v2554_v33 }
 0xbc6   : > { %v5158_v35 = vpop.eup %5157 }
 0xbc7   : > { %v2558_v38 = vmul.f32 %v5158_v35, %v2542_v28  ;;  %v3073_v28 = vsel %vm1393_vm3, %v5835_v27, 0 }
 0xbc9   : > { %v2566_v41 = vmul.f32 %v4612_v34, %v2558_v38 }
 0xbcb   : > { %v2574_v9 = vadd.f32 %v4613_v40, %v2566_v41 }
 0xbcd   : > { %v2575_v43 = vpack.c.bf16 %v2574_v9, %v2573_v42 }
 0xbcf   : > { %5064 = vmatprep.subr.msk.bf16.mxu0 %vm1078_vm1, %v2575_v43  ;;  %v2597_v50 = vsel %vm1078_vm1, %v2575_v43, 0 }
 0xbd0   : > { %4910 = vmatpush3.bf16.xpose.msra.mxu0 %v2597_v50 }
 0xbd1   : > { %4925 = vmatprep.subr.bf16.mxu0 %v5223_v16 }
 0xbd7   : > { %4912 = vmatmul.mubr.msk.bf16.vlgmr.msra.gmra.mrb[44].mxu0 %vm1078_vm1, %v5105_v54 }
 0xbd8   : > { %4926 = vmatpush3.bf16.xpose.msra.mxu0 %v2694_v36  ;;  %4927 = vmatprep.mubr.msk.bf16.mxu0 %vm5224_vm2, %v5223_v16 }
 0xbd9   : > { %4931 = vmatprep.subr.bf16.mxu0 %v5223_v16 }
 0xbdf   : > { %4928 = vmatmul.mubr.msk.bf16.vlgmr.msra.gmra.mrb[48].mxu0 %vm1078_vm1, %v2761_v37 }
 0xbe0   : > { %4933 = vmatprep.mubr.msk.bf16.mxu0 %vm5224_vm2, %v5223_v16  ;;  %4932 = vmatpush3.bf16.msra.mxu0 %v2887_v57 }
 0xbe1   : > { %4943 = vmatprep.subr.bf16.mxu0 %v5223_v16 }
 0xcaa   : > { %v4913_v62 = vpop.f32.mrb[44].mxu0 }
 0xcab   : > { %v2633_v0 = vpop.f32.mrb[45].mxu0  ;;  %v5818_v8 = vpack.c.bf16 %v4913_v62, %v4913_v62 }
 0xcac   : > { %v5813_v1 = vpack.c.bf16 %v2633_v0, %v2633_v0  ;;  %v4914_v4 = vpop.f32.mrb[46].mxu0 }
 0xcad   : > { %v2636_v6 = vpop.f32.mrb[47].mxu0  ;;  %v5821_v12 = vpack.c.bf16 %v4914_v4, %v4914_v4 }
 0xcae   : > { %v5815_v7 = vpack.c.bf16 %v2636_v6, %v2636_v6  ;;  %2867 = vxpose.xlu0.c.b16.start.end [1/1] (short) (narrow) %v5813_v1, 16 }
 0xcb0   : > { %2929 = vxpose.xlu1.c.b16.start.end [1/1] (short) (narrow) %v5815_v7, 16 }
 0xcb2   : > { %2991 = vxpose.xlu0.c.b16.start.end [1/1] (short) (narrow) %v5818_v8, 16  ;;  %v2799_v13 = vpop.f32.mrb[48].mxu0 }
 0xcb3   : > { %v4929_v14 = vpop.f32.mrb[49].mxu0  ;;  %v2829_v29 = vrot.slane %v2799_v13, %v5566_v18 }
 0xcb4   : > { %3053 = vxpose.xlu1.c.b16.start.end [1/1] (short) (narrow) %v5821_v12, 16  ;;  %v2802_v17 = vpop.f32.mrb[50].mxu0 }
 0xcb5   : > { %v4930_v20 = vpop.f32.mrb[51].mxu0  ;;  %v2830_v3 = vcombine.high %v2829_v29, %v2829_v29  ;;  %v2837_v46 = vrot.slane %v2829_v29, %v5566_v18 }
 0xcb7   : > { %v2844_v36 = vrot.slane %v2830_v3, %v5566_v18  ;;  %v5859_v30 = vrot.slane %v2837_v46, %v5570_v21  ;;  %v2845_v38 = vcombine.high %v2837_v46, %v2837_v46 }
 0xcb9   : > { %v5862_v45 = vrot.slane %v2844_v36, %v5570_v21  ;;  %v2846_v41 = vcombine.high %v2844_v36, %v2844_v36  ;;  %v5869_v42 = vrot.slane %v2845_v38, %v5570_v21 }
 0xcbb   : > { %v5873_v54 = vrot.slane %v2846_v41, %v5570_v21 }
 0xd14   : > { %v2875_v44 = vpop.trf.xlu0 }
 0xd15   : > { %4934 = vmatmul.mubr.msk.bf16.vlgmr.msra.gmra.mrb[52].mxu0 %vm1389_vm4, %v2875_v44 }
 0xd16   : > { %4944 = vmatpush3.bf16.msra.mxu0 %v3011_v53  ;;  %v2937_v47 = vpop.trf.xlu1  ;;  %4945 = vmatprep.mubr.msk.bf16.mxu0 %vm5224_vm2, %v5223_v16 }
 0xd17   : > { %4940 = vmatmul.mubr.msk.bf16.vlgmr.msra.gmra.mrb[52].mxu1 %vm1389_vm4, %v2937_v47  ;;  %4955 = vmatprep.subr.bf16.mxu0 %v5223_v16 }
 0xd18   : > { %4950 = vmatpush3.bf16.msra.mxu1 %v3073_v28  ;;  %4951 = vmatprep.mubr.msk.bf16.mxu1 %vm5224_vm2, %v5223_v16  ;;  %v2999_v51 = vpop.trf.xlu0 }
 0xd19   : > { %4961 = vmatprep.subr.bf16.mxu1 %v5223_v16 }
 0xd1a   : > { %v3061_v23 = vpop.trf.xlu1 }
 0xd1d   : > { %4946 = vmatmul.mubr.msk.bf16.vlgmr.msra.gmra.mrb[56].mxu0 %vm1389_vm4, %v2999_v51 }
 0xd1e   : > { %4957 = vmatprep.mubr.msk.bf16.mxu0 %vm5224_vm2, %v5223_v16 }
 0xd1f   : > { %4952 = vmatmul.mubr.msk.bf16.vlgmr.msra.gmra.mrb[56].mxu1 %vm1389_vm4, %v3061_v23 }
 0xd20   : > { %4963 = vmatprep.mubr.msk.bf16.mxu1 %vm5224_vm2, %v5223_v16 }
 0xde8   : > { %v2923_v32 = vpop.f32.mrb[52].mxu0 }
 0xde9   : > { %v2924_v11 = vadd.f32 %v2923_v32, %v5859_v30  ;;  %v4935_v49 = vpop.f32.mrb[53].mxu0 }
 0xdea   : > { %v2926_v63 = vpop.f32.mrb[54].mxu0  ;;  %v2985_v33 = vpop.f32.mrb[52].mxu1 }
 0xdeb   : > { %v2986_v5 = vadd.f32 %v2985_v33, %v5862_v45  ;;  %v4936_v2 = vpop.f32.mrb[55].mxu0  ;;  %v4941_v34 = vpop.f32.mrb[53].mxu1  ;;  %v3115_v35 = vsel %vm1389_vm4, %v2924_v11, -inf }
 0xdec   : > { %3116 = vmax.xlane.f32.xlu0 %v3115_v35  ;;  %v2988_v18 = vpop.f32.mrb[54].mxu1 }
 0xded   : > { %v4942_v39 = vpop.f32.mrb[55].mxu1  ;;  %v3118_v40 = vsel %vm1389_vm4, %v2986_v5, -inf }
 0xdee   : > { %3119 = vmax.xlane.f32.xlu1 %v3118_v40  ;;  %v5908_v39 = vpack.c.bf16 %v5827_v19, %v5827_v19 }
 0xdf0   : > { %v3047_v9 = vpop.f32.mrb[56].mxu0 }
 0xdf1   : > { %v3048_v43 = vadd.f32 %v3047_v9, %v5869_v42  ;;  %v4947_v50 = vpop.f32.mrb[57].mxu0 }
 0xdf2   : > { %v3050_v60 = vpop.f32.mrb[58].mxu0  ;;  %v3109_v37 = vpop.f32.mrb[56].mxu1 }
 0xdf3   : > { %v3110_v52 = vadd.f32 %v3109_v37, %v5873_v54  ;;  %v4948_v31 = vpop.f32.mrb[59].mxu0  ;;  %v4953_v55 = vpop.f32.mrb[57].mxu1  ;;  %v3121_v56 = vsel %vm1389_vm4, %v3048_v43, -inf }
 0xdf4   : > { %3122 = vmax.xlane.f32.xlu0 %v3121_v56  ;;  %v3112_v58 = vpop.f32.mrb[58].mxu1  ;;  %v5960_v56 = vld [vmem:[%s6199_s3 + $0x8] sm:$0xff]  }
 0xdf5   : > { %v4954_v57 = vpop.f32.mrb[59].mxu1  ;;  %v3124_v61 = vsel %vm1389_vm4, %v3110_v52, -inf }
 0xdf6   : > { %3125 = vmax.xlane.f32.xlu1 %v3124_v61 }
 0xe79   : > { %v3117_v62 = vpop.xlane.xlu0 %3116 }
 0xe7a   : > { %v3127_v0 = vsub.f32 %v2924_v11, %v3117_v62 }
 0xe7b   : > { %v3120_v4 = vpop.xlane.xlu1 %3119 }
 0xe7c   : > { %v3131_v6 = vmul.f32 1.442695, %v3127_v0  ;;  %v3128_v21 = vsub.f32 %v2986_v5, %v3120_v4 }
 0xe7e   : > { %5159 = vpow2.f32 %v3131_v6  ;;  %v3133_v13 = vmul.f32 1.442695, %v3128_v21 }
 0xe80   : > { %5161 = vpow2.f32 %v3133_v13 }
 0xe81   : > { %v3123_v14 = vpop.xlane.xlu0 %3122 }
 0xe82   : > { %v3129_v17 = vsub.f32 %v3048_v43, %v3123_v14  ;;  %v5912_v43 = vpack.c.bf16 %v5831_v24, %v5831_v24  ;;  %v5930_v24 = vpack.c.bf16 %v5825_v15, %v5825_v15 }
 0xe83   : > { %v3126_v20 = vpop.xlane.xlu1 %3125 }
 0xe84   : > { %v3135_v44 = vmul.f32 1.442695, %v3129_v17  ;;  %v3130_v53 = vsub.f32 %v3110_v52, %v3126_v20  ;;  %v5936_v52 = vpack.c.bf16 %v5829_v22, %v5829_v22 }
 0xe86   : > { %5163 = vpow2.f32 %v3135_v44  ;;  %v3137_v47 = vmul.f32 1.442695, %v3130_v53 }
 0xe88   : > { %v5160_v28 = vpop.eup %5159  ;;  %5165 = vpow2.f32 %v3137_v47 }
 0xe89   : > { %v3139_v51 = vsel %vm1389_vm4, %v5160_v28, 0.0 }
 0xe8a   : > { %v5162_v23 = vpop.eup %5161  ;;  %3140 = vadd.xlane.f32.xlu0 %v3139_v51 }
 0xe8b   : > { %v3142_v29 = vsel %vm1389_vm4, %v5162_v23, 0.0 }
 0xe8c   : > { %3143 = vadd.xlane.f32.xlu1 %v3142_v29 }
 0xe90   : > { %v5164_v3 = vpop.eup %5163 }
 0xe91   : > { %v3145_v46 = vsel %vm1389_vm4, %v5164_v3, 0.0 }
 0xe92   : > { %v5166_v36 = vpop.eup %5165  ;;  %3146 = vadd.xlane.f32.xlu0 %v3145_v46 }
 0xe93   : > { %v3148_v32 = vsel %vm1389_vm4, %v5166_v36, 0.0 }
 0xe94   : > { %3149 = vadd.xlane.f32.xlu1 %v3148_v32 }
 0xea5   : > { %3493 = vrot.lane.b32.xlu1 %v5815_v7, %s5226_s2 }
 0xea8   : > { %3421 = vrot.lane.b32.xlu0 %v5813_v1, %s5226_s2 }
 0xea9   : > { %3565 = vrot.lane.b32.xlu1 %v5818_v8, %s5226_s2 }
 0xeac   : > { %3441 = vrot.lane.b32.xlu0 %v5797_v10, %s5226_s2 }
 0xead   : > { %3637 = vrot.lane.b32.xlu1 %v5821_v12, %s5226_s2 }
 0xeb0   : > { %3585 = vrot.lane.b32.xlu0 %v5833_v25, %s5226_s2 }
 0xeb1   : > { %3513 = vrot.lane.b32.xlu1 %v5805_v59, %s5226_s2 }
 0xeb5   : > { %3657 = vrot.lane.b32.xlu1 %v5835_v27, %s5226_s2 }
 0xf17   : > { %v3141_v7 = vpop.xlane.xlu0 %3140 }
 0xf18   : > { %5167 = vrcp.f32 %v3141_v7 }
 0xf19   : > { %v3144_v1 = vpop.xlane.xlu1 %3143 }
 0xf1a   : > { %5169 = vrcp.f32 %v3144_v1 }
 0xf1f   : > { %v3147_v8 = vpop.xlane.xlu0 %3146 }
 0xf20   : > { %5171 = vrcp.f32 %v3147_v8 }
 0xf21   : > { %v3150_v11 = vpop.xlane.xlu1 %3149 }
 0xf22   : > { %v5168_v10 = vpop.eup %5167  ;;  %5173 = vrcp.f32 %v3150_v11 }
 0xf23   : > { %v3422_v49 = vpop.permute.xlu0 %3421  ;;  %v3155_v12 = vmul.f32 %v5168_v10, %v5160_v28 }
 0xf24   : > { %v5170_v63 = vpop.eup %5169  ;;  %3424 = vxpose.xlu1.c.b16.start.end [1/1] (short) (narrow) %v3422_v49, 16 }
 0xf25   : > { %v5898_v25 = vpop.permute.xlu1 %3493  ;;  %v3159_v33 = vpack.c.bf16 %v3155_v12, %v3155_v12  ;;  %v3156_v59 = vmul.f32 %v5170_v63, %v5162_v23 }
 0xf27   : > { %v3167_v5 = vsel %vm1389_vm4, %v3159_v33, 0  ;;  %v3160_v27 = vpack.c.bf16 %v3156_v59, %v3156_v59  ;;  %v3442_v37 = vpop.permute.xlu0 %3441 }
 0xf28   : > { %4956 = vmatpush3.bf16.xpose.msra.mxu0 %v3167_v5 }
 0xf29   : > { %v5901_v2 = vpop.permute.xlu1 %3565  ;;  %v3213_v34 = vsel %vm1389_vm4, %v3160_v27, 0  ;;  %4967 = vmatprep.subr.bf16.mxu0 %v5223_v16 }
 0xf2a   : > { %v5172_v35 = vpop.eup %5171  ;;  %4962 = vmatpush3.bf16.xpose.msra.mxu1 %v3213_v34 }
 0xf2b   : > { %v3157_v38 = vmul.f32 %v5172_v35, %v5164_v3  ;;  %4973 = vmatprep.subr.bf16.mxu1 %v5223_v16 }
 0xf2c   : > { %v5174_v18 = vpop.eup %5173 }
 0xf2d   : > { %v3638_v40 = vpop.permute.xlu1 %3637  ;;  %v3161_v41 = vpack.c.bf16 %v3157_v38, %v3157_v38  ;;  %v3158_v9 = vmul.f32 %v5174_v18, %v5166_v36 }
 0xf2e   : > { %3640 = vxpose.xlu1.c.b16.start.end [1/1] (short) (narrow) %v3638_v40, 16 }
 0xf2f   : > { %4958 = vmatmul.mubr.msk.bf16.vlgmr.msra.gmra.mrb[60].mxu0 %vm1389_vm4, %v5908_v39  ;;  %v3259_v50 = vsel %vm1389_vm4, %v3161_v41, 0  ;;  %v3162_v60 = vpack.c.bf16 %v3158_v9, %v3158_v9 }
 0xf30   : > { %4968 = vmatpush3.bf16.xpose.msra.mxu0 %v3259_v50  ;;  %4969 = vmatprep.mubr.msk.bf16.mxu0 %vm5224_vm2, %v5223_v16 }
 0xf31   : > { %4964 = vmatmul.mubr.msk.bf16.vlgmr.msra.gmra.mrb[60].mxu1 %vm1389_vm4, %v5912_v43  ;;  %v3305_v19 = vsel %vm1389_vm4, %v3162_v60, 0  ;;  %4979 = vmatprep.subr.bf16.mxu0 %v5223_v16  ;;  %v3514_v15 = vpop.permute.xlu1 %3513 }
 0xf32   : > { %3515 = vrot.lane.b32.xlu1 %v5862_v45, %s5226_s2  ;;  %4974 = vmatpush3.bf16.xpose.msra.mxu1 %v3305_v19  ;;  %v3450_v45 = vsel %vm1393_vm3, %v3442_v37, 0  ;;  %v3522_v7 = vsel %vm1393_vm3, %v3514_v15, 0 }
 0xf33   : > { %4975 = vmatprep.mubr.msk.bf16.mxu1 %vm5224_vm2, %v5223_v16  ;;  %4987 = vmatprep.subr.bf16.mxu1 %v5223_v16 }
 0xf35   : > { %v3658_v22 = vpop.permute.xlu1 %3657 }
 0xf36   : > { %3587 = vrot.lane.b32.xlu1 %v5869_v42, %s5226_s2  ;;  %v3586_v42 = vpop.permute.xlu0 %3585  ;;  %v3666_v8 = vsel %vm1393_vm3, %v3658_v22, 0 }
 0xf37   : > { %4970 = vmatmul.mubr.msk.bf16.vlgmr.msra.gmra.mrb[64].mxu0 %vm1389_vm4, %v5930_v24  ;;  %v3594_v55 = vsel %vm1393_vm3, %v3586_v42, 0 }
 0xf38   : > { %4983 = vmatprep.mubr.msk.bf16.mxu0 %vm5224_vm2, %v5223_v16 }
 0xf39   : > { %4976 = vmatmul.mubr.msk.bf16.vlgmr.msra.gmra.mrb[64].mxu1 %vm1389_vm4, %v5936_v52 }
 0xf3a   : > { %3659 = vrot.lane.b32.xlu1 %v5873_v54, %s5226_s2  ;;  %4988 = vmatpush3.bf16.msra.mxu1 %v3450_v45  ;;  %v5956_v54 = vld [vmem:[%s6199_s3] sm:$0xff]  }
 0xf3b   : > { %4989 = vmatprep.mubr.msk.bf16.mxu1 %vm5224_vm2, %v5223_v16  ;;  %4999 = vmatprep.subr.bf16.mxu1 %v5223_v16 }
 0xf3c   : > { %4980 = vmatpush3.bf16.msra.mxu0 %v5956_v54 }
 0xf3d   : > { %4981 = vmatprep.subr.bf16.mxu0 %v5223_v16 }
 0xf40   : > { %4982 = vmatpush3.bf16.msra.mxu0 %v5960_v56 }
 0xf41   : > { %4993 = vmatprep.subr.bf16.mxu0 %v5223_v16 }
 0xf8a   : > { %v3432_v31 = vpop.trf.xlu1 }
 0xf8b   : > { %4990 = vmatmul.mubr.msk.bf16.vlgmr.msra.gmra.mrb[68].mxu1 %vm1389_vm4, %v3432_v31 }
 0xf8c   : > { %5000 = vmatpush3.bf16.msra.mxu1 %v3594_v55  ;;  %5001 = vmatprep.mubr.msk.bf16.mxu1 %vm5224_vm2, %v5223_v16 }
 0xf8d   : > { %5011 = vmatprep.subr.bf16.mxu1 %v5223_v16 }
 0xf94   : > { %v3648_v11 = vpop.trf.xlu1 }
0x1002   : > { %v3203_v58 = vpop.f32.mrb[60].mxu0 }
0x1003   : > { %v4959_v57 = vpop.f32.mrb[61].mxu0 }
0x1004   : > { %v3206_v61 = vpop.f32.mrb[62].mxu0  ;;  %v3249_v62 = vpop.f32.mrb[60].mxu1 }
0x1005   : > { %v3347_v0 = vpack.c.bf16 %v3249_v62, %v3203_v58  ;;  %v4960_v4 = vpop.f32.mrb[63].mxu0  ;;  %v4965_v6 = vpop.f32.mrb[61].mxu1 }
0x1006   : > { %v3252_v21 = vpop.f32.mrb[62].mxu1 }
0x1007   : > { %3349 = vxpose.xlu0.c.b16.start [1/2] (short) (narrow) %v3347_v0, 16  ;;  %v4966_v13 = vpop.f32.mrb[63].mxu1 }
0x100a   : > { %v3295_v14 = vpop.f32.mrb[64].mxu0 }
0x100b   : > { %v4971_v17 = vpop.f32.mrb[65].mxu0 }
0x100c   : > { %v3298_v20 = vpop.f32.mrb[66].mxu0  ;;  %v3341_v44 = vpop.f32.mrb[64].mxu1 }
0x100d   : > { %v3348_v53 = vpack.c.bf16 %v3341_v44, %v3295_v14  ;;  %v4972_v47 = vpop.f32.mrb[67].mxu0  ;;  %v4977_v28 = vpop.f32.mrb[65].mxu1 }
0x100e   : > { %v3344_v51 = vpop.f32.mrb[66].mxu1 }
0x100f   : > { %3350 = vxpose.xlu0.c.b16.end [2/2] (short) (narrow) %v3348_v53, 16  ;;  %v4978_v23 = vpop.f32.mrb[67].mxu1 }
0x1013   : > { %3496 = vxpose.xlu0.c.b16.start.end [1/1] (short) (narrow) %v5898_v25, 16 }
0x1017   : > { %3568 = vxpose.xlu0.c.b16.start.end [1/1] (short) (narrow) %v5901_v2, 16  ;;  %v3516_v2 = vpop.permute.xlu1 %3515 }
0x101b   : > { %v3588_v40 = vpop.permute.xlu1 %3587 }
0x101f   : > { %v3660_v42 = vpop.permute.xlu1 %3659 }
0x1020   : > { %3443 = vrot.lane.b32.xlu0 %v5859_v30, %s5226_s2 }
0x105e   : > { %v3486_v29 = vpop.f32.mrb[68].mxu1 }
0x105f   : > { %v4991_v3 = vpop.f32.mrb[69].mxu1 }
0x1060   : > { %v3489_v46 = vpop.f32.mrb[70].mxu1 }
0x1061   : > { %v4992_v36 = vpop.f32.mrb[71].mxu1 }
0x1071   : > { %v3357_v32 = vpop.trf.xlu0 }
0x1072   : > { %4984 = vmatmul.mubr.msk.bf16.vlgmr.msra.gmra.mrb[68].mxu0 %vm1078_vm1, %v3357_v32 }
0x1073   : > { %4994 = vmatpush3.bf16.msra.mxu0 %v3522_v7  ;;  %4995 = vmatprep.mubr.msk.bf16.mxu0 %vm5224_vm2, %v5223_v16 }
0x1074   : > { %5005 = vmatprep.subr.bf16.mxu0 %v5223_v16 }
0x1079   : > { %v3504_v1 = vpop.trf.xlu0 }
0x107a   : > { %4996 = vmatmul.mubr.msk.bf16.vlgmr.msra.gmra.mrb[72].mxu0 %vm1389_vm4, %v3504_v1 }
0x107b   : > { %5006 = vmatpush3.bf16.msra.mxu0 %v3666_v8  ;;  %5007 = vmatprep.mubr.msk.bf16.mxu0 %vm5224_vm2, %v5223_v16 }
0x107c   : > { %5017 = vmatprep.subr.bf16.mxu0 %v5223_v16 }
0x107d   : > { %v3576_v30 = vpop.trf.xlu0 }
0x107e   : > { %5002 = vmatmul.mubr.msk.bf16.vlgmr.msra.gmra.mrb[72].mxu1 %vm1389_vm4, %v3576_v30 }
0x107f   : > { %5013 = vmatprep.mubr.msk.bf16.mxu1 %vm5224_vm2, %v5223_v16 }
0x1082   : > { %5008 = vmatmul.mubr.msk.bf16.vlgmr.msra.gmra.mrb[76].mxu0 %vm1389_vm4, %v3648_v11 }
0x1083   : > { %5019 = vmatprep.mubr.msk.bf16.mxu0 %vm5224_vm2, %v5223_v16 }
0x1092   : > { %v3444_v10 = vpop.permute.xlu0 %3443 }
0x1093   : > { %v3487_v49 = vadd.f32 %v3486_v29, %v3444_v10 }
0x1095   : > { %v3708_v12 = vsel %vm1389_vm4, %v3487_v49, -inf }
0x1096   : > { %3709 = vmax.xlane.f32.xlu0 %v3708_v12 }
0x1123   : > { %v3710_v63 = vpop.xlane.xlu0 %3709 }
0x1124   : > { %v3720_v59 = vsub.f32 %v3487_v49, %v3710_v63 }
0x1126   : > { %v3724_v34 = vmul.f32 1.442695, %v3720_v59 }
0x1128   : > { %5175 = vpow2.f32 %v3724_v34 }
0x1132   : > { %v5176_v0 = vpop.eup %5175 }
0x1133   : > { %v3732_v4 = vsel %vm1389_vm4, %v5176_v0, 0.0 }
0x1145   : > { %v5986_v25 = vpop.f32.mrb[68].mxu0 }
0x1146   : > { %v4985_v33 = vpop.f32.mrb[69].mxu0 }
0x1147   : > { %v3417_v5 = vpop.f32.mrb[70].mxu0 }
0x1148   : > { %v4986_v27 = vpop.f32.mrb[71].mxu0 }
0x114d   : > { %v3558_v35 = vpop.f32.mrb[72].mxu0 }
0x114e   : > { %v3559_v38 = vadd.f32 %v3558_v35, %v3516_v2  ;;  %v4997_v18 = vpop.f32.mrb[73].mxu0 }
0x114f   : > { %v3561_v41 = vpop.f32.mrb[74].mxu0 }
0x1150   : > { %v4998_v9 = vpop.f32.mrb[75].mxu0  ;;  %v3711_v50 = vsel %vm1389_vm4, %v3559_v38, -inf }
0x1151   : > { %3712 = vmax.xlane.f32.xlu1 %v3711_v50  ;;  %v3630_v60 = vpop.f32.mrb[72].mxu1 }
0x1152   : > { %v3631_v19 = vadd.f32 %v3630_v60, %v3588_v40  ;;  %v5003_v37 = vpop.f32.mrb[73].mxu1 }
0x1153   : > { %v3633_v45 = vpop.f32.mrb[74].mxu1 }
0x1154   : > { %v3714_v15 = vsel %vm1389_vm4, %v3631_v19, -inf  ;;  %v5004_v22 = vpop.f32.mrb[75].mxu1 }
0x1155   : > { %v3702_v31 = vpop.f32.mrb[76].mxu0  ;;  %3715 = vmax.xlane.f32.xlu0 %v3714_v15 }
0x1156   : > { %v3703_v55 = vadd.f32 %v3702_v31, %v3660_v42  ;;  %v5009_v58 = vpop.f32.mrb[77].mxu0 }
0x1157   : > { %v3705_v57 = vpop.f32.mrb[78].mxu0 }
0x1158   : > { %v3717_v61 = vsel %vm1389_vm4, %v3703_v55, -inf  ;;  %v5010_v62 = vpop.f32.mrb[79].mxu0 }
0x1159   : > { %3718 = vmax.xlane.f32.xlu0 %v3717_v61 }
0x115d   : > { %3733 = vadd.xlane.f32.xlu0 %v3732_v4 }
0x11de   : > { %v3713_v6 = vpop.xlane.xlu1 %3712 }
0x11df   : > { %v3721_v21 = vsub.f32 %v3559_v38, %v3713_v6 }
0x11e1   : > { %v3726_v13 = vmul.f32 1.442695, %v3721_v21 }
0x11e2   : > { %v3716_v14 = vpop.xlane.xlu0 %3715 }
0x11e3   : > { %5177 = vpow2.f32 %v3726_v13  ;;  %v3722_v17 = vsub.f32 %v3631_v19, %v3716_v14 }
0x11e5   : > { %v3728_v20 = vmul.f32 1.442695, %v3722_v17 }
0x11e6   : > { %v3719_v44 = vpop.xlane.xlu0 %3718 }
0x11e7   : > { %5179 = vpow2.f32 %v3728_v20  ;;  %v3723_v32 = vsub.f32 %v3703_v55, %v3719_v44 }
0x11e9   : > { %v3730_v7 = vmul.f32 1.442695, %v3723_v32 }
0x11ea   : > { %v3734_v53 = vpop.xlane.xlu0 %3733 }
0x11eb   : > { %5181 = vrcp.f32 %v3734_v53 }
0x11ec   : > { %5183 = vpow2.f32 %v3730_v7  ;;  %v5113_v7 = vld [vmem:[%s5445_s11] sm:$0xff]  }
0x11ed   : > { %v5178_v47 = vpop.eup %5177 }
0x11ee   : > { %v3735_v28 = vsel %vm1389_vm4, %v5178_v47, 0.0 }
0x11ef   : > { %3736 = vadd.xlane.f32.xlu1 %v3735_v28 }
0x11f1   : > { %v5180_v51 = vpop.eup %5179 }
0x11f2   : > { %v3738_v23 = vsel %vm1389_vm4, %v5180_v51, 0.0 }
0x11f3   : > { %3739 = vadd.xlane.f32.xlu0 %v3738_v23 }
0x11f5   : > { %v5182_v29 = vpop.eup %5181 }
0x11f6   : > { %v3748_v3 = vmul.f32 %v5182_v29, %v5176_v0  ;;  %v5184_v1 = vpop.eup %5183 }
0x11f7   : > { %v3741_v8 = vsel %vm1389_vm4, %v5184_v1, 0.0 }
0x11f8   : > { %v3752_v46 = vpack.c.bf16 %v3748_v3, %v3748_v3 }
0x11fa   : > { %v3763_v36 = vsel %vm1389_vm4, %v3752_v46, 0 }
0x11fb   : > { %5012 = vmatpush3.bf16.xpose.msra.mxu1 %v3763_v36 }
0x11fc   : > { %5023 = vmatprep.subr.bf16.mxu1 %v5223_v16 }
0x1200   : > { %3806 = vrot.lane.b32.xlu1 %v5912_v43, %s5226_s2  ;;  %v6010_v43 = vld [vmem:[%s6200_s30] ss:$0 sm:$0xff] }
0x1209   : > { %3757 = vrot.lane.b32.xlu0 %v5908_v39, %s5226_s2  ;;  %v4019_v39 = vadd.f32 %v6010_v43, %v5986_v25 }
0x120b   : > { %v6015_v30 = vadd.f32 %v4019_v39, %v5730_v48 }
0x120d   : > { %v4025_v11 = vsel %vm1078_vm1, %v6015_v30, 0.0 }
0x1224   : > { %3742 = vadd.xlane.f32.xlu1 %v3741_v8  ;;  %v5116_v8 = vld [vmem:[%s5454_s23 + $0x8] sm:$0xff]  }
0x1235   : > { %3855 = vrot.lane.b32.xlu1 %v5930_v24, %s5226_s2 }
0x1239   : > { %3904 = vrot.lane.b32.xlu1 %v5936_v52, %s5226_s2  ;;  %s6202_s2 = scalar_lea.vmem %s6201_s19, %s5369_s5 }
0x125d   : > { %4026 = vadd.xlane.f32.xlu1 %v4025_v11 }
0x127c   : > { %v3737_v24 = vpop.xlane.xlu1 %3736 }
0x127d   : > { %5185 = vrcp.f32 %v3737_v24 }
0x1280   : > { %v3740_v10 = vpop.xlane.xlu0 %3739  ;;  %v3807_v27 = vpop.permute.xlu1 %3806 }
0x1281   : > { %5187 = vrcp.f32 %v3740_v10 }
0x1284   : > { %v3758_v52 = vpop.permute.xlu0 %3757 }
0x1285   : > { %5014 = vmatmul.mubr.msk.bf16.vlgmr.msra.gmra.mrb[76].mxu1 %vm1389_vm4, %v3758_v52 }
0x1286   : > { %5025 = vmatprep.mubr.msk.bf16.mxu1 %vm5224_vm2, %v5223_v16 }
0x1287   : > { %v5186_v49 = vpop.eup %5185 }
0x1288   : > { %v3749_v12 = vmul.f32 %v5186_v49, %v5178_v47 }
0x128a   : > { %v3753_v63 = vpack.c.bf16 %v3749_v12, %v3749_v12 }
0x128b   : > { %v5188_v25 = vpop.eup %5187 }
0x128c   : > { %v3812_v48 = vsel %vm1389_vm4, %v3753_v63, 0  ;;  %v3750_v33 = vmul.f32 %v5188_v25, %v5180_v51  ;;  %v4649_v63 = vld [vmem:[%s6202_s2] ss:$0 sm:$0xff] }
0x128d   : > { %5018 = vmatpush3.bf16.xpose.msra.mxu0 %v3812_v48 }
0x128e   : > { %v3754_v59 = vpack.c.bf16 %v3750_v33, %v3750_v33  ;;  %5029 = vmatprep.subr.bf16.mxu0 %v5223_v16 }
0x1290   : > { %v3861_v5 = vsel %vm1389_vm4, %v3754_v59, 0  ;;  %v4650_v59 = vld [vmem:[%s6203_s6] ss:$0 sm:$0xff] }
0x1291   : > { %5024 = vmatpush3.bf16.xpose.msra.mxu1 %v3861_v5 }
0x1292   : > { %5035 = vmatprep.subr.bf16.mxu1 %v5223_v16 }
0x1294   : > { %5020 = vmatmul.mubr.msk.bf16.vlgmr.msra.gmra.mrb[80].mxu0 %vm1389_vm4, %v3807_v27 }
0x1295   : > { %5031 = vmatprep.mubr.msk.bf16.mxu0 %vm5224_vm2, %v5223_v16 }
0x12b1   : > { %v3743_v2 = vpop.xlane.xlu1 %3742 }
0x12b2   : > { %5189 = vrcp.f32 %v3743_v2 }
0x12b5   : > { %v3856_v34 = vpop.permute.xlu1 %3855 }
0x12b6   : > { %5026 = vmatmul.mubr.msk.bf16.vlgmr.msra.gmra.mrb[80].mxu1 %vm1389_vm4, %v3856_v34 }
0x12b7   : > { %5036 = vmatpush3.bf16.msra.mxu1 %v5956_v54  ;;  %5039 = vmatprep.mubr.msk.bf16.mxu1 %vm5224_vm2, %v5223_v16 }
0x12b8   : > { %5037 = vmatprep.subr.bf16.mxu1 %v5223_v16 }
0x12b9   : > { %v3905_v41 = vpop.permute.xlu1 %3904 }
0x12bb   : > { %5038 = vmatpush3.bf16.msra.mxu1 %v5960_v56 }
0x12bc   : > { %v5190_v35 = vpop.eup %5189  ;;  %5051 = vmatprep.subr.bf16.mxu1 %v5223_v16 }
0x12bd   : > { %v3751_v38 = vmul.f32 %v5190_v35, %v5184_v1  ;;  %v5114_v1 = vld [vmem:[%s5445_s11 + $0x8] sm:$0xff]   ;;  %v5117_v35 = vld [vmem:[%s5454_s23 + $0x10] sm:$0xff]  }
0x12bf   : > { %v3755_v18 = vpack.c.bf16 %v3751_v38, %v3751_v38  ;;  %v5118_v38 = vld [vmem:[%s5454_s23 + $0x18] sm:$0xff]  }
0x12c1   : > { %v3910_v40 = vsel %vm1389_vm4, %v3755_v18, 0  ;;  %v4651_v18 = vld [vmem:[%s1047_s13] ss:$0 sm:$0xff]  ;;  %s6206_s13 = sld [smem:[#allocation3_spill]] }
0x12c2   : > { %5030 = vmatpush3.bf16.xpose.msra.mxu0 %v3910_v40 }
0x12c3   : > { %5043 = vmatprep.subr.bf16.mxu0 %v5223_v16 }
0x12c7   : > { %p4661_p6 = scmp.ne.s32.totalorder %s6206_s13, 1 }
0x12c8   : > { %s6207_s12 = sld [smem:[#allocation25_spill]] (!%p4661_p6)  ;;  %s6208_s0 = sld [smem:[#allocation26_spill]] (!%p4661_p6) }
0x12c9   : > { %5032 = vmatmul.mubr.msk.bf16.vlgmr.msra.gmra.mrb[84].mxu0 %vm1389_vm4, %v3905_v41  ;;  %s6209_s7 = sld [smem:[#allocation27_spill]] (!%p4661_p6) }
0x12ca   : > { %5047 = vmatprep.mubr.msk.bf16.mxu0 %vm5224_vm2, %v5223_v16  ;;  %5044 = vmatpush3.bf16.msra.mxu0 %v5113_v7 }
0x12cb   : > { %5045 = vmatprep.subr.bf16.mxu0 %v5223_v16 }
0x12ce   : > { %5046 = vmatpush3.bf16.msra.mxu0 %v5114_v1 }
0x12ea   : > { %v4027_v54 = vpop.xlane.xlu1 %4026 }
0x12eb   : > { %v4031_v9 = vmul.f32 0.03125, %v4027_v54 }
0x12ed   : > { %v4033_v56 = vsub.f32 %v6015_v30, %v4031_v9 }
0x12ef   : > { %v4035_v50 = vmul.f32 %v4033_v56, %v4033_v56 }
0x12f1   : > { %v4037_v60 = vsel %vm1078_vm1, %v4035_v50, 0.0 }
0x12f2   : > { %4038 = vadd.xlane.f32.xlu1 %v4037_v60 }
0x1358   : > { %v3799_v19 = vpop.f32.mrb[76].mxu1 }
0x1359   : > { %v5015_v37 = vpop.f32.mrb[77].mxu1 }
0x135a   : > { %v3802_v45 = vpop.f32.mrb[78].mxu1 }
0x135b   : > { %v5016_v15 = vpop.f32.mrb[79].mxu1 }
0x1367   : > { %v3848_v22 = vpop.f32.mrb[80].mxu0 }
0x1368   : > { %v3952_v42 = vpack.c.bf16 %v3848_v22, %v3799_v19  ;;  %v5021_v31 = vpop.f32.mrb[81].mxu0 }
0x1369   : > { %v3851_v55 = vpop.f32.mrb[82].mxu0 }
0x136a   : > { %v5022_v58 = vpop.f32.mrb[83].mxu0  ;;  %3954 = vxpose.xlu0.c.b16.start [1/2] (short) (narrow) %v3952_v42, 16 }
0x1389   : > { %v3897_v57 = vpop.f32.mrb[80].mxu1 }
0x138a   : > { %v5027_v61 = vpop.f32.mrb[81].mxu1 }
0x138b   : > { %v3900_v62 = vpop.f32.mrb[82].mxu1 }
0x138c   : > { %v5028_v0 = vpop.f32.mrb[83].mxu1 }
0x139c   : > { %v3946_v4 = vpop.f32.mrb[84].mxu0 }
0x139d   : > { %v3953_v6 = vpack.c.bf16 %v3946_v4, %v3897_v57  ;;  %v5033_v21 = vpop.f32.mrb[85].mxu0 }
0x139e   : > { %v3949_v13 = vpop.f32.mrb[86].mxu0 }
0x139f   : > { %v5034_v14 = vpop.f32.mrb[87].mxu0  ;;  %3955 = vxpose.xlu0.c.b16.end [2/2] (short) (narrow) %v3953_v6, 16 }
0x1401   : > { %v3962_v17 = vpop.trf.xlu0 }
0x1402   : > { %5040 = vmatmul.mubr.msk.bf16.vlgmr.msra.gmra.mrb[84].mxu1 %vm1078_vm1, %v3962_v17 }
0x1403   : > { %5059 = vmatprep.mubr.msk.bf16.mxu1 %vm5224_vm2, %v5223_v16 }
0x14d5   : > { %v4007_v20 = vpop.f32.mrb[84].mxu1 }
0x14d6   : > { %v4020_v44 = vadd.f32 %v6010_v43, %v4007_v20  ;;  %v5041_v53 = vpop.f32.mrb[85].mxu1  ;;  %v4039_v43 = vpop.xlane.xlu1 %4038 }
0x14d7   : > { %v4010_v47 = vpop.f32.mrb[86].mxu1  ;;  %v4043_v39 = vmul.f32 0.03125, %v4039_v43 }
0x14d8   : > { %v6048_v28 = vadd.f32 %v4020_v44, %v5757_v26  ;;  %v5042_v51 = vpop.f32.mrb[87].mxu1  ;;  %v5115_v26 = vld [vmem:[%s5454_s23] sm:$0xff]  }
0x14d9   : > { %5052 = vmatpush3.bf16.msra.mxu1 %v5115_v26  ;;  %v4045_v11 = vadd.f32 1e-05, %v4043_v39 }
0x14da   : > { %v4028_v23 = vsel %vm1078_vm1, %v6048_v28, 0.0  ;;  %5053 = vmatprep.subr.bf16.mxu1 %v5223_v16 }
0x14db   : > { %4029 = vadd.xlane.f32.xlu0 %v4028_v23  ;;  %5191 = vrsqrt.f32 %v4045_v11 }
0x14dd   : > { %5054 = vmatpush3.bf16.msra.mxu1 %v5116_v8 }
0x14de   : > { %5055 = vmatprep.subr.bf16.mxu1 %v5223_v16 }
0x14e1   : > { %5056 = vmatpush3.bf16.msra.mxu1 %v5117_v35 }
0x14e2   : > { %5057 = vmatprep.subr.bf16.mxu1 %v5223_v16  ;;  %v4655_v16 = vld [vmem:[%s1055_s15] ss:$0 sm:$0xff] }
0x14e5   : > { %v5192_v49 = vpop.eup %5191  ;;  %5058 = vmatpush3.bf16.msra.mxu1 %v5118_v38 }
0x14e6   : > { %v4049_v12 = vmul.f32 %v5192_v49, %v4033_v56 }
0x14e8   : > { %v4057_v48 = vmul.f32 %v4649_v63, %v4049_v12 }
0x14ea   : > { %v4065_v27 = vadd.f32 %v4650_v59, %v4057_v48 }
0x1568   : > { %v4030_v29 = vpop.xlane.xlu0 %4029 }
0x1569   : > { %v4032_v3 = vmul.f32 0.03125, %v4030_v29 }
0x156b   : > { %v4034_v46 = vsub.f32 %v6048_v28, %v4032_v3 }
0x156d   : > { %v4036_v36 = vmul.f32 %v4034_v46, %v4034_v46 }
0x156f   : > { %v4040_v32 = vsel %vm1078_vm1, %v4036_v36, 0.0 }
0x1570   : > { %4041 = vadd.xlane.f32.xlu1 %v4040_v32  ;;  %v4663_v32 = vld [vmem:[%s6208_s0] ss:$0 sm:$0xff] (!%p4661_p6) }
0x15fd   : > { %v4042_v24 = vpop.xlane.xlu1 %4041 }
0x15fe   : > { %v4044_v10 = vmul.f32 0.03125, %v4042_v24 }
0x1600   : > { %v4046_v52 = vadd.f32 1e-05, %v4044_v10 }
0x1602   : > { %5193 = vrsqrt.f32 %v4046_v52 }
0x160c   : > { %v5194_v25 = vpop.eup %5193 }
0x160d   : > { %v4050_v33 = vmul.f32 %v5194_v25, %v4034_v46  ;;  %v4662_v46 = vld [vmem:[%s6207_s12] ss:$0 sm:$0xff] (!%p4661_p6) }
0x160f   : > { %v4058_v5 = vmul.f32 %v4649_v63, %v4050_v33 }
0x1611   : > { %v4066_v2 = vadd.f32 %v4650_v59, %v4058_v5 }
0x1613   : > { %v4067_v34 = vpack.c.bf16 %v4066_v2, %v4065_v27 }
0x1615   : > { %5048 = vmatmul.mubr.msk.bf16.vlgmr.msra.gmra.mrb[88].mxu0 %vm1078_vm1, %v4067_v34 }
0x16e8   : > { %v4128_v40 = vpop.f32.mrb[88].mxu0 }
0x16e9   : > { %v4129_v41 = vadd.f32 %v4651_v18, %v4128_v40  ;;  %v5049_v54 = vpop.f32.mrb[89].mxu0 }
0x16ea   : > { %v4131_v9 = vpop.f32.mrb[90].mxu0 }
0x16eb   : > { %v4132_v56 = vadd.f32 %v4651_v18, %v4131_v9  ;;  %v5050_v50 = vpop.f32.mrb[91].mxu0  ;;  %v4135_v60 = vmax.f32 %v4129_v41, 0.0 }
0x16ed   : > { %v4136_v19 = vmax.f32 %v4132_v56, 0.0 }
0x16ef   : > { %v4137_v37 = vpack.c.bf16 %v4136_v19, %v4135_v60 }
0x16f1   : > { %5060 = vmatmul.mubr.msk.bf16.vlgmr.msra.gmra.mrb[88].mxu1 %vm4177_vm5, %v4137_v37 }
0x17c4   : > { %v4215_v45 = vpop.f32.mrb[88].mxu1 }
0x17c5   : > { %v4216_v15 = vadd.f32 %v4655_v16, %v4215_v45  ;;  %v5061_v22 = vpop.f32.mrb[89].mxu1  ;;  %4229 = sbr.rel (%p4661_p6) target bundleno = 6407 (0x1907), region = 120 }
0x17c6   : > { %v4218_v42 = vpop.f32.mrb[90].mxu1 }
0x17c7   : > { %v4222_v31 = vadd.f32 %v4216_v15, %v6015_v30  ;;  %v4219_v55 = vadd.f32 %v4655_v16, %v4218_v42  ;;  %v5062_v58 = vpop.f32.mrb[91].mxu1 }
0x17c9   : > { %4224 = vst.msk [vmem:[#allocation2] sm:$0xff] %vm1078_vm1, %v4222_v31  ;;  %v4223_v57 = vadd.f32 %v4219_v55, %v6048_v28  ;;  %v4232_v61 = vsel (!%p4661_p6), %vm1078_vm1, %v4222_v31, 0.0 }
0x17ca   : > { %4233 = vadd.xlane.f32.xlu0 (!%p4661_p6), %v4232_v61 }
0x17cb   : > { %4225 = vst.msk [vmem:[#allocation2 + $0x8] sm:$0xff] %vm1078_vm1, %v4223_v57  ;;  %v4235_v62 = vsel (!%p4661_p6), %vm1078_vm1, %v4223_v57, 0.0 }
0x17ce   : > { %4236 = vadd.xlane.f32.xlu0 %v4235_v62 }
0x1857   : > { %v4234_v0 = vpop.xlane.xlu0 %4233 }
0x1858   : > { %v4238_v4 = vmul.f32 0.03125, %v4234_v0 }
0x185a   : > { %v4240_v30 = vsub.f32 %v4222_v31, %v4238_v4 }
0x185b   : > { %v4237_v6 = vpop.xlane.xlu0 %4236 }
0x185c   : > { %v4239_v21 = vmul.f32 0.03125, %v4237_v6  ;;  %v4242_v13 = vmul.f32 %v4240_v30, %v4240_v30 }
0x185e   : > { %v4241_v14 = vsub.f32 %v4223_v57, %v4239_v21  ;;  %v4244_v17 = vsel %vm1078_vm1, %v4242_v13, 0.0 }
0x185f   : > { %4245 = vadd.xlane.f32.xlu1 %v4244_v17 }
0x1860   : > { %v4243_v20 = vmul.f32 %v4241_v14, %v4241_v14 }
0x1862   : > { %v4247_v44 = vsel %vm1078_vm1, %v4243_v20, 0.0 }
0x1863   : > { %4248 = vadd.xlane.f32.xlu1 %v4247_v44 }
0x18ec   : > { %v4246_v53 = vpop.xlane.xlu1 %4245 }
0x18ed   : > { %v4250_v47 = vmul.f32 0.03125, %v4246_v53 }
0x18ef   : > { %v4252_v28 = vadd.f32 1e-05, %v4250_v47 }
0x18f0   : > { %v4249_v51 = vpop.xlane.xlu1 %4248 }
0x18f1   : > { %5195 = vrsqrt.f32 %v4252_v28  ;;  %v4251_v23 = vmul.f32 0.03125, %v4249_v51 }
0x18f3   : > { %v4253_v29 = vadd.f32 1e-05, %v4251_v23 }
0x18f5   : > { %5197 = vrsqrt.f32 %v4253_v29 }
0x18fb   : > { %v5196_v3 = vpop.eup %5195 }
0x18fc   : > { %v4256_v36 = vmul.f32 %v5196_v3, %v4240_v30 }
0x18fe   : > { %v4264_v7 = vmul.f32 %v4662_v46, %v4256_v36 }
0x18ff   : > { %v5198_v1 = vpop.eup %5197 }
0x1900   : > { %v4272_v26 = vadd.f32 %v4663_v32, %v4264_v7  ;;  %v4257_v8 = vmul.f32 %v5198_v1, %v4241_v14 }
0x1902   : > { %4274 = vst.msk [vmem:[%s6209_s7] sm:$0xff] %vm1078_vm1, %v4272_v26  ;;  %v4265_v43 = vmul.f32 %v4662_v46, %v4257_v8 }
0x1904   : > { %v4273_v39 = vadd.f32 %v4663_v32, %v4265_v43 }
0x1906   : > { %4275 = vst.msk [vmem:[%s6209_s7 + $0x8] sm:$0xff] %vm1078_vm1, %v4273_v39 }
0x1907 PF: > { %s6210_s11 = sld [smem:[#allocation5_spill]]  ;;  %s6211_s4 = sld [smem:[#allocation4_spill]] }
0x1908   : > { %s6212_s30 = sld [smem:[#allocation6_spill]] }
0x190d   : > { %s33_s24 = sadd.s32 1, %s6210_s11  }
0x190e   : > { %p30_p7 = scmp.ge.s32.totalorder %s33_s24, 4  }
0x1910   :  { %32 = sbr.rel (!%p30_p7) target bundleno = 20 (0x14), region = 210 }

</bundles_post_ra>
